<compile_context>
chip_gen: v7x
topology: tpu7x:2x2x1
jax: 0.10.0
libtpu: 0.0.40
codegen_flags: <defaults>
</compile_context>

<pallas_src>
import functools

import jax
import jax.numpy as jnp
import numpy as np
from jax import lax
from jax.experimental import pallas as pl
from jax.experimental.pallas import tpu as pltpu


# 3x3 tap order k = ky*3 + kx  <->  spatial offset (dy, dx) = (ky-1, kx-1).
_TAPS = tuple((dy, dx) for dy in (-1, 0, 1) for dx in (-1, 0, 1))


@functools.lru_cache(maxsize=None)
def _roll_sign():
    """Calibrate pltpu.roll's shift convention (and availability) once.

    The kernel needs tap[:, j] = src[:, (j + off) % HW].  With jnp.roll
    semantics that is shift = -off; the sign convention of the underlying TPU
    rotate has not been identical across toolchains, and a flipped sign would
    silently mirror the conv kernels, so probe it with a tiny kernel.
    Returns -1 (jnp.roll convention), +1 (opposite), or 0 if pltpu.roll does
    not lower on this toolchain (slice+concat fallback is used instead).
    """
    def probe(x_ref, o_ref):
        o_ref[...] = pltpu.roll(x_ref[...], shift=1, axis=1)

    try:
        x = jnp.broadcast_to(jnp.arange(128, dtype=jnp.float32), (8, 128))
        y = pl.pallas_call(
            probe, out_shape=jax.ShapeDtypeStruct((8, 128), jnp.float32))(x)
        return -1 if float(y[0, 0]) == 127.0 else 1
    except Exception:            # defensive: keep the kernel runnable anyway
        return 0


def _shift_lanes(x, off, hw):
    """result[:, j] = x[:, (j + off) % hw]  (wrapped lanes are masked later)."""
    sign = _roll_sign()
    if sign == 0:                           # fallback: static slice + concat
        s = off % hw
        return x if s == 0 else jnp.concatenate([x[:, s:], x[:, :s]], axis=1)
    return pltpu.roll(x, shift=(sign * off) % hw, axis=1)


@functools.lru_cache(maxsize=None)
def _boundary_masks(H, W):
    """(9, 1, H*W) f32 0/1 masks reproducing the 3x3 conv's zero padding."""
    hw = H * W
    hpos = np.arange(hw) // W
    wpos = np.arange(hw) % W
    m = np.ones((9, 1, hw), np.float32)
    for k, (dy, dx) in enumerate(_TAPS):
        ok = ((hpos + dy >= 0) & (hpos + dy < H) &
              (wpos + dx >= 0) & (wpos + dx < W))
        m[k, 0, :] = ok.astype(np.float32)
    return m


def _pick_batch_tile(B, max_bt=8):
    """Largest batch tile <= max_bt dividing B that keeps >=4 grid steps
    (2 "parallel" steps per v7x TensorCore) when possible, else >=2, else 1."""
    divs = [d for d in range(1, min(B, max_bt) + 1) if B % d == 0]
    for min_steps in (4, 2, 1):
        cand = [d for d in divs if B // d >= min_steps]
        if cand:
            return max(cand)
    return 1


def _make_carbh_kernel(H, W, C, Bt):
    HW = H * W

    def kernel(x_ref, w1_ref, w2_ref, mask_ref, fc1w_ref, fc1b_ref,
               fc2w_ref, fc2b_ref, alpha_ref, out_ref, taps_ref):
        alpha = alpha_ref[0, 0]                    # PReLU shared slope (SMEM)

        def conv3x3(src_f32, wf_ref):
            # Fill the K-fused (9C, HW) bf16 operand: one rolled + masked tap
            # per 3x3 offset.  The mod-wrapped lanes of each roll are exactly
            # the out-of-image neighbours and are zeroed by the precomputed
            # mask, reproducing the conv's zero padding.  A single MXU matmul
            # (C, 9C) @ (9C, HW) then does all nine taps AND their
            # accumulation in f32 (no per-tap f32 adds/selects on the VPU).
            for k, (dy, dx) in enumerate(_TAPS):
                if dy == 0 and dx == 0:
                    tap = src_f32                       # centre: no shift/mask
                else:
                    rolled = _shift_lanes(src_f32, dy * W + dx, HW)
                    tap = rolled * mask_ref[k]          # (1, HW) f32 mask
                taps_ref[k * C:(k + 1) * C, :] = tap.astype(jnp.bfloat16)
            return jnp.dot(wf_ref[...], taps_ref[...],
                           preferred_element_type=jnp.float32)   # (C, HW) f32

        for b in range(Bt):                            # unrolled batch tile
            x_f32 = x_ref[b]                            # (C, HW) f32

            acc1 = conv3x3(x_f32, w1_ref)
            act1 = jnp.where(acc1 > 0, acc1, alpha * acc1)        # PReLU
            acc2 = conv3x3(act1, w2_ref)

            # FRM: global avg pool -> 1x1 conv -> ReLU -> 1x1 conv -> sigmoid.
            y = jnp.sum(acc2, axis=1, keepdims=True) * (1.0 / HW)  # (C, 1)
            h = jnp.sum(fc1w_ref[...] * y, axis=0, keepdims=True) + fc1b_ref[...]
            h = jnp.maximum(h, 0.0)                                # (1, Cr)
            s = jnp.sum(fc2w_ref[...] * h, axis=1, keepdims=True) + fc2b_ref[...]
            s = jax.nn.sigmoid(s)                                  # (C, 1)

            # Channel-wise scale + exact f32 residual.
            out_ref[b] = (acc2 * s + x_f32).astype(out_ref.dtype)

    return kernel


@jax.jit
def carbh_forward(x_nchw, params):
    """CARBH forward. x is NCHW (PyTorch layout); returns NCHW float32."""
    B, C, H, W = x_nchw.shape
    HW = H * W

    conv1_w = params["conv1_w"]          # (C, C, 3, 3)  OIHW, no bias
    conv2_w = params["conv2_w"]          # (C, C, 3, 3)
    fc1_w = params["fc1_w"]              # (Cr, C, 1, 1)
    fc1_b = params["fc1_b"]              # (Cr,)
    fc2_w = params["fc2_w"]              # (C, Cr, 1, 1)
    fc2_b = params["fc2_b"]              # (C,)
    prelu_a = params["prelu_a"]          # (1,)  nn.PReLU() shared slope
    Cr = fc1_w.shape[0]

    # K-fused conv weights: Wf[co, k*C + ci] = w[co, ci, ky, kx], k = ky*3+kx.
    # bf16 operands for the MXU; accumulation stays f32 in-kernel.
    w1_f = jnp.transpose(conv1_w, (0, 2, 3, 1)).reshape(C, 9 * C).astype(jnp.bfloat16)
    w2_f = jnp.transpose(conv2_w, (0, 2, 3, 1)).reshape(C, 9 * C).astype(jnp.bfloat16)

    fc1w = jnp.transpose(fc1_w.reshape(Cr, C), (1, 0)).astype(jnp.float32)  # (C, Cr)
    fc1b = fc1_b.reshape(1, Cr).astype(jnp.float32)
    fc2w = fc2_w.reshape(C, Cr).astype(jnp.float32)                         # (C, Cr)
    fc2b = fc2_b.reshape(C, 1).astype(jnp.float32)
    alpha = jnp.asarray(prelu_a, jnp.float32).reshape(1, 1)
    masks = jnp.asarray(_boundary_masks(H, W))                              # (9,1,HW)

    # Lane-dense NCHW-flat view: last dim H*W is a multiple of 128, so all
    # kernel loads/stores are unmasked full-lane accesses.  No pad/transpose.
    x_flat = x_nchw.reshape(B, C, HW).astype(jnp.float32)

    Bt = _pick_batch_tile(B)

    grid_spec = pltpu.PrefetchScalarGridSpec(
        num_scalar_prefetch=0,
        grid=(B // Bt,),
        in_specs=[
            pl.BlockSpec((Bt, C, HW), lambda i: (i, 0, 0)),       # x (batch tile)
            pl.BlockSpec((C, 9 * C), lambda i: (0, 0)),           # conv1 fused W
            pl.BlockSpec((C, 9 * C), lambda i: (0, 0)),           # conv2 fused W
            pl.BlockSpec((9, 1, HW), lambda i: (0, 0, 0)),        # boundary masks
            pl.BlockSpec((C, Cr), lambda i: (0, 0)),              # FRM fc1 w
            pl.BlockSpec((1, Cr), lambda i: (0, 0)),              # FRM fc1 b
            pl.BlockSpec((C, Cr), lambda i: (0, 0)),              # FRM fc2 w
            pl.BlockSpec((C, 1), lambda i: (0, 0)),               # FRM fc2 b
            pl.BlockSpec(memory_space=pltpu.MemorySpace.SMEM),    # PReLU slope
        ],
        out_specs=pl.BlockSpec((Bt, C, HW), lambda i: (i, 0, 0)),
        scratch_shapes=[pltpu.VMEM((9 * C, HW), jnp.bfloat16)],   # K-fused taps
    )

    out_flat = pl.pallas_call(
        _make_carbh_kernel(H, W, C, Bt),
        out_shape=jax.ShapeDtypeStruct((B, C, HW), jnp.float32),
        grid_spec=grid_spec,
        compiler_params=pltpu.CompilerParams(
            dimension_semantics=("parallel",)),
    )(x_flat, w1_f, w2_f, masks, fc1w, fc1b, fc2w, fc2b, alpha)

    return out_flat.reshape(B, C, H, W)


def carbh_ref(x_nchw, params):
    """Pure-JAX (f32) reference with the same math as the PyTorch module."""
    dn = ('NCHW', 'OIHW', 'NCHW')
    B, C, H, W = x_nchw.shape
    Cr = params["fc1_w"].shape[0]
    a = jnp.asarray(params["prelu_a"], jnp.float32).reshape(())

    c1 = lax.conv_general_dilated(x_nchw, params["conv1_w"], (1, 1), 'SAME',
                                  dimension_numbers=dn)
    a1 = jnp.where(c1 > 0, c1, a * c1)                               # PReLU
    c2 = lax.conv_general_dilated(a1, params["conv2_w"], (1, 1), 'SAME',
                                  dimension_numbers=dn)

    fc1_w = params["fc1_w"].reshape(Cr, C)
    fc2_w = params["fc2_w"].reshape(C, Cr)
    y = jnp.mean(c2, axis=(2, 3), keepdims=True)                     # (B,C,1,1)
    h = jnp.einsum('bchw,kc->bkhw', y, fc1_w) + params["fc1_b"].reshape(1, Cr, 1, 1)
    h = jnp.maximum(h, 0.0)
    s = jnp.einsum('bkhw,ck->bchw', h, fc2_w) + params["fc2_b"].reshape(1, C, 1, 1)
    s = jax.nn.sigmoid(s)
    return c2 * s + x_nchw


if __name__ == "__main__":
    # nChannels must be >= reduction for FRM's bottleneck; use C=32, r=16.
    # B=8 exercises the batch tiling (Bt=2, grid of 4 "parallel" steps).
    B, C, H, W = 8, 32, 16, 16
    reduction = 16
    Cr = C // reduction

    key = jax.random.PRNGKey(0)
    ks = jax.random.split(key, 7)

    x = jax.random.normal(ks[0], (B, C, H, W), jnp.float32)          # NCHW

    params = dict(
        conv1_w=jax.random.normal(ks[1], (C, C, 3, 3), jnp.float32) * 0.05,
        conv2_w=jax.random.normal(ks[2], (C, C, 3, 3), jnp.float32) * 0.05,
        fc1_w=jax.random.normal(ks[3], (Cr, C, 1, 1), jnp.float32) * 0.2,
        fc1_b=jax.random.normal(ks[4], (Cr,), jnp.float32) * 0.1,
        fc2_w=jax.random.normal(ks[5], (C, Cr, 1, 1), jnp.float32) * 0.2,
        fc2_b=jax.random.normal(ks[6], (C,), jnp.float32) * 0.1,
        prelu_a=jnp.full((1,), 0.25, jnp.float32),                   # nn.PReLU() init
    )

    _roll_sign()   # resolve pltpu.roll's shift convention once, outside jit tracing

    out = jax.block_until_ready(carbh_forward(x, params))
    ref = jax.block_until_ready(carbh_ref(x, params))
    # bf16 matmul operands (f32 accumulation) vs f32 reference.
    np.testing.assert_allclose(np.asarray(out), np.asarray(ref),
                               rtol=2e-2, atol=2e-2)
    print("KERNEL_OK")
</pallas_src>

<mosaic_0001>
module attributes {stable_mosaic.version = 11 : i64} {
  func.func @probe(%arg0: memref<8x128xf32, #tpu.memory_space<vmem>>, %arg1: memref<8x128xf32, #tpu.memory_space<vmem>>) attributes {dimension_semantics = [], scalar_prefetch = 0 : i64, scratch_operands = 0 : i64, tpu.core_type = #tpu.core_type<tc>} {
    %c0 = arith.constant 0 : index
    %c0_0 = arith.constant 0 : index
    %0 = vector.load %arg0[%c0, %c0_0] : memref<8x128xf32, #tpu.memory_space<vmem>>, vector<8x128xf32>
    %c1_i32 = arith.constant 1 : i32
    %1 = tpu.dynamic_rotate %0 by %c1_i32 dim 1 : vector<8x128xf32>, i32 -> vector<8x128xf32>
    %c0_1 = arith.constant 0 : index
    %c0_2 = arith.constant 0 : index
    %2 = vector.load %arg1[%c0_1, %c0_2] : memref<8x128xf32, #tpu.memory_space<vmem>>, vector<8x128xf32>
    tpu.vector_store %arg1[%c0_1, %c0_2], %1 {strides = array<i32>} : memref<8x128xf32, #tpu.memory_space<vmem>>, vector<8x128xf32>,
    return
  }
}

module attributes {stable_mosaic.version = 11 : i64} {
  func.func @kernel(%arg0: i32, %arg1: memref<2x32x256xf32, #tpu.memory_space<vmem>>, %arg2: memref<32x288xbf16, #tpu.memory_space<vmem>>, %arg3: memref<32x288xbf16, #tpu.memory_space<vmem>>, %arg4: memref<9x1x256xf32, #tpu.memory_space<vmem>>, %arg5: memref<32x2xf32, #tpu.memory_space<vmem>>, %arg6: memref<1x2xf32, #tpu.memory_space<vmem>>, %arg7: memref<32x2xf32, #tpu.memory_space<vmem>>, %arg8: memref<32x1xf32, #tpu.memory_space<vmem>>, %arg9: memref<1x1xf32, #tpu.memory_space<smem>>, %arg10: memref<2x32x256xf32, #tpu.memory_space<vmem>>, %arg11: memref<288x256xbf16, #tpu.memory_space<vmem>>) attributes {dimension_semantics = [#tpu.dimension_semantics<parallel>], iteration_bounds = array<i64: 4>, scalar_prefetch = 0 : i64, scratch_operands = 1 : i64, tpu.core_type = #tpu.core_type<tc>, window_params = [{transform_indices = @transform_0, window_bounds = array<i64: 2, 32, 256>}, {pipeline_mode = #tpu.pipeline_mode<synchronous>, transform_indices = @transform_1, window_bounds = array<i64: 32, 288>}, {pipeline_mode = #tpu.pipeline_mode<synchronous>, transform_indices = @transform_2, window_bounds = array<i64: 32, 288>}, {pipeline_mode = #tpu.pipeline_mode<synchronous>, transform_indices = @transform_3, window_bounds = array<i64: 9, 1, 256>}, {pipeline_mode = #tpu.pipeline_mode<synchronous>, transform_indices = @transform_4, window_bounds = array<i64: 32, 2>}, {pipeline_mode = #tpu.pipeline_mode<synchronous>, transform_indices = @transform_5, window_bounds = array<i64: 1, 2>}, {pipeline_mode = #tpu.pipeline_mode<synchronous>, transform_indices = @transform_6, window_bounds = array<i64: 32, 2>}, {pipeline_mode = #tpu.pipeline_mode<synchronous>, transform_indices = @transform_7, window_bounds = array<i64: 32, 1>}, {transform_indices = @transform_8, window_bounds = array<i64: 1, 1>}, {transform_indices = @transform_9, window_bounds = array<i64: 2, 32, 256>}]} {
    %c0 = arith.constant 0 : index
    %c0_0 = arith.constant 0 : index
    %0 = memref.load %arg9[%c0, %c0_0] : memref<1x1xf32, #tpu.memory_space<smem>>
    %c0_1 = arith.constant 0 : index
    %c0_2 = arith.constant 0 : index
    %c0_3 = arith.constant 0 : index
    %1 = vector.load %arg1[%c0_1, %c0_2, %c0_3] : memref<2x32x256xf32, #tpu.memory_space<vmem>>, vector<1x32x256xf32>
    %2 = vector.shape_cast %1 : vector<1x32x256xf32> to vector<32x256xf32>
    %3 = vector.extract_strided_slice %2 {offsets = [0, 239], sizes = [32, 17], strides = [1, 1]} : vector<32x256xf32> to vector<32x17xf32>
    %4 = vector.extract_strided_slice %2 {offsets = [0, 0], sizes = [32, 239], strides = [1, 1]} : vector<32x256xf32> to vector<32x239xf32>
    %5 = tpu.concatenate %3, %4 in 1 : vector<32x17xf32>, vector<32x239xf32> -> vector<32x256xf32>
    %c0_4 = arith.constant 0 : index
    %c0_5 = arith.constant 0 : index
    %c0_6 = arith.constant 0 : index
    %6 = vector.load %arg4[%c0_4, %c0_5, %c0_6] : memref<9x1x256xf32, #tpu.memory_space<vmem>>, vector<1x1x256xf32>
    %7 = vector.shape_cast %6 : vector<1x1x256xf32> to vector<1x256xf32>
    %8 = vector.broadcast %7 : vector<1x256xf32> to vector<32x256xf32>
    %9 = arith.mulf %5, %8 : vector<32x256xf32>
    %10 = arith.truncf %9 : vector<32x256xf32> to vector<32x256xbf16>
    %c0_7 = arith.constant 0 : index
    %c0_8 = arith.constant 0 : index
    %11 = vector.load %arg11[%c0_7, %c0_8] : memref<288x256xbf16, #tpu.memory_space<vmem>>, vector<32x256xbf16>
    tpu.vector_store %arg11[%c0_7, %c0_8], %10 {strides = array<i32>} : memref<288x256xbf16, #tpu.memory_space<vmem>>, vector<32x256xbf16>,
    %12 = vector.extract_strided_slice %2 {offsets = [0, 240], sizes = [32, 16], strides = [1, 1]} : vector<32x256xf32> to vector<32x16xf32>
    %13 = vector.extract_strided_slice %2 {offsets = [0, 0], sizes = [32, 240], strides = [1, 1]} : vector<32x256xf32> to vector<32x240xf32>
    %14 = tpu.concatenate %12, %13 in 1 : vector<32x16xf32>, vector<32x240xf32> -> vector<32x256xf32>
    %c1 = arith.constant 1 : index
    %c0_9 = arith.constant 0 : index
    %c0_10 = arith.constant 0 : index
    %15 = vector.load %arg4[%c1, %c0_9, %c0_10] : memref<9x1x256xf32, #tpu.memory_space<vmem>>, vector<1x1x256xf32>
    %16 = vector.shape_cast %15 : vector<1x1x256xf32> to vector<1x256xf32>
    %17 = vector.broadcast %16 : vector<1x256xf32> to vector<32x256xf32>
    %18 = arith.mulf %14, %17 : vector<32x256xf32>
    %19 = arith.truncf %18 : vector<32x256xf32> to vector<32x256xbf16>
    %c32 = arith.constant 32 : index
    %c0_11 = arith.constant 0 : index
    %20 = vector.load %arg11[%c32, %c0_11] : memref<288x256xbf16, #tpu.memory_space<vmem>>, vector<32x256xbf16>
    tpu.vector_store %arg11[%c32, %c0_11], %19 {strides = array<i32>} : memref<288x256xbf16, #tpu.memory_space<vmem>>, vector<32x256xbf16>,
    %21 = vector.extract_strided_slice %2 {offsets = [0, 241], sizes = [32, 15], strides = [1, 1]} : vector<32x256xf32> to vector<32x15xf32>
    %22 = vector.extract_strided_slice %2 {offsets = [0, 0], sizes = [32, 241], strides = [1, 1]} : vector<32x256xf32> to vector<32x241xf32>
    %23 = tpu.concatenate %21, %22 in 1 : vector<32x15xf32>, vector<32x241xf32> -> vector<32x256xf32>
    %c2 = arith.constant 2 : index
    %c0_12 = arith.constant 0 : index
    %c0_13 = arith.constant 0 : index
    %24 = vector.load %arg4[%c2, %c0_12, %c0_13] : memref<9x1x256xf32, #tpu.memory_space<vmem>>, vector<1x1x256xf32>
    %25 = vector.shape_cast %24 : vector<1x1x256xf32> to vector<1x256xf32>
    %26 = vector.broadcast %25 : vector<1x256xf32> to vector<32x256xf32>
    %27 = arith.mulf %23, %26 : vector<32x256xf32>
    %28 = arith.truncf %27 : vector<32x256xf32> to vector<32x256xbf16>
    %c64 = arith.constant 64 : index
    %c0_14 = arith.constant 0 : index
    %29 = vector.load %arg11[%c64, %c0_14] : memref<288x256xbf16, #tpu.memory_space<vmem>>, vector<32x256xbf16>
    tpu.vector_store %arg11[%c64, %c0_14], %28 {strides = array<i32>} : memref<288x256xbf16, #tpu.memory_space<vmem>>, vector<32x256xbf16>,
    %30 = vector.extract_strided_slice %2 {offsets = [0, 255], sizes = [32, 1], strides = [1, 1]} : vector<32x256xf32> to vector<32x1xf32>
    %31 = vector.extract_strided_slice %2 {offsets = [0, 0], sizes = [32, 255], strides = [1, 1]} : vector<32x256xf32> to vector<32x255xf32>
    %32 = tpu.concatenate %30, %31 in 1 : vector<32x1xf32>, vector<32x255xf32> -> vector<32x256xf32>
    %c3 = arith.constant 3 : index
    %c0_15 = arith.constant 0 : index
    %c0_16 = arith.constant 0 : index
    %33 = vector.load %arg4[%c3, %c0_15, %c0_16] : memref<9x1x256xf32, #tpu.memory_space<vmem>>, vector<1x1x256xf32>
    %34 = vector.shape_cast %33 : vector<1x1x256xf32> to vector<1x256xf32>
    %35 = vector.broadcast %34 : vector<1x256xf32> to vector<32x256xf32>
    %36 = arith.mulf %32, %35 : vector<32x256xf32>
    %37 = arith.truncf %36 : vector<32x256xf32> to vector<32x256xbf16>
    %c96 = arith.constant 96 : index
    %c0_17 = arith.constant 0 : index
    %38 = vector.load %arg11[%c96, %c0_17] : memref<288x256xbf16, #tpu.memory_space<vmem>>, vector<32x256xbf16>
    tpu.vector_store %arg11[%c96, %c0_17], %37 {strides = array<i32>} : memref<288x256xbf16, #tpu.memory_space<vmem>>, vector<32x256xbf16>,
    %39 = arith.truncf %2 : vector<32x256xf32> to vector<32x256xbf16>
    %c128 = arith.constant 128 : index
    %c0_18 = arith.constant 0 : index
    %40 = vector.load %arg11[%c128, %c0_18] : memref<288x256xbf16, #tpu.memory_space<vmem>>, vector<32x256xbf16>
    tpu.vector_store %arg11[%c128, %c0_18], %39 {strides = array<i32>} : memref<288x256xbf16, #tpu.memory_space<vmem>>, vector<32x256xbf16>,
    %41 = vector.extract_strided_slice %2 {offsets = [0, 1], sizes = [32, 255], strides = [1, 1]} : vector<32x256xf32> to vector<32x255xf32>
    %42 = vector.extract_strided_slice %2 {offsets = [0, 0], sizes = [32, 1], strides = [1, 1]} : vector<32x256xf32> to vector<32x1xf32>
    %43 = tpu.concatenate %41, %42 in 1 : vector<32x255xf32>, vector<32x1xf32> -> vector<32x256xf32>
    %c5 = arith.constant 5 : index
    %c0_19 = arith.constant 0 : index
    %c0_20 = arith.constant 0 : index
    %44 = vector.load %arg4[%c5, %c0_19, %c0_20] : memref<9x1x256xf32, #tpu.memory_space<vmem>>, vector<1x1x256xf32>
    %45 = vector.shape_cast %44 : vector<1x1x256xf32> to vector<1x256xf32>
    %46 = vector.broadcast %45 : vector<1x256xf32> to vector<32x256xf32>
    %47 = arith.mulf %43, %46 : vector<32x256xf32>
    %48 = arith.truncf %47 : vector<32x256xf32> to vector<32x256xbf16>
    %c160 = arith.constant 160 : index
    %c0_21 = arith.constant 0 : index
    %49 = vector.load %arg11[%c160, %c0_21] : memref<288x256xbf16, #tpu.memory_space<vmem>>, vector<32x256xbf16>
    tpu.vector_store %arg11[%c160, %c0_21], %48 {strides = array<i32>} : memref<288x256xbf16, #tpu.memory_space<vmem>>, vector<32x256xbf16>,
    %50 = vector.extract_strided_slice %2 {offsets = [0, 15], sizes = [32, 241], strides = [1, 1]} : vector<32x256xf32> to vector<32x241xf32>
    %51 = vector.extract_strided_slice %2 {offsets = [0, 0], sizes = [32, 15], strides = [1, 1]} : vector<32x256xf32> to vector<32x15xf32>
    %52 = tpu.concatenate %50, %51 in 1 : vector<32x241xf32>, vector<32x15xf32> -> vector<32x256xf32>
    %c6 = arith.constant 6 : index
    %c0_22 = arith.constant 0 : index
    %c0_23 = arith.constant 0 : index
    %53 = vector.load %arg4[%c6, %c0_22, %c0_23] : memref<9x1x256xf32, #tpu.memory_space<vmem>>, vector<1x1x256xf32>
    %54 = vector.shape_cast %53 : vector<1x1x256xf32> to vector<1x256xf32>
    %55 = vector.broadcast %54 : vector<1x256xf32> to vector<32x256xf32>
    %56 = arith.mulf %52, %55 : vector<32x256xf32>
    %57 = arith.truncf %56 : vector<32x256xf32> to vector<32x256xbf16>
    %c192 = arith.constant 192 : index
    %c0_24 = arith.constant 0 : index
    %58 = vector.load %arg11[%c192, %c0_24] : memref<288x256xbf16, #tpu.memory_space<vmem>>, vector<32x256xbf16>
    tpu.vector_store %arg11[%c192, %c0_24], %57 {strides = array<i32>} : memref<288x256xbf16, #tpu.memory_space<vmem>>, vector<32x256xbf16>,
    %59 = vector.extract_strided_slice %2 {offsets = [0, 16], sizes = [32, 240], strides = [1, 1]} : vector<32x256xf32> to vector<32x240xf32>
    %60 = vector.extract_strided_slice %2 {offsets = [0, 0], sizes = [32, 16], strides = [1, 1]} : vector<32x256xf32> to vector<32x16xf32>
    %61 = tpu.concatenate %59, %60 in 1 : vector<32x240xf32>, vector<32x16xf32> -> vector<32x256xf32>
    %c7 = arith.constant 7 : index
    %c0_25 = arith.constant 0 : index
    %c0_26 = arith.constant 0 : index
    %62 = vector.load %arg4[%c7, %c0_25, %c0_26] : memref<9x1x256xf32, #tpu.memory_space<vmem>>, vector<1x1x256xf32>
    %63 = vector.shape_cast %62 : vector<1x1x256xf32> to vector<1x256xf32>
    %64 = vector.broadcast %63 : vector<1x256xf32> to vector<32x256xf32>
    %65 = arith.mulf %61, %64 : vector<32x256xf32>
    %66 = arith.truncf %65 : vector<32x256xf32> to vector<32x256xbf16>
    %c224 = arith.constant 224 : index
    %c0_27 = arith.constant 0 : index
    %67 = vector.load %arg11[%c224, %c0_27] : memref<288x256xbf16, #tpu.memory_space<vmem>>, vector<32x256xbf16>
    tpu.vector_store %arg11[%c224, %c0_27], %66 {strides = array<i32>} : memref<288x256xbf16, #tpu.memory_space<vmem>>, vector<32x256xbf16>,
    %68 = vector.extract_strided_slice %2 {offsets = [0, 17], sizes = [32, 239], strides = [1, 1]} : vector<32x256xf32> to vector<32x239xf32>
    %69 = vector.extract_strided_slice %2 {offsets = [0, 0], sizes = [32, 17], strides = [1, 1]} : vector<32x256xf32> to vector<32x17xf32>
    %70 = tpu.concatenate %68, %69 in 1 : vector<32x239xf32>, vector<32x17xf32> -> vector<32x256xf32>
    %c8 = arith.constant 8 : index
    %c0_28 = arith.constant 0 : index
    %c0_29 = arith.constant 0 : index
    %71 = vector.load %arg4[%c8, %c0_28, %c0_29] : memref<9x1x256xf32, #tpu.memory_space<vmem>>, vector<1x1x256xf32>
    %72 = vector.shape_cast %71 : vector<1x1x256xf32> to vector<1x256xf32>
    %73 = vector.broadcast %72 : vector<1x256xf32> to vector<32x256xf32>
    %74 = arith.mulf %70, %73 : vector<32x256xf32>
    %75 = arith.truncf %74 : vector<32x256xf32> to vector<32x256xbf16>
    %c256 = arith.constant 256 : index
    %c0_30 = arith.constant 0 : index
    %76 = vector.load %arg11[%c256, %c0_30] : memref<288x256xbf16, #tpu.memory_space<vmem>>, vector<32x256xbf16>
    tpu.vector_store %arg11[%c256, %c0_30], %75 {strides = array<i32>} : memref<288x256xbf16, #tpu.memory_space<vmem>>, vector<32x256xbf16>,
    %c0_31 = arith.constant 0 : index
    %c0_32 = arith.constant 0 : index
    %77 = vector.load %arg2[%c0_31, %c0_32] : memref<32x288xbf16, #tpu.memory_space<vmem>>, vector<32x288xbf16>
    %c0_33 = arith.constant 0 : index
    %c0_34 = arith.constant 0 : index
    %78 = vector.load %arg11[%c0_33, %c0_34] : memref<288x256xbf16, #tpu.memory_space<vmem>>, vector<288x256xbf16>
    %cst = arith.constant dense<0.000000e+00> : vector<32x256xf32>
    %79 = tpu.matmul %77, %78, %cst {dimension_numbers = #tpu.dot_dimension_numbers<[1], [0], [0], [1], [0, 0, 1, 1], [], []>} : vector<32x288xbf16>, vector<288x256xbf16>, vector<32x256xf32> -> vector<32x256xf32>
    %cst_35 = arith.constant 0.000000e+00 : f32
    %80 = vector.broadcast %cst_35 : f32 to vector<32x256xf32>
    %81 = arith.cmpf ogt, %79, %80 : vector<32x256xf32>
    %82 = vector.broadcast %0 : f32 to vector<32x256xf32>
    %83 = arith.mulf %82, %79 : vector<32x256xf32>
    %84 = arith.select %81, %79, %83 : vector<32x256xi1>, vector<32x256xf32>
    %85 = vector.extract_strided_slice %84 {offsets = [0, 239], sizes = [32, 17], strides = [1, 1]} : vector<32x256xf32> to vector<32x17xf32>
    %86 = vector.extract_strided_slice %84 {offsets = [0, 0], sizes = [32, 239], strides = [1, 1]} : vector<32x256xf32> to vector<32x239xf32>
    %87 = tpu.concatenate %85, %86 in 1 : vector<32x17xf32>, vector<32x239xf32> -> vector<32x256xf32>
    %c0_36 = arith.constant 0 : index
    %c0_37 = arith.constant 0 : index
    %c0_38 = arith.constant 0 : index
    %88 = vector.load %arg4[%c0_36, %c0_37, %c0_38] : memref<9x1x256xf32, #tpu.memory_space<vmem>>, vector<1x1x256xf32>
    %89 = vector.shape_cast %88 : vector<1x1x256xf32> to vector<1x256xf32>
    %90 = vector.broadcast %89 : vector<1x256xf32> to vector<32x256xf32>
    %91 = arith.mulf %87, %90 : vector<32x256xf32>
    %92 = arith.truncf %91 : vector<32x256xf32> to vector<32x256xbf16>
    %c0_39 = arith.constant 0 : index
    %c0_40 = arith.constant 0 : index
    %93 = vector.load %arg11[%c0_39, %c0_40] : memref<288x256xbf16, #tpu.memory_space<vmem>>, vector<32x256xbf16>
    tpu.vector_store %arg11[%c0_39, %c0_40], %92 {strides = array<i32>} : memref<288x256xbf16, #tpu.memory_space<vmem>>, vector<32x256xbf16>,
    %94 = vector.extract_strided_slice %84 {offsets = [0, 240], sizes = [32, 16], strides = [1, 1]} : vector<32x256xf32> to vector<32x16xf32>
    %95 = vector.extract_strided_slice %84 {offsets = [0, 0], sizes = [32, 240], strides = [1, 1]} : vector<32x256xf32> to vector<32x240xf32>
    %96 = tpu.concatenate %94, %95 in 1 : vector<32x16xf32>, vector<32x240xf32> -> vector<32x256xf32>
    %c1_41 = arith.constant 1 : index
    %c0_42 = arith.constant 0 : index
    %c0_43 = arith.constant 0 : index
    %97 = vector.load %arg4[%c1_41, %c0_42, %c0_43] : memref<9x1x256xf32, #tpu.memory_space<vmem>>, vector<1x1x256xf32>
    %98 = vector.shape_cast %97 : vector<1x1x256xf32> to vector<1x256xf32>
    %99 = vector.broadcast %98 : vector<1x256xf32> to vector<32x256xf32>
    %100 = arith.mulf %96, %99 : vector<32x256xf32>
    %101 = arith.truncf %100 : vector<32x256xf32> to vector<32x256xbf16>
    %c32_44 = arith.constant 32 : index
    %c0_45 = arith.constant 0 : index
    %102 = vector.load %arg11[%c32_44, %c0_45] : memref<288x256xbf16, #tpu.memory_space<vmem>>, vector<32x256xbf16>
    tpu.vector_store %arg11[%c32_44, %c0_45], %101 {strides = array<i32>} : memref<288x256xbf16, #tpu.memory_space<vmem>>, vector<32x256xbf16>,
    %103 = vector.extract_strided_slice %84 {offsets = [0, 241], sizes = [32, 15], strides = [1, 1]} : vector<32x256xf32> to vector<32x15xf32>
    %104 = vector.extract_strided_slice %84 {offsets = [0, 0], sizes = [32, 241], strides = [1, 1]} : vector<32x256xf32> to vector<32x241xf32>
    %105 = tpu.concatenate %103, %104 in 1 : vector<32x15xf32>, vector<32x241xf32> -> vector<32x256xf32>
    %c2_46 = arith.constant 2 : index
    %c0_47 = arith.constant 0 : index
    %c0_48 = arith.constant 0 : index
    %106 = vector.load %arg4[%c2_46, %c0_47, %c0_48] : memref<9x1x256xf32, #tpu.memory_space<vmem>>, vector<1x1x256xf32>
    %107 = vector.shape_cast %106 : vector<1x1x256xf32> to vector<1x256xf32>
    %108 = vector.broadcast %107 : vector<1x256xf32> to vector<32x256xf32>
    %109 = arith.mulf %105, %108 : vector<32x256xf32>
    %110 = arith.truncf %109 : vector<32x256xf32> to vector<32x256xbf16>
    %c64_49 = arith.constant 64 : index
    %c0_50 = arith.constant 0 : index
    %111 = vector.load %arg11[%c64_49, %c0_50] : memref<288x256xbf16, #tpu.memory_space<vmem>>, vector<32x256xbf16>
    tpu.vector_store %arg11[%c64_49, %c0_50], %110 {strides = array<i32>} : memref<288x256xbf16, #tpu.memory_space<vmem>>, vector<32x256xbf16>,
    %112 = vector.extract_strided_slice %84 {offsets = [0, 255], sizes = [32, 1], strides = [1, 1]} : vector<32x256xf32> to vector<32x1xf32>
    %113 = vector.extract_strided_slice %84 {offsets = [0, 0], sizes = [32, 255], strides = [1, 1]} : vector<32x256xf32> to vector<32x255xf32>
    %114 = tpu.concatenate %112, %113 in 1 : vector<32x1xf32>, vector<32x255xf32> -> vector<32x256xf32>
    %c3_51 = arith.constant 3 : index
    %c0_52 = arith.constant 0 : index
    %c0_53 = arith.constant 0 : index
    %115 = vector.load %arg4[%c3_51, %c0_52, %c0_53] : memref<9x1x256xf32, #tpu.memory_space<vmem>>, vector<1x1x256xf32>
    %116 = vector.shape_cast %115 : vector<1x1x256xf32> to vector<1x256xf32>
    %117 = vector.broadcast %116 : vector<1x256xf32> to vector<32x256xf32>
    %118 = arith.mulf %114, %117 : vector<32x256xf32>
    %119 = arith.truncf %118 : vector<32x256xf32> to vector<32x256xbf16>
    %c96_54 = arith.constant 96 : index
    %c0_55 = arith.constant 0 : index
    %120 = vector.load %arg11[%c96_54, %c0_55] : memref<288x256xbf16, #tpu.memory_space<vmem>>, vector<32x256xbf16>
    tpu.vector_store %arg11[%c96_54, %c0_55], %119 {strides = array<i32>} : memref<288x256xbf16, #tpu.memory_space<vmem>>, vector<32x256xbf16>,
    %121 = arith.truncf %84 : vector<32x256xf32> to vector<32x256xbf16>
    %c128_56 = arith.constant 128 : index
    %c0_57 = arith.constant 0 : index
    %122 = vector.load %arg11[%c128_56, %c0_57] : memref<288x256xbf16, #tpu.memory_space<vmem>>, vector<32x256xbf16>
    tpu.vector_store %arg11[%c128_56, %c0_57], %121 {strides = array<i32>} : memref<288x256xbf16, #tpu.memory_space<vmem>>, vector<32x256xbf16>,
    %123 = vector.extract_strided_slice %84 {offsets = [0, 1], sizes = [32, 255], strides = [1, 1]} : vector<32x256xf32> to vector<32x255xf32>
    %124 = vector.extract_strided_slice %84 {offsets = [0, 0], sizes = [32, 1], strides = [1, 1]} : vector<32x256xf32> to vector<32x1xf32>
    %125 = tpu.concatenate %123, %124 in 1 : vector<32x255xf32>, vector<32x1xf32> -> vector<32x256xf32>
    %c5_58 = arith.constant 5 : index
    %c0_59 = arith.constant 0 : index
    %c0_60 = arith.constant 0 : index
    %126 = vector.load %arg4[%c5_58, %c0_59, %c0_60] : memref<9x1x256xf32, #tpu.memory_space<vmem>>, vector<1x1x256xf32>
    %127 = vector.shape_cast %126 : vector<1x1x256xf32> to vector<1x256xf32>
    %128 = vector.broadcast %127 : vector<1x256xf32> to vector<32x256xf32>
    %129 = arith.mulf %125, %128 : vector<32x256xf32>
    %130 = arith.truncf %129 : vector<32x256xf32> to vector<32x256xbf16>
    %c160_61 = arith.constant 160 : index
    %c0_62 = arith.constant 0 : index
    %131 = vector.load %arg11[%c160_61, %c0_62] : memref<288x256xbf16, #tpu.memory_space<vmem>>, vector<32x256xbf16>
    tpu.vector_store %arg11[%c160_61, %c0_62], %130 {strides = array<i32>} : memref<288x256xbf16, #tpu.memory_space<vmem>>, vector<32x256xbf16>,
    %132 = vector.extract_strided_slice %84 {offsets = [0, 15], sizes = [32, 241], strides = [1, 1]} : vector<32x256xf32> to vector<32x241xf32>
    %133 = vector.extract_strided_slice %84 {offsets = [0, 0], sizes = [32, 15], strides = [1, 1]} : vector<32x256xf32> to vector<32x15xf32>
    %134 = tpu.concatenate %132, %133 in 1 : vector<32x241xf32>, vector<32x15xf32> -> vector<32x256xf32>
    %c6_63 = arith.constant 6 : index
    %c0_64 = arith.constant 0 : index
    %c0_65 = arith.constant 0 : index
    %135 = vector.load %arg4[%c6_63, %c0_64, %c0_65] : memref<9x1x256xf32, #tpu.memory_space<vmem>>, vector<1x1x256xf32>
    %136 = vector.shape_cast %135 : vector<1x1x256xf32> to vector<1x256xf32>
    %137 = vector.broadcast %136 : vector<1x256xf32> to vector<32x256xf32>
    %138 = arith.mulf %134, %137 : vector<32x256xf32>
    %139 = arith.truncf %138 : vector<32x256xf32> to vector<32x256xbf16>
    %c192_66 = arith.constant 192 : index
    %c0_67 = arith.constant 0 : index
    %140 = vector.load %arg11[%c192_66, %c0_67] : memref<288x256xbf16, #tpu.memory_space<vmem>>, vector<32x256xbf16>
    tpu.vector_store %arg11[%c192_66, %c0_67], %139 {strides = array<i32>} : memref<288x256xbf16, #tpu.memory_space<vmem>>, vector<32x256xbf16>,
    %141 = vector.extract_strided_slice %84 {offsets = [0, 16], sizes = [32, 240], strides = [1, 1]} : vector<32x256xf32> to vector<32x240xf32>
    %142 = vector.extract_strided_slice %84 {offsets = [0, 0], sizes = [32, 16], strides = [1, 1]} : vector<32x256xf32> to vector<32x16xf32>
    %143 = tpu.concatenate %141, %142 in 1 : vector<32x240xf32>, vector<32x16xf32> -> vector<32x256xf32>
    %c7_68 = arith.constant 7 : index
    %c0_69 = arith.constant 0 : index
    %c0_70 = arith.constant 0 : index
    %144 = vector.load %arg4[%c7_68, %c0_69, %c0_70] : memref<9x1x256xf32, #tpu.memory_space<vmem>>, vector<1x1x256xf32>
    %145 = vector.shape_cast %144 : vector<1x1x256xf32> to vector<1x256xf32>
    %146 = vector.broadcast %145 : vector<1x256xf32> to vector<32x256xf32>
    %147 = arith.mulf %143, %146 : vector<32x256xf32>
    %148 = arith.truncf %147 : vector<32x256xf32> to vector<32x256xbf16>
    %c224_71 = arith.constant 224 : index
    %c0_72 = arith.constant 0 : index
    %149 = vector.load %arg11[%c224_71, %c0_72] : memref<288x256xbf16, #tpu.memory_space<vmem>>, vector<32x256xbf16>
    tpu.vector_store %arg11[%c224_71, %c0_72], %148 {strides = array<i32>} : memref<288x256xbf16, #tpu.memory_space<vmem>>, vector<32x256xbf16>,
    %150 = vector.extract_strided_slice %84 {offsets = [0, 17], sizes = [32, 239], strides = [1, 1]} : vector<32x256xf32> to vector<32x239xf32>
    %151 = vector.extract_strided_slice %84 {offsets = [0, 0], sizes = [32, 17], strides = [1, 1]} : vector<32x256xf32> to vector<32x17xf32>
    %152 = tpu.concatenate %150, %151 in 1 : vector<32x239xf32>, vector<32x17xf32> -> vector<32x256xf32>
    %c8_73 = arith.constant 8 : index
    %c0_74 = arith.constant 0 : index
    %c0_75 = arith.constant 0 : index
    %153 = vector.load %arg4[%c8_73, %c0_74, %c0_75] : memref<9x1x256xf32, #tpu.memory_space<vmem>>, vector<1x1x256xf32>
    %154 = vector.shape_cast %153 : vector<1x1x256xf32> to vector<1x256xf32>
    %155 = vector.broadcast %154 : vector<1x256xf32> to vector<32x256xf32>
    %156 = arith.mulf %152, %155 : vector<32x256xf32>
    %157 = arith.truncf %156 : vector<32x256xf32> to vector<32x256xbf16>
    %c256_76 = arith.constant 256 : index
    %c0_77 = arith.constant 0 : index
    %158 = vector.load %arg11[%c256_76, %c0_77] : memref<288x256xbf16, #tpu.memory_space<vmem>>, vector<32x256xbf16>
    tpu.vector_store %arg11[%c256_76, %c0_77], %157 {strides = array<i32>} : memref<288x256xbf16, #tpu.memory_space<vmem>>, vector<32x256xbf16>,
    %c0_78 = arith.constant 0 : index
    %c0_79 = arith.constant 0 : index
    %159 = vector.load %arg3[%c0_78, %c0_79] : memref<32x288xbf16, #tpu.memory_space<vmem>>, vector<32x288xbf16>
    %c0_80 = arith.constant 0 : index
    %c0_81 = arith.constant 0 : index
    %160 = vector.load %arg11[%c0_80, %c0_81] : memref<288x256xbf16, #tpu.memory_space<vmem>>, vector<288x256xbf16>
    %cst_82 = arith.constant dense<0.000000e+00> : vector<32x256xf32>
    %161 = tpu.matmul %159, %160, %cst_82 {dimension_numbers = #tpu.dot_dimension_numbers<[1], [0], [0], [1], [0, 0, 1, 1], [], []>} : vector<32x288xbf16>, vector<288x256xbf16>, vector<32x256xf32> -> vector<32x256xf32>
    %cst_83 = arith.constant dense<0.000000e+00> : vector<32xf32>
    %162 = vector.multi_reduction <add>, %161, %cst_83 [1] : vector<32x256xf32> to vector<32xf32>
    %163 = vector.shape_cast %162 : vector<32xf32> to vector<32x1xf32>
    %cst_84 = arith.constant 3.906250e-03 : f32
    %164 = vector.broadcast %cst_84 : f32 to vector<32x1xf32>
    %165 = arith.mulf %163, %164 : vector<32x1xf32>
    %c0_85 = arith.constant 0 : index
    %c0_86 = arith.constant 0 : index
    %166 = vector.load %arg5[%c0_85, %c0_86] : memref<32x2xf32, #tpu.memory_space<vmem>>, vector<32x2xf32>
    %167 = vector.broadcast %165 : vector<32x1xf32> to vector<32x2xf32>
    %168 = arith.mulf %166, %167 : vector<32x2xf32>
    %cst_87 = arith.constant dense<0.000000e+00> : vector<2xf32>
    %169 = vector.multi_reduction <add>, %168, %cst_87 [0] : vector<32x2xf32> to vector<2xf32>
    %170 = vector.shape_cast %169 : vector<2xf32> to vector<1x2xf32>
    %c0_88 = arith.constant 0 : index
    %c0_89 = arith.constant 0 : index
    %171 = vector.load %arg6[%c0_88, %c0_89] : memref<1x2xf32, #tpu.memory_space<vmem>>, vector<1x2xf32>
    %172 = arith.addf %170, %171 : vector<1x2xf32>
    %cst_90 = arith.constant 0.000000e+00 : f32
    %173 = vector.broadcast %cst_90 : f32 to vector<1x2xf32>
    %174 = arith.maximumf %172, %173 : vector<1x2xf32>
    %c0_91 = arith.constant 0 : index
    %c0_92 = arith.constant 0 : index
    %175 = vector.load %arg7[%c0_91, %c0_92] : memref<32x2xf32, #tpu.memory_space<vmem>>, vector<32x2xf32>
    %176 = vector.broadcast %174 : vector<1x2xf32> to vector<32x2xf32>
    %177 = arith.mulf %175, %176 : vector<32x2xf32>
    %cst_93 = arith.constant dense<0.000000e+00> : vector<32xf32>
    %178 = vector.multi_reduction <add>, %177, %cst_93 [1] : vector<32x2xf32> to vector<32xf32>
    %179 = vector.shape_cast %178 : vector<32xf32> to vector<32x1xf32>
    %c0_94 = arith.constant 0 : index
    %c0_95 = arith.constant 0 : index
    %180 = vector.load %arg8[%c0_94, %c0_95] : memref<32x1xf32, #tpu.memory_space<vmem>>, vector<32x1xf32>
    %181 = arith.addf %179, %180 : vector<32x1xf32>
    %182 = arith.negf %181 : vector<32x1xf32>
    %183 = math.exp %182 : vector<32x1xf32>
    %cst_96 = arith.constant 1.000000e+00 : f32
    %184 = vector.broadcast %cst_96 : f32 to vector<32x1xf32>
    %185 = arith.addf %184, %183 : vector<32x1xf32>
    %186 = arith.divf %184, %185 : vector<32x1xf32>
    %187 = vector.broadcast %186 : vector<32x1xf32> to vector<32x256xf32>
    %188 = arith.mulf %161, %187 : vector<32x256xf32>
    %189 = arith.addf %188, %2 : vector<32x256xf32>
    %c0_97 = arith.constant 0 : index
    %c0_98 = arith.constant 0 : index
    %c0_99 = arith.constant 0 : index
    %190 = vector.load %arg10[%c0_97, %c0_98, %c0_99] : memref<2x32x256xf32, #tpu.memory_space<vmem>>, vector<1x32x256xf32>
    %191 = vector.shape_cast %190 : vector<1x32x256xf32> to vector<32x256xf32>
    %192 = vector.shape_cast %189 : vector<32x256xf32> to vector<1x32x256xf32>
    tpu.vector_store %arg10[%c0_97, %c0_98, %c0_99], %192 {strides = array<i32>} : memref<2x32x256xf32, #tpu.memory_space<vmem>>, vector<1x32x256xf32>,
    %c1_100 = arith.constant 1 : index
    %c0_101 = arith.constant 0 : index
    %c0_102 = arith.constant 0 : index
    %193 = vector.load %arg1[%c1_100, %c0_101, %c0_102] : memref<2x32x256xf32, #tpu.memory_space<vmem>>, vector<1x32x256xf32>
    %194 = vector.shape_cast %193 : vector<1x32x256xf32> to vector<32x256xf32>
    %195 = vector.extract_strided_slice %194 {offsets = [0, 239], sizes = [32, 17], strides = [1, 1]} : vector<32x256xf32> to vector<32x17xf32>
    %196 = vector.extract_strided_slice %194 {offsets = [0, 0], sizes = [32, 239], strides = [1, 1]} : vector<32x256xf32> to vector<32x239xf32>
    %197 = tpu.concatenate %195, %196 in 1 : vector<32x17xf32>, vector<32x239xf32> -> vector<32x256xf32>
    %c0_103 = arith.constant 0 : index
    %c0_104 = arith.constant 0 : index
    %c0_105 = arith.constant 0 : index
    %198 = vector.load %arg4[%c0_103, %c0_104, %c0_105] : memref<9x1x256xf32, #tpu.memory_space<vmem>>, vector<1x1x256xf32>
    %199 = vector.shape_cast %198 : vector<1x1x256xf32> to vector<1x256xf32>
    %200 = vector.broadcast %199 : vector<1x256xf32> to vector<32x256xf32>
    %201 = arith.mulf %197, %200 : vector<32x256xf32>
    %202 = arith.truncf %201 : vector<32x256xf32> to vector<32x256xbf16>
    %c0_106 = arith.constant 0 : index
    %c0_107 = arith.constant 0 : index
    %203 = vector.load %arg11[%c0_106, %c0_107] : memref<288x256xbf16, #tpu.memory_space<vmem>>, vector<32x256xbf16>
    tpu.vector_store %arg11[%c0_106, %c0_107], %202 {strides = array<i32>} : memref<288x256xbf16, #tpu.memory_space<vmem>>, vector<32x256xbf16>,
    %204 = vector.extract_strided_slice %194 {offsets = [0, 240], sizes = [32, 16], strides = [1, 1]} : vector<32x256xf32> to vector<32x16xf32>
    %205 = vector.extract_strided_slice %194 {offsets = [0, 0], sizes = [32, 240], strides = [1, 1]} : vector<32x256xf32> to vector<32x240xf32>
    %206 = tpu.concatenate %204, %205 in 1 : vector<32x16xf32>, vector<32x240xf32> -> vector<32x256xf32>
    %c1_108 = arith.constant 1 : index
    %c0_109 = arith.constant 0 : index
    %c0_110 = arith.constant 0 : index
    %207 = vector.load %arg4[%c1_108, %c0_109, %c0_110] : memref<9x1x256xf32, #tpu.memory_space<vmem>>, vector<1x1x256xf32>
    %208 = vector.shape_cast %207 : vector<1x1x256xf32> to vector<1x256xf32>
    %209 = vector.broadcast %208 : vector<1x256xf32> to vector<32x256xf32>
    %210 = arith.mulf %206, %209 : vector<32x256xf32>
    %211 = arith.truncf %210 : vector<32x256xf32> to vector<32x256xbf16>
    %c32_111 = arith.constant 32 : index
    %c0_112 = arith.constant 0 : index
    %212 = vector.load %arg11[%c32_111, %c0_112] : memref<288x256xbf16, #tpu.memory_space<vmem>>, vector<32x256xbf16>
    tpu.vector_store %arg11[%c32_111, %c0_112], %211 {strides = array<i32>} : memref<288x256xbf16, #tpu.memory_space<vmem>>, vector<32x256xbf16>,
    %213 = vector.extract_strided_slice %194 {offsets = [0, 241], sizes = [32, 15], strides = [1, 1]} : vector<32x256xf32> to vector<32x15xf32>
    %214 = vector.extract_strided_slice %194 {offsets = [0, 0], sizes = [32, 241], strides = [1, 1]} : vector<32x256xf32> to vector<32x241xf32>
    %215 = tpu.concatenate %213, %214 in 1 : vector<32x15xf32>, vector<32x241xf32> -> vector<32x256xf32>
    %c2_113 = arith.constant 2 : index
    %c0_114 = arith.constant 0 : index
    %c0_115 = arith.constant 0 : index
    %216 = vector.load %arg4[%c2_113, %c0_114, %c0_115] : memref<9x1x256xf32, #tpu.memory_space<vmem>>, vector<1x1x256xf32>
    %217 = vector.shape_cast %216 : vector<1x1x256xf32> to vector<1x256xf32>
    %218 = vector.broadcast %217 : vector<1x256xf32> to vector<32x256xf32>
    %219 = arith.mulf %215, %218 : vector<32x256xf32>
    %220 = arith.truncf %219 : vector<32x256xf32> to vector<32x256xbf16>
    %c64_116 = arith.constant 64 : index
    %c0_117 = arith.constant 0 : index
    %221 = vector.load %arg11[%c64_116, %c0_117] : memref<288x256xbf16, #tpu.memory_space<vmem>>, vector<32x256xbf16>
    tpu.vector_store %arg11[%c64_116, %c0_117], %220 {strides = array<i32>} : memref<288x256xbf16, #tpu.memory_space<vmem>>, vector<32x256xbf16>,
    %222 = vector.extract_strided_slice %194 {offsets = [0, 255], sizes = [32, 1], strides = [1, 1]} : vector<32x256xf32> to vector<32x1xf32>
    %223 = vector.extract_strided_slice %194 {offsets = [0, 0], sizes = [32, 255], strides = [1, 1]} : vector<32x256xf32> to vector<32x255xf32>
    %224 = tpu.concatenate %222, %223 in 1 : vector<32x1xf32>, vector<32x255xf32> -> vector<32x256xf32>
    %c3_118 = arith.constant 3 : index
    %c0_119 = arith.constant 0 : index
    %c0_120 = arith.constant 0 : index
    %225 = vector.load %arg4[%c3_118, %c0_119, %c0_120] : memref<9x1x256xf32, #tpu.memory_space<vmem>>, vector<1x1x256xf32>
    %226 = vector.shape_cast %225 : vector<1x1x256xf32> to vector<1x256xf32>
    %227 = vector.broadcast %226 : vector<1x256xf32> to vector<32x256xf32>
    %228 = arith.mulf %224, %227 : vector<32x256xf32>
    %229 = arith.truncf %228 : vector<32x256xf32> to vector<32x256xbf16>
    %c96_121 = arith.constant 96 : index
    %c0_122 = arith.constant 0 : index
    %230 = vector.load %arg11[%c96_121, %c0_122] : memref<288x256xbf16, #tpu.memory_space<vmem>>, vector<32x256xbf16>
    tpu.vector_store %arg11[%c96_121, %c0_122], %229 {strides = array<i32>} : memref<288x256xbf16, #tpu.memory_space<vmem>>, vector<32x256xbf16>,
    %231 = arith.truncf %194 : vector<32x256xf32> to vector<32x256xbf16>
    %c128_123 = arith.constant 128 : index
    %c0_124 = arith.constant 0 : index
    %232 = vector.load %arg11[%c128_123, %c0_124] : memref<288x256xbf16, #tpu.memory_space<vmem>>, vector<32x256xbf16>
    tpu.vector_store %arg11[%c128_123, %c0_124], %231 {strides = array<i32>} : memref<288x256xbf16, #tpu.memory_space<vmem>>, vector<32x256xbf16>,
    %233 = vector.extract_strided_slice %194 {offsets = [0, 1], sizes = [32, 255], strides = [1, 1]} : vector<32x256xf32> to vector<32x255xf32>
    %234 = vector.extract_strided_slice %194 {offsets = [0, 0], sizes = [32, 1], strides = [1, 1]} : vector<32x256xf32> to vector<32x1xf32>
    %235 = tpu.concatenate %233, %234 in 1 : vector<32x255xf32>, vector<32x1xf32> -> vector<32x256xf32>
    %c5_125 = arith.constant 5 : index
    %c0_126 = arith.constant 0 : index
    %c0_127 = arith.constant 0 : index
    %236 = vector.load %arg4[%c5_125, %c0_126, %c0_127] : memref<9x1x256xf32, #tpu.memory_space<vmem>>, vector<1x1x256xf32>
    %237 = vector.shape_cast %236 : vector<1x1x256xf32> to vector<1x256xf32>
    %238 = vector.broadcast %237 : vector<1x256xf32> to vector<32x256xf32>
    %239 = arith.mulf %235, %238 : vector<32x256xf32>
    %240 = arith.truncf %239 : vector<32x256xf32> to vector<32x256xbf16>
    %c160_128 = arith.constant 160 : index
    %c0_129 = arith.constant 0 : index
    %241 = vector.load %arg11[%c160_128, %c0_129] : memref<288x256xbf16, #tpu.memory_space<vmem>>, vector<32x256xbf16>
    tpu.vector_store %arg11[%c160_128, %c0_129], %240 {strides = array<i32>} : memref<288x256xbf16, #tpu.memory_space<vmem>>, vector<32x256xbf16>,
    %242 = vector.extract_strided_slice %194 {offsets = [0, 15], sizes = [32, 241], strides = [1, 1]} : vector<32x256xf32> to vector<32x241xf32>
    %243 = vector.extract_strided_slice %194 {offsets = [0, 0], sizes = [32, 15], strides = [1, 1]} : vector<32x256xf32> to vector<32x15xf32>
    %244 = tpu.concatenate %242, %243 in 1 : vector<32x241xf32>, vector<32x15xf32> -> vector<32x256xf32>
    %c6_130 = arith.constant 6 : index
    %c0_131 = arith.constant 0 : index
    %c0_132 = arith.constant 0 : index
    %245 = vector.load %arg4[%c6_130, %c0_131, %c0_132] : memref<9x1x256xf32, #tpu.memory_space<vmem>>, vector<1x1x256xf32>
    %246 = vector.shape_cast %245 : vector<1x1x256xf32> to vector<1x256xf32>
    %247 = vector.broadcast %246 : vector<1x256xf32> to vector<32x256xf32>
    %248 = arith.mulf %244, %247 : vector<32x256xf32>
    %249 = arith.truncf %248 : vector<32x256xf32> to vector<32x256xbf16>
    %c192_133 = arith.constant 192 : index
    %c0_134 = arith.constant 0 : index
    %250 = vector.load %arg11[%c192_133, %c0_134] : memref<288x256xbf16, #tpu.memory_space<vmem>>, vector<32x256xbf16>
    tpu.vector_store %arg11[%c192_133, %c0_134], %249 {strides = array<i32>} : memref<288x256xbf16, #tpu.memory_space<vmem>>, vector<32x256xbf16>,
    %251 = vector.extract_strided_slice %194 {offsets = [0, 16], sizes = [32, 240], strides = [1, 1]} : vector<32x256xf32> to vector<32x240xf32>
    %252 = vector.extract_strided_slice %194 {offsets = [0, 0], sizes = [32, 16], strides = [1, 1]} : vector<32x256xf32> to vector<32x16xf32>
    %253 = tpu.concatenate %251, %252 in 1 : vector<32x240xf32>, vector<32x16xf32> -> vector<32x256xf32>
    %c7_135 = arith.constant 7 : index
    %c0_136 = arith.constant 0 : index
    %c0_137 = arith.constant 0 : index
    %254 = vector.load %arg4[%c7_135, %c0_136, %c0_137] : memref<9x1x256xf32, #tpu.memory_space<vmem>>, vector<1x1x256xf32>
    %255 = vector.shape_cast %254 : vector<1x1x256xf32> to vector<1x256xf32>
    %256 = vector.broadcast %255 : vector<1x256xf32> to vector<32x256xf32>
    %257 = arith.mulf %253, %256 : vector<32x256xf32>
    %258 = arith.truncf %257 : vector<32x256xf32> to vector<32x256xbf16>
    %c224_138 = arith.constant 224 : index
    %c0_139 = arith.constant 0 : index
    %259 = vector.load %arg11[%c224_138, %c0_139] : memref<288x256xbf16, #tpu.memory_space<vmem>>, vector<32x256xbf16>
    tpu.vector_store %arg11[%c224_138, %c0_139], %258 {strides = array<i32>} : memref<288x256xbf16, #tpu.memory_space<vmem>>, vector<32x256xbf16>,
    %260 = vector.extract_strided_slice %194 {offsets = [0, 17], sizes = [32, 239], strides = [1, 1]} : vector<32x256xf32> to vector<32x239xf32>
    %261 = vector.extract_strided_slice %194 {offsets = [0, 0], sizes = [32, 17], strides = [1, 1]} : vector<32x256xf32> to vector<32x17xf32>
    %262 = tpu.concatenate %260, %261 in 1 : vector<32x239xf32>, vector<32x17xf32> -> vector<32x256xf32>
    %c8_140 = arith.constant 8 : index
    %c0_141 = arith.constant 0 : index
    %c0_142 = arith.constant 0 : index
    %263 = vector.load %arg4[%c8_140, %c0_141, %c0_142] : memref<9x1x256xf32, #tpu.memory_space<vmem>>, vector<1x1x256xf32>
    %264 = vector.shape_cast %263 : vector<1x1x256xf32> to vector<1x256xf32>
    %265 = vector.broadcast %264 : vector<1x256xf32> to vector<32x256xf32>
    %266 = arith.mulf %262, %265 : vector<32x256xf32>
    %267 = arith.truncf %266 : vector<32x256xf32> to vector<32x256xbf16>
    %c256_143 = arith.constant 256 : index
    %c0_144 = arith.constant 0 : index
    %268 = vector.load %arg11[%c256_143, %c0_144] : memref<288x256xbf16, #tpu.memory_space<vmem>>, vector<32x256xbf16>
    tpu.vector_store %arg11[%c256_143, %c0_144], %267 {strides = array<i32>} : memref<288x256xbf16, #tpu.memory_space<vmem>>, vector<32x256xbf16>,
    %c0_145 = arith.constant 0 : index
    %c0_146 = arith.constant 0 : index
    %269 = vector.load %arg2[%c0_145, %c0_146] : memref<32x288xbf16, #tpu.memory_space<vmem>>, vector<32x288xbf16>
    %c0_147 = arith.constant 0 : index
    %c0_148 = arith.constant 0 : index
    %270 = vector.load %arg11[%c0_147, %c0_148] : memref<288x256xbf16, #tpu.memory_space<vmem>>, vector<288x256xbf16>
    %cst_149 = arith.constant dense<0.000000e+00> : vector<32x256xf32>
    %271 = tpu.matmul %269, %270, %cst_149 {dimension_numbers = #tpu.dot_dimension_numbers<[1], [0], [0], [1], [0, 0, 1, 1], [], []>} : vector<32x288xbf16>, vector<288x256xbf16>, vector<32x256xf32> -> vector<32x256xf32>
    %cst_150 = arith.constant 0.000000e+00 : f32
    %272 = vector.broadcast %cst_150 : f32 to vector<32x256xf32>
    %273 = arith.cmpf ogt, %271, %272 : vector<32x256xf32>
    %274 = vector.broadcast %0 : f32 to vector<32x256xf32>
    %275 = arith.mulf %274, %271 : vector<32x256xf32>
    %276 = arith.select %273, %271, %275 : vector<32x256xi1>, vector<32x256xf32>
    %277 = vector.extract_strided_slice %276 {offsets = [0, 239], sizes = [32, 17], strides = [1, 1]} : vector<32x256xf32> to vector<32x17xf32>
    %278 = vector.extract_strided_slice %276 {offsets = [0, 0], sizes = [32, 239], strides = [1, 1]} : vector<32x256xf32> to vector<32x239xf32>
    %279 = tpu.concatenate %277, %278 in 1 : vector<32x17xf32>, vector<32x239xf32> -> vector<32x256xf32>
    %c0_151 = arith.constant 0 : index
    %c0_152 = arith.constant 0 : index
    %c0_153 = arith.constant 0 : index
    %280 = vector.load %arg4[%c0_151, %c0_152, %c0_153] : memref<9x1x256xf32, #tpu.memory_space<vmem>>, vector<1x1x256xf32>
    %281 = vector.shape_cast %280 : vector<1x1x256xf32> to vector<1x256xf32>
    %282 = vector.broadcast %281 : vector<1x256xf32> to vector<32x256xf32>
    %283 = arith.mulf %279, %282 : vector<32x256xf32>
    %284 = arith.truncf %283 : vector<32x256xf32> to vector<32x256xbf16>
    %c0_154 = arith.constant 0 : index
    %c0_155 = arith.constant 0 : index
    %285 = vector.load %arg11[%c0_154, %c0_155] : memref<288x256xbf16, #tpu.memory_space<vmem>>, vector<32x256xbf16>
    tpu.vector_store %arg11[%c0_154, %c0_155], %284 {strides = array<i32>} : memref<288x256xbf16, #tpu.memory_space<vmem>>, vector<32x256xbf16>,
    %286 = vector.extract_strided_slice %276 {offsets = [0, 240], sizes = [32, 16], strides = [1, 1]} : vector<32x256xf32> to vector<32x16xf32>
    %287 = vector.extract_strided_slice %276 {offsets = [0, 0], sizes = [32, 240], strides = [1, 1]} : vector<32x256xf32> to vector<32x240xf32>
    %288 = tpu.concatenate %286, %287 in 1 : vector<32x16xf32>, vector<32x240xf32> -> vector<32x256xf32>
    %c1_156 = arith.constant 1 : index
    %c0_157 = arith.constant 0 : index
    %c0_158 = arith.constant 0 : index
    %289 = vector.load %arg4[%c1_156, %c0_157, %c0_158] : memref<9x1x256xf32, #tpu.memory_space<vmem>>, vector<1x1x256xf32>
    %290 = vector.shape_cast %289 : vector<1x1x256xf32> to vector<1x256xf32>
    %291 = vector.broadcast %290 : vector<1x256xf32> to vector<32x256xf32>
    %292 = arith.mulf %288, %291 : vector<32x256xf32>
    %293 = arith.truncf %292 : vector<32x256xf32> to vector<32x256xbf16>
    %c32_159 = arith.constant 32 : index
    %c0_160 = arith.constant 0 : index
    %294 = vector.load %arg11[%c32_159, %c0_160] : memref<288x256xbf16, #tpu.memory_space<vmem>>, vector<32x256xbf16>
    tpu.vector_store %arg11[%c32_159, %c0_160], %293 {strides = array<i32>} : memref<288x256xbf16, #tpu.memory_space<vmem>>, vector<32x256xbf16>,
    %295 = vector.extract_strided_slice %276 {offsets = [0, 241], sizes = [32, 15], strides = [1, 1]} : vector<32x256xf32> to vector<32x15xf32>
    %296 = vector.extract_strided_slice %276 {offsets = [0, 0], sizes = [32, 241], strides = [1, 1]} : vector<32x256xf32> to vector<32x241xf32>
    %297 = tpu.concatenate %295, %296 in 1 : vector<32x15xf32>, vector<32x241xf32> -> vector<32x256xf32>
    %c2_161 = arith.constant 2 : index
    %c0_162 = arith.constant 0 : index
    %c0_163 = arith.constant 0 : index
    %298 = vector.load %arg4[%c2_161, %c0_162, %c0_163] : memref<9x1x256xf32, #tpu.memory_space<vmem>>, vector<1x1x256xf32>
    %299 = vector.shape_cast %298 : vector<1x1x256xf32> to vector<1x256xf32>
    %300 = vector.broadcast %299 : vector<1x256xf32> to vector<32x256xf32>
    %301 = arith.mulf %297, %300 : vector<32x256xf32>
    %302 = arith.truncf %301 : vector<32x256xf32> to vector<32x256xbf16>
    %c64_164 = arith.constant 64 : index
    %c0_165 = arith.constant 0 : index
    %303 = vector.load %arg11[%c64_164, %c0_165] : memref<288x256xbf16, #tpu.memory_space<vmem>>, vector<32x256xbf16>
    tpu.vector_store %arg11[%c64_164, %c0_165], %302 {strides = array<i32>} : memref<288x256xbf16, #tpu.memory_space<vmem>>, vector<32x256xbf16>,
    %304 = vector.extract_strided_slice %276 {offsets = [0, 255], sizes = [32, 1], strides = [1, 1]} : vector<32x256xf32> to vector<32x1xf32>
    %305 = vector.extract_strided_slice %276 {offsets = [0, 0], sizes = [32, 255], strides = [1, 1]} : vector<32x256xf32> to vector<32x255xf32>
    %306 = tpu.concatenate %304, %305 in 1 : vector<32x1xf32>, vector<32x255xf32> -> vector<32x256xf32>
    %c3_166 = arith.constant 3 : index
    %c0_167 = arith.constant 0 : index
    %c0_168 = arith.constant 0 : index
    %307 = vector.load %arg4[%c3_166, %c0_167, %c0_168] : memref<9x1x256xf32, #tpu.memory_space<vmem>>, vector<1x1x256xf32>
    %308 = vector.shape_cast %307 : vector<1x1x256xf32> to vector<1x256xf32>
    %309 = vector.broadcast %308 : vector<1x256xf32> to vector<32x256xf32>
    %310 = arith.mulf %306, %309 : vector<32x256xf32>
    %311 = arith.truncf %310 : vector<32x256xf32> to vector<32x256xbf16>
    %c96_169 = arith.constant 96 : index
    %c0_170 = arith.constant 0 : index
    %312 = vector.load %arg11[%c96_169, %c0_170] : memref<288x256xbf16, #tpu.memory_space<vmem>>, vector<32x256xbf16>
    tpu.vector_store %arg11[%c96_169, %c0_170], %311 {strides = array<i32>} : memref<288x256xbf16, #tpu.memory_space<vmem>>, vector<32x256xbf16>,
    %313 = arith.truncf %276 : vector<32x256xf32> to vector<32x256xbf16>
    %c128_171 = arith.constant 128 : index
    %c0_172 = arith.constant 0 : index
    %314 = vector.load %arg11[%c128_171, %c0_172] : memref<288x256xbf16, #tpu.memory_space<vmem>>, vector<32x256xbf16>
    tpu.vector_store %arg11[%c128_171, %c0_172], %313 {strides = array<i32>} : memref<288x256xbf16, #tpu.memory_space<vmem>>, vector<32x256xbf16>,
    %315 = vector.extract_strided_slice %276 {offsets = [0, 1], sizes = [32, 255], strides = [1, 1]} : vector<32x256xf32> to vector<32x255xf32>
    %316 = vector.extract_strided_slice %276 {offsets = [0, 0], sizes = [32, 1], strides = [1, 1]} : vector<32x256xf32> to vector<32x1xf32>
    %317 = tpu.concatenate %315, %316 in 1 : vector<32x255xf32>, vector<32x1xf32> -> vector<32x256xf32>
    %c5_173 = arith.constant 5 : index
    %c0_174 = arith.constant 0 : index
    %c0_175 = arith.constant 0 : index
    %318 = vector.load %arg4[%c5_173, %c0_174, %c0_175] : memref<9x1x256xf32, #tpu.memory_space<vmem>>, vector<1x1x256xf32>
    %319 = vector.shape_cast %318 : vector<1x1x256xf32> to vector<1x256xf32>
    %320 = vector.broadcast %319 : vector<1x256xf32> to vector<32x256xf32>
    %321 = arith.mulf %317, %320 : vector<32x256xf32>
    %322 = arith.truncf %321 : vector<32x256xf32> to vector<32x256xbf16>
    %c160_176 = arith.constant 160 : index
    %c0_177 = arith.constant 0 : index
    %323 = vector.load %arg11[%c160_176, %c0_177] : memref<288x256xbf16, #tpu.memory_space<vmem>>, vector<32x256xbf16>
    tpu.vector_store %arg11[%c160_176, %c0_177], %322 {strides = array<i32>} : memref<288x256xbf16, #tpu.memory_space<vmem>>, vector<32x256xbf16>,
    %324 = vector.extract_strided_slice %276 {offsets = [0, 15], sizes = [32, 241], strides = [1, 1]} : vector<32x256xf32> to vector<32x241xf32>
    %325 = vector.extract_strided_slice %276 {offsets = [0, 0], sizes = [32, 15], strides = [1, 1]} : vector<32x256xf32> to vector<32x15xf32>
    %326 = tpu.concatenate %324, %325 in 1 : vector<32x241xf32>, vector<32x15xf32> -> vector<32x256xf32>
    %c6_178 = arith.constant 6 : index
    %c0_179 = arith.constant 0 : index
    %c0_180 = arith.constant 0 : index
    %327 = vector.load %arg4[%c6_178, %c0_179, %c0_180] : memref<9x1x256xf32, #tpu.memory_space<vmem>>, vector<1x1x256xf32>
    %328 = vector.shape_cast %327 : vector<1x1x256xf32> to vector<1x256xf32>
    %329 = vector.broadcast %328 : vector<1x256xf32> to vector<32x256xf32>
    %330 = arith.mulf %326, %329 : vector<32x256xf32>
    %331 = arith.truncf %330 : vector<32x256xf32> to vector<32x256xbf16>
    %c192_181 = arith.constant 192 : index
    %c0_182 = arith.constant 0 : index
    %332 = vector.load %arg11[%c192_181, %c0_182] : memref<288x256xbf16, #tpu.memory_space<vmem>>, vector<32x256xbf16>
    tpu.vector_store %arg11[%c192_181, %c0_182], %331 {strides = array<i32>} : memref<288x256xbf16, #tpu.memory_space<vmem>>, vector<32x256xbf16>,
    %333 = vector.extract_strided_slice %276 {offsets = [0, 16], sizes = [32, 240], strides = [1, 1]} : vector<32x256xf32> to vector<32x240xf32>
    %334 = vector.extract_strided_slice %276 {offsets = [0, 0], sizes = [32, 16], strides = [1, 1]} : vector<32x256xf32> to vector<32x16xf32>
    %335 = tpu.concatenate %333, %334 in 1 : vector<32x240xf32>, vector<32x16xf32> -> vector<32x256xf32>
    %c7_183 = arith.constant 7 : index
    %c0_184 = arith.constant 0 : index
    %c0_185 = arith.constant 0 : index
    %336 = vector.load %arg4[%c7_183, %c0_184, %c0_185] : memref<9x1x256xf32, #tpu.memory_space<vmem>>, vector<1x1x256xf32>
    %337 = vector.shape_cast %336 : vector<1x1x256xf32> to vector<1x256xf32>
    %338 = vector.broadcast %337 : vector<1x256xf32> to vector<32x256xf32>
    %339 = arith.mulf %335, %338 : vector<32x256xf32>
    %340 = arith.truncf %339 : vector<32x256xf32> to vector<32x256xbf16>
    %c224_186 = arith.constant 224 : index
    %c0_187 = arith.constant 0 : index
    %341 = vector.load %arg11[%c224_186, %c0_187] : memref<288x256xbf16, #tpu.memory_space<vmem>>, vector<32x256xbf16>
    tpu.vector_store %arg11[%c224_186, %c0_187], %340 {strides = array<i32>} : memref<288x256xbf16, #tpu.memory_space<vmem>>, vector<32x256xbf16>,
    %342 = vector.extract_strided_slice %276 {offsets = [0, 17], sizes = [32, 239], strides = [1, 1]} : vector<32x256xf32> to vector<32x239xf32>
    %343 = vector.extract_strided_slice %276 {offsets = [0, 0], sizes = [32, 17], strides = [1, 1]} : vector<32x256xf32> to vector<32x17xf32>
    %344 = tpu.concatenate %342, %343 in 1 : vector<32x239xf32>, vector<32x17xf32> -> vector<32x256xf32>
    %c8_188 = arith.constant 8 : index
    %c0_189 = arith.constant 0 : index
    %c0_190 = arith.constant 0 : index
    %345 = vector.load %arg4[%c8_188, %c0_189, %c0_190] : memref<9x1x256xf32, #tpu.memory_space<vmem>>, vector<1x1x256xf32>
    %346 = vector.shape_cast %345 : vector<1x1x256xf32> to vector<1x256xf32>
    %347 = vector.broadcast %346 : vector<1x256xf32> to vector<32x256xf32>
    %348 = arith.mulf %344, %347 : vector<32x256xf32>
    %349 = arith.truncf %348 : vector<32x256xf32> to vector<32x256xbf16>
    %c256_191 = arith.constant 256 : index
    %c0_192 = arith.constant 0 : index
    %350 = vector.load %arg11[%c256_191, %c0_192] : memref<288x256xbf16, #tpu.memory_space<vmem>>, vector<32x256xbf16>
    tpu.vector_store %arg11[%c256_191, %c0_192], %349 {strides = array<i32>} : memref<288x256xbf16, #tpu.memory_space<vmem>>, vector<32x256xbf16>,
    %c0_193 = arith.constant 0 : index
    %c0_194 = arith.constant 0 : index
    %351 = vector.load %arg3[%c0_193, %c0_194] : memref<32x288xbf16, #tpu.memory_space<vmem>>, vector<32x288xbf16>
    %c0_195 = arith.constant 0 : index
    %c0_196 = arith.constant 0 : index
    %352 = vector.load %arg11[%c0_195, %c0_196] : memref<288x256xbf16, #tpu.memory_space<vmem>>, vector<288x256xbf16>
    %cst_197 = arith.constant dense<0.000000e+00> : vector<32x256xf32>
    %353 = tpu.matmul %351, %352, %cst_197 {dimension_numbers = #tpu.dot_dimension_numbers<[1], [0], [0], [1], [0, 0, 1, 1], [], []>} : vector<32x288xbf16>, vector<288x256xbf16>, vector<32x256xf32> -> vector<32x256xf32>
    %cst_198 = arith.constant dense<0.000000e+00> : vector<32xf32>
    %354 = vector.multi_reduction <add>, %353, %cst_198 [1] : vector<32x256xf32> to vector<32xf32>
    %355 = vector.shape_cast %354 : vector<32xf32> to vector<32x1xf32>
    %cst_199 = arith.constant 3.906250e-03 : f32
    %356 = vector.broadcast %cst_199 : f32 to vector<32x1xf32>
    %357 = arith.mulf %355, %356 : vector<32x1xf32>
    %c0_200 = arith.constant 0 : index
    %c0_201 = arith.constant 0 : index
    %358 = vector.load %arg5[%c0_200, %c0_201] : memref<32x2xf32, #tpu.memory_space<vmem>>, vector<32x2xf32>
    %359 = vector.broadcast %357 : vector<32x1xf32> to vector<32x2xf32>
    %360 = arith.mulf %358, %359 : vector<32x2xf32>
    %cst_202 = arith.constant dense<0.000000e+00> : vector<2xf32>
    %361 = vector.multi_reduction <add>, %360, %cst_202 [0] : vector<32x2xf32> to vector<2xf32>
    %362 = vector.shape_cast %361 : vector<2xf32> to vector<1x2xf32>
    %c0_203 = arith.constant 0 : index
    %c0_204 = arith.constant 0 : index
    %363 = vector.load %arg6[%c0_203, %c0_204] : memref<1x2xf32, #tpu.memory_space<vmem>>, vector<1x2xf32>
    %364 = arith.addf %362, %363 : vector<1x2xf32>
    %cst_205 = arith.constant 0.000000e+00 : f32
    %365 = vector.broadcast %cst_205 : f32 to vector<1x2xf32>
    %366 = arith.maximumf %364, %365 : vector<1x2xf32>
    %c0_206 = arith.constant 0 : index
    %c0_207 = arith.constant 0 : index
    %367 = vector.load %arg7[%c0_206, %c0_207] : memref<32x2xf32, #tpu.memory_space<vmem>>, vector<32x2xf32>
    %368 = vector.broadcast %366 : vector<1x2xf32> to vector<32x2xf32>
    %369 = arith.mulf %367, %368 : vector<32x2xf32>
    %cst_208 = arith.constant dense<0.000000e+00> : vector<32xf32>
    %370 = vector.multi_reduction <add>, %369, %cst_208 [1] : vector<32x2xf32> to vector<32xf32>
    %371 = vector.shape_cast %370 : vector<32xf32> to vector<32x1xf32>
    %c0_209 = arith.constant 0 : index
    %c0_210 = arith.constant 0 : index
    %372 = vector.load %arg8[%c0_209, %c0_210] : memref<32x1xf32, #tpu.memory_space<vmem>>, vector<32x1xf32>
    %373 = arith.addf %371, %372 : vector<32x1xf32>
    %374 = arith.negf %373 : vector<32x1xf32>
    %375 = math.exp %374 : vector<32x1xf32>
    %cst_211 = arith.constant 1.000000e+00 : f32
    %376 = vector.broadcast %cst_211 : f32 to vector<32x1xf32>
    %377 = arith.addf %376, %375 : vector<32x1xf32>
    %378 = arith.divf %376, %377 : vector<32x1xf32>
    %379 = vector.broadcast %378 : vector<32x1xf32> to vector<32x256xf32>
    %380 = arith.mulf %353, %379 : vector<32x256xf32>
    %381 = arith.addf %380, %194 : vector<32x256xf32>
    %c1_212 = arith.constant 1 : index
    %c0_213 = arith.constant 0 : index
    %c0_214 = arith.constant 0 : index
    %382 = vector.load %arg10[%c1_212, %c0_213, %c0_214] : memref<2x32x256xf32, #tpu.memory_space<vmem>>, vector<1x32x256xf32>
    %383 = vector.shape_cast %382 : vector<1x32x256xf32> to vector<32x256xf32>
    %384 = vector.shape_cast %381 : vector<32x256xf32> to vector<1x32x256xf32>
    tpu.vector_store %arg10[%c1_212, %c0_213, %c0_214], %384 {strides = array<i32>} : memref<2x32x256xf32, #tpu.memory_space<vmem>>, vector<1x32x256xf32>,
    return
  }
  func.func @transform_0(%arg0: i32) -> (i32, i32, i32) {
    %c0_i32 = arith.constant 0 : i32
    %c0_i32_0 = arith.constant 0 : i32
    %c0_i32_1 = arith.constant 0 : i32
    return %arg0, %c0_i32, %c0_i32_0 : i32, i32, i32
  }
  func.func @transform_1(%arg0: i32) -> (i32, i32) {
    %c0_i32 = arith.constant 0 : i32
    %c0_i32_0 = arith.constant 0 : i32
    %c0_i32_1 = arith.constant 0 : i32
    return %c0_i32, %c0_i32_0 : i32, i32
  }
  func.func @transform_2(%arg0: i32) -> (i32, i32) {
    %c0_i32 = arith.constant 0 : i32
    %c0_i32_0 = arith.constant 0 : i32
    %c0_i32_1 = arith.constant 0 : i32
    return %c0_i32, %c0_i32_0 : i32, i32
  }
  func.func @transform_3(%arg0: i32) -> (i32, i32, i32) {
    %c0_i32 = arith.constant 0 : i32
    %c0_i32_0 = arith.constant 0 : i32
    %c0_i32_1 = arith.constant 0 : i32
    %c0_i32_2 = arith.constant 0 : i32
    return %c0_i32, %c0_i32_0, %c0_i32_1 : i32, i32, i32
  }
  func.func @transform_4(%arg0: i32) -> (i32, i32) {
    %c0_i32 = arith.constant 0 : i32
    %c0_i32_0 = arith.constant 0 : i32
    %c0_i32_1 = arith.constant 0 : i32
    return %c0_i32, %c0_i32_0 : i32, i32
  }
  func.func @transform_5(%arg0: i32) -> (i32, i32) {
    %c0_i32 = arith.constant 0 : i32
    %c0_i32_0 = arith.constant 0 : i32
    %c0_i32_1 = arith.constant 0 : i32
    return %c0_i32, %c0_i32_0 : i32, i32
  }
  func.func @transform_6(%arg0: i32) -> (i32, i32) {
    %c0_i32 = arith.constant 0 : i32
    %c0_i32_0 = arith.constant 0 : i32
    %c0_i32_1 = arith.constant 0 : i32
    return %c0_i32, %c0_i32_0 : i32, i32
  }
  func.func @transform_7(%arg0: i32) -> (i32, i32) {
    %c0_i32 = arith.constant 0 : i32
    %c0_i32_0 = arith.constant 0 : i32
    %c0_i32_1 = arith.constant 0 : i32
    return %c0_i32, %c0_i32_0 : i32, i32
  }
  func.func @transform_8(%arg0: i32) -> (i32, i32) {
    %c0_i32 = arith.constant 0 : i32
    %c0_i32_0 = arith.constant 0 : i32
    %c0_i32_1 = arith.constant 0 : i32
    return %c0_i32, %c0_i32_0 : i32, i32
  }
  func.func @transform_9(%arg0: i32) -> (i32, i32, i32) {
    %c0_i32 = arith.constant 0 : i32
    %c0_i32_0 = arith.constant 0 : i32
    %c0_i32_1 = arith.constant 0 : i32
    return %arg0, %c0_i32, %c0_i32_0 : i32, i32, i32
  }
}

</mosaic_0001>

<bundles_post_ra>
// kernel: tpu_custom_call.1
= control target key start
LH: loop header
LB: loop body
LE: loop exit
PB: predicated region body
PF: predicated region fallthrough
CT: control target
= control target key end

     0   :  { %6 = vsyncpa [#allocation3], 0  ;;  %s128_s0 = inlined_call_operand.hbm [shape: f32[8,128], index: 0, kind: input, shape index: {}]   ;;  %s129_s1 = inlined_call_operand.hbm [shape: f32[8,128], index: 1, kind: output, shape index: {}]  }
   0x1   :  { %7 = vsyncpa [#allocation4], 0  ;;  %s91_s6 = smov [#allocation2]   ;;  %s43_s10 = scalar_lea.hbm %s128_s0, 128 }
   0x2   :  { %s14_s7 = sshll.u32 %s91_s6, 4  ;;  %p44_p0 = scmp.ne.s32.totalorder %s128_s0, %s43_s10  ;;  %s15_s7 = int_to_ptr.vmem [resolvable:$true] %s14_s7 }
   0x3   :  { %p47_p1 = scmp.lt.u32.totalorder %s43_s10, %s128_s0 }
   0x5   :  { %p49_p2 = pnand %p47_p1, %p44_p0 }
   0x7   :  { %52 = shalt.err (!%p49_p2)
}
   0x8   :  { %s53_s15 = scalar_lea.vmem %s15_s7, 128  ;;  %p58_p4 = scmp.lt.s32.totalorder %s15_s7, %s15_s7 }
   0x9   :  { %p54_p3 = scmp.ne.s32.totalorder %s15_s7, %s53_s15  ;;  %p59_p5 = scmp.lt.s32.totalorder %s53_s15, %s53_s15 }
   0xb   :  { %p60_p6 = por %p59_p5, %p58_p4 }
   0xd   :  { %p61_p7 = pnand %p60_p6, %p54_p3 }
   0xf   :  { %64 = shalt.err (!%p61_p7)
}
  0x10   :  { %17 = dma.hbm_to_vmem [thread:$0]  %s128_s0, 128, %s15_s7, [#allocation3]  }
  0x11   :  { %87 = dma.done.wait [#allocation3], 128  }
  0x12   :  { %88 = vsyncadd [#allocation3], 4294967168  ;;  %v21_v0 = vld [vmem:[#allocation2] sm:$0xff]  ;;  %s92_s18 = smov 1   ;;  %s93_s19 = smov [#allocation5]  }
  0x13   :  { %22 = vrot.lane.b32.xlu0 %v21_v0, %s92_s18  ;;  %s31_s20 = sshll.u32 %s93_s19, 4  ;;  %s32_s20 = int_to_ptr.vmem [resolvable:$true] %s31_s20 }
  0x14   :  { %s65_s21 = scalar_lea.vmem %s32_s20, 128  ;;  %p70_p9 = scmp.lt.s32.totalorder %s32_s20, %s32_s20 }
  0x15   :  { %p66_p8 = scmp.ne.s32.totalorder %s32_s20, %s65_s21  ;;  %p71_p10 = scmp.lt.s32.totalorder %s65_s21, %s65_s21 }
  0x17   :  { %p72_p11 = por %p71_p10, %p70_p9 }
  0x19   :  { %p73_p12 = pnand %p72_p11, %p66_p8 }
  0x85   :  { %v23_v1 = vpop.permute.xlu0 %22 }
  0x86   :  { %24 = vst [vmem:[#allocation5] sm:$0xff] %v23_v1 }
  0x87   :  { %76 = shalt.err (!%p73_p12)
}
  0x88   :  { %s77_s0 = scalar_lea.hbm %s129_s1, 128 }
  0x89   :  { %p78_p13 = scmp.ne.s32.totalorder %s129_s1, %s77_s0  ;;  %p81_p0 = scmp.lt.u32.totalorder %s77_s0, %s129_s1 }
  0x8b   :  { %p83_p1 = pnand %p81_p0, %p78_p13 }
  0x8d   :  { %86 = shalt.err (!%p83_p1)
}
  0x8e   :  { %34 = dma.vmem_to_hbm [thread:$0]  %s32_s20, 128, %s129_s1, [#allocation4]  }
  0x8f   :  { %89 = dma.done.wait [#allocation4], 128  }
  0x90   :  { %90 = vsyncadd [#allocation4], 4294967168 }
  0x91   :  { %38 = vsyncpa [#allocation3], 1 }
  0x92   :  { %39 = vsyncpa [#allocation4], 1 }

// kernel: carbh_forward.1
= control target key start
LH: loop header
LB: loop body
LE: loop exit
PB: predicated region body
PF: predicated region fallthrough
CT: control target
= control target key end

     0   :  { %s3910_s11 = smov 0   ;;  %s5594_s0 = inlined_call_operand.vmem [shape: f32[8,32,256], index: 0, kind: input, shape index: {}]   ;;  %s5595_s1 = inlined_call_operand.vmem [shape: bf16[32,288], index: 1, kind: input, shape index: {}]   ;;  %s5596_s2 = inlined_call_operand.vmem [shape: bf16[32,288], index: 2, kind: input, shape index: {}]   ;;  %s5597_s3 = inlined_call_operand.vmem [shape: f32[9,1,256], index: 3, kind: input, shape index: {}]   ;;  %s5598_s4 = inlined_call_operand.vmem [shape: f32[32,2], index: 4, kind: input, shape index: {}]   ;;  %s5599_s5 = inlined_call_operand.vmem [shape: f32[1,2], index: 5, kind: input, shape index: {}]   ;;  %s5600_s6 = inlined_call_operand.vmem [shape: f32[32,2], index: 6, kind: input, shape index: {}]   ;;  %s5601_s7 = inlined_call_operand.vmem [shape: f32[32,1], index: 7, kind: input, shape index: {}]   ;;  %s5602_s8 = inlined_call_operand.<no memory space> [shape: f32[1,1], index: 8, kind: input, shape index: {}]   ;;  %s5603_s9 = inlined_call_operand.vmem [shape: f32[8,32,256], index: 9, kind: output, shape index: {}]  }
   0x1   :  { %14 = sst [smem:[#allocation3]] %s5602_s8 }
   0x2 LB: > { %s3622_s12 = sadd.s32 4294967295, %s3846_s11   ;;  %p3626_p0 = scmp.ge.s32.totalorder %s3846_s11, 1  ;;  %s3846_s11 = sphi %s3910_s11, %s20_s11  }
   0x3   : > { %p290_p1 = scmp.lt.s32.totalorder %s3846_s11, 5 }
   0x5   : > { %p291_p2 = pnand %p3626_p0, %p290_p1 }
   0x7   : > { %294 = sbr.rel (%p291_p2) target bundleno = 1575 (0x627), region = 56 }
   0xe   : > { %s3627_s13 = sshll.u32 %s3622_s12, 1  ;;  %s3848_s17 = smov 17   ;;  %v4059_v8 = vld [vmem:[%s5595_s1 + $0x4] ss:$12 sps:$4 sm:$0xff]   ;;  %v399_v9 = vlaneseq  ;;  %v397_v12 = vld [vmem:[%s5597_s3] sm:$0x3] }
   0xf   : > { %p329_p3 = scmp.lt.s32.totalorder %s3627_s13, 7  ;;  %s3849_s18 = smov 16   ;;  %1008 = vmatprep.mubr.bf16.mxu0 %v4059_v8  ;;  %vm380_vm0 = vcmask 138240   ;;  %v5604_v28 = vmov 0   ;;  %v3633_v46 = vld [vmem:[%s5597_s3 + $0x2] sm:$0x3] }
  0x10   : > { %s3850_s19 = smov 15   ;;  %s3851_s20 = smov 1   ;;  %v400_v10 = vshrl.u32 %v399_v9, 7  ;;  %3771 = vset.pattern.permute.xlu0 %v5604_v28  ;;  %3770 = vset.pattern.permute.xlu1 %v5604_v28  ;;  %vm445_vm1 = vcmask 130048   ;;  %vm511_vm2 = vcmask 121856   ;;  %vm577_vm3 = vcmask 7168  }
  0x11   : > { %s5664_s13 = smov (!%p329_p3, %s3627_s13), 7  ;;  %s3852_s21 = smov 127   ;;  %vm647_vm4 = vcmask 1039360   ;;  %vm713_vm5 = vcmask 924672   ;;  %vm779_vm6 = vcmask 916480   ;;  %vm845_vm7 = vcmask 908288  }
  0x12   : > { %s3719_s8 = sshll.u32 %s5664_s13, 6  ;;  %s3853_s22 = smov 113   ;;  %v4070_v11 = vsub.s32 1, %v400_v10  ;;  %v4079_v13 = vsub.s32 0, %v400_v10  ;;  %vm969_vm8 = vcmask 261120  }
  0x13   : > { %s3926_s16 = scalar_lea.vmem %s5594_s0, %s3719_s8  ;;  %s3854_s23 = smov 112  }
  0x14   : > { %v3929_v0 = vld [vmem:[%s3926_s16 + $0x8] sm:$0xff]  ;;  %v3932_v1 = vld [vmem:[%s3926_s16] sm:$0xff]  ;;  %v3939_v2 = vld [vmem:[%s3926_s16 + $0x18] sm:$0xff]  ;;  %s3855_s26 = smov 111   ;;  %v406_v16 = vrot.slane %v397_v12, %v4070_v11  ;;  %v402_v18 = vrot.slane %v397_v12, %v4079_v13  ;;  %v468_v52 = vrot.slane %v3633_v46, %v4079_v13  ;;  %v472_v53 = vrot.slane %v3633_v46, %v4070_v11  ;;  %s343_s14 = sld [smem:[#allocation3]] }
  0x15   : > { %356 = vrot.lane.b32.xlu0 %v3929_v0, %s3848_s17  ;;  %372 = vrot.lane.b32.xlu1 %v3932_v1, %s3848_s17  ;;  %v3942_v3 = vld [vmem:[%s3926_s16 + $0x10] sm:$0xff]  ;;  %v3949_v4 = vld [vmem:[%s3926_s16 + $0x28] sm:$0xff] }
  0x16   : > { %v3952_v5 = vld [vmem:[%s3926_s16 + $0x38] sm:$0xff]  ;;  %v3959_v6 = vld [vmem:[%s3926_s16 + $0x20] sm:$0xff]  ;;  %v3962_v7 = vld [vmem:[%s3926_s16 + $0x30] sm:$0xff] }
  0x17   : > { %v4102_v33 = vld [vmem:[%s3926_s16 + $0x48] sm:$0xff]  ;;  %v4105_v36 = vld [vmem:[%s3926_s16 + $0x58] sm:$0xff]  ;;  %v4116_v45 = vld [vmem:[%s3926_s16 + $0x40] sm:$0xff] }
  0x18   : > { %v4122_v49 = vld [vmem:[%s3926_s16 + $0x50] sm:$0xff]  ;;  %v4131_v54 = vld [vmem:[%s3926_s16 + $0x68] sm:$0xff]  ;;  %v4134_v57 = vld [vmem:[%s3926_s16 + $0x78] sm:$0xff] }
  0x19   : > { %358 = vrot.lane.b32.xlu0 %v3939_v2, %s3848_s17  ;;  %374 = vrot.lane.b32.xlu1 %v3942_v3, %s3848_s17  ;;  %v4145_v12 = vld [vmem:[%s3926_s16 + $0x60] sm:$0xff] }
  0x1d   : > { %360 = vrot.lane.b32.xlu0 %v3949_v4, %s3848_s17  ;;  %362 = vrot.lane.b32.xlu1 %v3952_v5, %s3848_s17 }
  0x21   : > { %376 = vrot.lane.b32.xlu0 %v3959_v6, %s3848_s17  ;;  %378 = vrot.lane.b32.xlu1 %v3962_v7, %s3848_s17 }
  0x25   : > { %425 = vrot.lane.b32.xlu0 %v3929_v0, %s3849_s18  ;;  %427 = vrot.lane.b32.xlu1 %v3939_v2, %s3849_s18 }
  0x29   : > { %437 = vrot.lane.b32.xlu0 %v3932_v1, %s3849_s18  ;;  %439 = vrot.lane.b32.xlu1 %v3942_v3, %s3849_s18 }
  0x2d   : > { %429 = vrot.lane.b32.xlu0 %v3949_v4, %s3849_s18  ;;  %431 = vrot.lane.b32.xlu1 %v3952_v5, %s3849_s18 }
  0x31   : > { %441 = vrot.lane.b32.xlu0 %v3959_v6, %s3849_s18  ;;  %443 = vrot.lane.b32.xlu1 %v3962_v7, %s3849_s18 }
  0x35   : > { %491 = vrot.lane.b32.xlu0 %v3929_v0, %s3850_s19  ;;  %493 = vrot.lane.b32.xlu1 %v3939_v2, %s3850_s19 }
  0x39   : > { %503 = vrot.lane.b32.xlu0 %v3932_v1, %s3850_s19  ;;  %505 = vrot.lane.b32.xlu1 %v3942_v3, %s3850_s19 }
  0x3d   : > { %495 = vrot.lane.b32.xlu0 %v3949_v4, %s3850_s19  ;;  %497 = vrot.lane.b32.xlu1 %v3952_v5, %s3850_s19 }
  0x41   : > { %507 = vrot.lane.b32.xlu0 %v3959_v6, %s3850_s19  ;;  %509 = vrot.lane.b32.xlu1 %v3962_v7, %s3850_s19 }
  0x45   : > { %557 = vrot.lane.b32.xlu0 %v3929_v0, %s3851_s20  ;;  %559 = vrot.lane.b32.xlu1 %v3939_v2, %s3851_s20 }
  0x49   : > { %569 = vrot.lane.b32.xlu0 %v3932_v1, %s3851_s20  ;;  %571 = vrot.lane.b32.xlu1 %v3942_v3, %s3851_s20 }
  0x4d   : > { %561 = vrot.lane.b32.xlu0 %v3949_v4, %s3851_s20  ;;  %563 = vrot.lane.b32.xlu1 %v3952_v5, %s3851_s20 }
  0x51   : > { %573 = vrot.lane.b32.xlu0 %v3959_v6, %s3851_s20  ;;  %575 = vrot.lane.b32.xlu1 %v3962_v7, %s3851_s20 }
  0x55   : > { %631 = vrot.lane.b32.xlu0 %v3932_v1, %s3852_s21  ;;  %633 = vrot.lane.b32.xlu1 %v3929_v0, %s3852_s21 }
  0x59   : > { %635 = vrot.lane.b32.xlu0 %v3942_v3, %s3852_s21  ;;  %637 = vrot.lane.b32.xlu1 %v3939_v2, %s3852_s21 }
  0x5d   : > { %639 = vrot.lane.b32.xlu0 %v3959_v6, %s3852_s21  ;;  %641 = vrot.lane.b32.xlu1 %v3949_v4, %s3852_s21 }
  0x61   : > { %643 = vrot.lane.b32.xlu0 %v3962_v7, %s3852_s21  ;;  %645 = vrot.lane.b32.xlu1 %v3952_v5, %s3852_s21 }
  0x65   : > { %697 = vrot.lane.b32.xlu0 %v3932_v1, %s3853_s22  ;;  %699 = vrot.lane.b32.xlu1 %v3929_v0, %s3853_s22 }
  0x69   : > { %701 = vrot.lane.b32.xlu0 %v3942_v3, %s3853_s22  ;;  %703 = vrot.lane.b32.xlu1 %v3939_v2, %s3853_s22 }
  0x6d   : > { %705 = vrot.lane.b32.xlu0 %v3959_v6, %s3853_s22  ;;  %707 = vrot.lane.b32.xlu1 %v3949_v4, %s3853_s22 }
  0x71   : > { %709 = vrot.lane.b32.xlu0 %v3962_v7, %s3853_s22  ;;  %711 = vrot.lane.b32.xlu1 %v3952_v5, %s3853_s22 }
  0x75   : > { %763 = vrot.lane.b32.xlu0 %v3932_v1, %s3854_s23  ;;  %765 = vrot.lane.b32.xlu1 %v3929_v0, %s3854_s23 }
  0x79   : > { %767 = vrot.lane.b32.xlu0 %v3942_v3, %s3854_s23  ;;  %769 = vrot.lane.b32.xlu1 %v3939_v2, %s3854_s23 }
  0x7d   : > { %771 = vrot.lane.b32.xlu0 %v3959_v6, %s3854_s23  ;;  %773 = vrot.lane.b32.xlu1 %v3949_v4, %s3854_s23 }
  0x81   : > { %775 = vrot.lane.b32.xlu0 %v3962_v7, %s3854_s23  ;;  %777 = vrot.lane.b32.xlu1 %v3952_v5, %s3854_s23 }
  0x85   : > { %829 = vrot.lane.b32.xlu0 %v3932_v1, %s3855_s26  ;;  %831 = vrot.lane.b32.xlu1 %v3929_v0, %s3855_s26 }
  0x87   : > { %v357_v14 = vpop.permute.xlu0 %356  ;;  %v373_v15 = vpop.permute.xlu1 %372 }
  0x88   : > { %v381_v17 = vsel %vm380_vm0, %v373_v15, %v357_v14  ;;  %v393_v19 = vsel %vm380_vm0, %v357_v14, %v373_v15 }
  0x89   : > { %833 = vrot.lane.b32.xlu0 %v3942_v3, %s3855_s26  ;;  %835 = vrot.lane.b32.xlu1 %v3939_v2, %s3855_s26  ;;  %v410_v24 = vmul.f32 %v406_v16, %v381_v17  ;;  %v409_v26 = vmul.f32 %v402_v18, %v393_v19 }
  0x8b   : > { %v359_v20 = vpop.permute.xlu0 %358  ;;  %v375_v21 = vpop.permute.xlu1 %374 }
  0x8c   : > { %v394_v22 = vsel %vm380_vm0, %v359_v20, %v375_v21  ;;  %v382_v23 = vsel %vm380_vm0, %v375_v21, %v359_v20 }
  0x8d   : > { %837 = vrot.lane.b32.xlu0 %v3959_v6, %s3855_s26  ;;  %839 = vrot.lane.b32.xlu1 %v3949_v4, %s3855_s26  ;;  %v412_v25 = vmul.f32 %v406_v16, %v382_v23  ;;  %v411_v27 = vmul.f32 %v402_v18, %v394_v22 }
  0x8f   : > { %v361_v29 = vpop.permute.xlu0 %360  ;;  %v363_v30 = vpop.permute.xlu1 %362  ;;  %v418_v31 = vpack.c.bf16 %v412_v25, %v410_v24  ;;  %v417_v32 = vpack.c.bf16 %v411_v27, %v409_v26 }
  0x91   : > { %841 = vrot.lane.b32.xlu0 %v3962_v7, %s3855_s26  ;;  %843 = vrot.lane.b32.xlu1 %v3952_v5, %s3855_s26 }
  0x92   : > { %976 = vmatprep.subr.bf16.mxu0 %v418_v31 }
  0x93   : > { %977 = vmatpush1.bf16.msra.mxu0 %v417_v32  ;;  %v377_v34 = vpop.permute.xlu0 %376  ;;  %v379_v35 = vpop.permute.xlu1 %378 }
  0x94   : > { %v383_v37 = vsel %vm380_vm0, %v377_v34, %v361_v29  ;;  %v395_v38 = vsel %vm380_vm0, %v361_v29, %v377_v34  ;;  %v384_v39 = vsel %vm380_vm0, %v379_v35, %v363_v30  ;;  %v396_v40 = vsel %vm380_vm0, %v363_v30, %v379_v35  ;;  %v3634_v30 = vld [vmem:[%s5597_s3 + $0x4] sm:$0x3] }
  0x95   : > { %v413_v41 = vmul.f32 %v402_v18, %v395_v38  ;;  %v414_v42 = vmul.f32 %v406_v16, %v383_v37  ;;  %v415_v43 = vmul.f32 %v402_v18, %v396_v40  ;;  %v416_v44 = vmul.f32 %v406_v16, %v384_v39  ;;  %1975 = vrot.lane.b32.xlu0 %v4102_v33, %s3848_s17  ;;  %v4148_v16 = vld [vmem:[%s3926_s16 + $0x70] sm:$0xff] }
  0x96   : > { %1977 = vrot.lane.b32.xlu1 %v4105_v36, %s3848_s17  ;;  %v534_v37 = vrot.slane %v3634_v30, %v4079_v13  ;;  %v538_v38 = vrot.slane %v3634_v30, %v4070_v11 }
  0x97   : > { %v426_v47 = vpop.permute.xlu0 %425  ;;  %v428_v48 = vpop.permute.xlu1 %427  ;;  %v420_v50 = vpack.c.bf16 %v416_v44, %v414_v42  ;;  %v419_v51 = vpack.c.bf16 %v415_v43, %v413_v41 }
  0x99   : > { %1991 = vrot.lane.b32.xlu0 %v4116_v45, %s3848_s17  ;;  %978 = vmatprep.subr.bf16.mxu0 %v420_v50 }
  0x9a   : > { %1993 = vrot.lane.b32.xlu1 %v4122_v49, %s3848_s17  ;;  %979 = vmatpush1.bf16.msra.mxu0 %v419_v51 }
  0x9b   : > { %v438_v55 = vpop.permute.xlu0 %437  ;;  %v440_v56 = vpop.permute.xlu1 %439 }
  0x9c   : > { %v446_v58 = vsel %vm445_vm1, %v438_v55, %v426_v47  ;;  %v458_v59 = vsel %vm445_vm1, %v426_v47, %v438_v55  ;;  %v447_v60 = vsel %vm445_vm1, %v440_v56, %v428_v48  ;;  %v459_v61 = vsel %vm445_vm1, %v428_v48, %v440_v56 }
  0x9d   : > { %v475_v62 = vmul.f32 %v468_v52, %v458_v59  ;;  %v476_v63 = vmul.f32 %v472_v53, %v446_v58  ;;  %v477_v9 = vmul.f32 %v468_v52, %v459_v61  ;;  %v478_v10 = vmul.f32 %v472_v53, %v447_v60  ;;  %1979 = vrot.lane.b32.xlu0 %v4131_v54, %s3848_s17 }
  0x9e   : > { %1981 = vrot.lane.b32.xlu1 %v4134_v57, %s3848_s17 }
  0x9f   : > { %v430_v14 = vpop.permute.xlu0 %429  ;;  %v432_v15 = vpop.permute.xlu1 %431  ;;  %v484_v17 = vpack.c.bf16 %v478_v10, %v476_v63  ;;  %v483_v18 = vpack.c.bf16 %v477_v9, %v475_v62 }
  0xa1   : > { %1995 = vrot.lane.b32.xlu0 %v4145_v12, %s3848_s17  ;;  %980 = vmatprep.subr.bf16.mxu0 %v484_v17 }
  0xa2   : > { %1997 = vrot.lane.b32.xlu1 %v4148_v16, %s3848_s17  ;;  %981 = vmatpush1.bf16.msra.mxu0 %v483_v18 }
  0xa3   : > { %v442_v19 = vpop.permute.xlu0 %441  ;;  %v444_v20 = vpop.permute.xlu1 %443 }
  0xa4   : > { %v448_v21 = vsel %vm445_vm1, %v442_v19, %v430_v14  ;;  %v460_v22 = vsel %vm445_vm1, %v430_v14, %v442_v19  ;;  %v449_v23 = vsel %vm445_vm1, %v444_v20, %v432_v15  ;;  %v461_v24 = vsel %vm445_vm1, %v432_v15, %v444_v20  ;;  %v3635_v15 = vld [vmem:[%s5597_s3 + $0x6] sm:$0x3] }
  0xa5   : > { %v479_v25 = vmul.f32 %v468_v52, %v460_v22  ;;  %v480_v26 = vmul.f32 %v472_v53, %v448_v21  ;;  %v481_v27 = vmul.f32 %v468_v52, %v461_v24  ;;  %v482_v29 = vmul.f32 %v472_v53, %v449_v23  ;;  %2043 = vrot.lane.b32.xlu0 %v4102_v33, %s3849_s18 }
  0xa6   : > { %2045 = vrot.lane.b32.xlu1 %v4105_v36, %s3849_s18  ;;  %v600_v21 = vrot.slane %v3635_v15, %v4079_v13  ;;  %v604_v22 = vrot.slane %v3635_v15, %v4070_v11 }
  0xa7   : > { %v492_v31 = vpop.permute.xlu0 %491  ;;  %v494_v32 = vpop.permute.xlu1 %493  ;;  %v486_v34 = vpack.c.bf16 %v482_v29, %v480_v26  ;;  %v485_v35 = vpack.c.bf16 %v481_v27, %v479_v25 }
  0xa9   : > { %2055 = vrot.lane.b32.xlu0 %v4116_v45, %s3849_s18  ;;  %982 = vmatprep.subr.bf16.mxu0 %v486_v34 }
  0xaa   : > { %2057 = vrot.lane.b32.xlu1 %v4122_v49, %s3849_s18  ;;  %983 = vmatpush1.bf16.msra.mxu0 %v485_v35 }
  0xab   : > { %v504_v39 = vpop.permute.xlu0 %503  ;;  %v506_v40 = vpop.permute.xlu1 %505 }
  0xac   : > { %v512_v41 = vsel %vm511_vm2, %v504_v39, %v492_v31  ;;  %v524_v42 = vsel %vm511_vm2, %v492_v31, %v504_v39  ;;  %v513_v43 = vsel %vm511_vm2, %v506_v40, %v494_v32  ;;  %v525_v44 = vsel %vm511_vm2, %v494_v32, %v506_v40 }
  0xad   : > { %v541_v46 = vmul.f32 %v534_v37, %v524_v42  ;;  %v542_v47 = vmul.f32 %v538_v38, %v512_v41  ;;  %v543_v48 = vmul.f32 %v534_v37, %v525_v44  ;;  %v544_v50 = vmul.f32 %v538_v38, %v513_v43  ;;  %2047 = vrot.lane.b32.xlu0 %v4131_v54, %s3849_s18 }
  0xae   : > { %2049 = vrot.lane.b32.xlu1 %v4134_v57, %s3849_s18 }
  0xaf   : > { %v496_v51 = vpop.permute.xlu0 %495  ;;  %v498_v52 = vpop.permute.xlu1 %497  ;;  %v550_v53 = vpack.c.bf16 %v544_v50, %v542_v47  ;;  %v549_v55 = vpack.c.bf16 %v543_v48, %v541_v46 }
  0xb1   : > { %2059 = vrot.lane.b32.xlu0 %v4145_v12, %s3849_s18  ;;  %984 = vmatprep.subr.bf16.mxu0 %v550_v53 }
  0xb2   : > { %2061 = vrot.lane.b32.xlu1 %v4148_v16, %s3849_s18  ;;  %985 = vmatpush1.bf16.msra.mxu0 %v549_v55 }
  0xb3   : > { %v508_v56 = vpop.permute.xlu0 %507  ;;  %v510_v58 = vpop.permute.xlu1 %509 }
  0xb4   : > { %v514_v59 = vsel %vm511_vm2, %v508_v56, %v496_v51  ;;  %v526_v60 = vsel %vm511_vm2, %v496_v51, %v508_v56  ;;  %v515_v61 = vsel %vm511_vm2, %v510_v58, %v498_v52  ;;  %v527_v62 = vsel %vm511_vm2, %v498_v52, %v510_v58 }
  0xb5   : > { %v545_v63 = vmul.f32 %v534_v37, %v526_v60  ;;  %v546_v9 = vmul.f32 %v538_v38, %v514_v59  ;;  %v547_v10 = vmul.f32 %v534_v37, %v527_v62  ;;  %v548_v14 = vmul.f32 %v538_v38, %v515_v61  ;;  %2107 = vrot.lane.b32.xlu0 %v4102_v33, %s3850_s19  ;;  %v3636_v59 = vld [vmem:[%s5597_s3 + $0xa] sm:$0x3] }
  0xb6   : > { %2109 = vrot.lane.b32.xlu1 %v4105_v36, %s3850_s19  ;;  %v624_v58 = vpack.c.bf16 %v3939_v2, %v3929_v0  ;;  %v623_v60 = vpack.c.bf16 %v3942_v3, %v3932_v1  ;;  %v678_v61 = vrot.slane %v3636_v59, %v4070_v11  ;;  %v626_v2 = vpack.c.bf16 %v3952_v5, %v3949_v4 }
  0xb7   : > { %v558_v17 = vpop.permute.xlu0 %557  ;;  %v560_v18 = vpop.permute.xlu1 %559  ;;  %v552_v19 = vpack.c.bf16 %v548_v14, %v546_v9  ;;  %v551_v20 = vpack.c.bf16 %v547_v10, %v545_v63  ;;  %v674_v1 = vrot.slane %v3636_v59, %v4079_v13  ;;  %v625_v3 = vpack.c.bf16 %v3962_v7, %v3959_v6 }
  0xb9   : > { %2119 = vrot.lane.b32.xlu0 %v4116_v45, %s3850_s19  ;;  %986 = vmatprep.subr.bf16.mxu0 %v552_v19 }
  0xba   : > { %2121 = vrot.lane.b32.xlu1 %v4122_v49, %s3850_s19  ;;  %987 = vmatpush1.bf16.msra.mxu0 %v551_v20 }
  0xbb   : > { %v570_v23 = vpop.permute.xlu0 %569  ;;  %v572_v24 = vpop.permute.xlu1 %571 }
  0xbc   : > { %v578_v25 = vsel %vm577_vm3, %v570_v23, %v558_v17  ;;  %v590_v26 = vsel %vm577_vm3, %v558_v17, %v570_v23  ;;  %v579_v27 = vsel %vm577_vm3, %v572_v24, %v560_v18  ;;  %v591_v29 = vsel %vm577_vm3, %v560_v18, %v572_v24 }
  0xbd   : > { %v607_v30 = vmul.f32 %v600_v21, %v590_v26  ;;  %v608_v31 = vmul.f32 %v604_v22, %v578_v25  ;;  %v609_v32 = vmul.f32 %v600_v21, %v591_v29  ;;  %v610_v34 = vmul.f32 %v604_v22, %v579_v27  ;;  %2111 = vrot.lane.b32.xlu0 %v4131_v54, %s3850_s19 }
  0xbe   : > { %2113 = vrot.lane.b32.xlu1 %v4134_v57, %s3850_s19 }
  0xbf   : > { %v562_v35 = vpop.permute.xlu0 %561  ;;  %v564_v37 = vpop.permute.xlu1 %563  ;;  %v616_v38 = vpack.c.bf16 %v610_v34, %v608_v31  ;;  %v615_v39 = vpack.c.bf16 %v609_v32, %v607_v30  ;;  %v3637_v31 = vld [vmem:[%s5597_s3 + $0xc] sm:$0x3] }
  0xc1   : > { %2123 = vrot.lane.b32.xlu0 %v4145_v12, %s3850_s19  ;;  %988 = vmatprep.subr.bf16.mxu0 %v616_v38  ;;  %v740_v38 = vrot.slane %v3637_v31, %v4079_v13 }
  0xc2   : > { %2125 = vrot.lane.b32.xlu1 %v4148_v16, %s3850_s19  ;;  %989 = vmatpush1.bf16.msra.mxu0 %v615_v39  ;;  %v744_v39 = vrot.slane %v3637_v31, %v4070_v11 }
  0xc3   : > { %v574_v40 = vpop.permute.xlu0 %573  ;;  %v576_v41 = vpop.permute.xlu1 %575 }
  0xc4   : > { %v580_v42 = vsel %vm577_vm3, %v574_v40, %v562_v35  ;;  %v592_v43 = vsel %vm577_vm3, %v562_v35, %v574_v40  ;;  %v581_v44 = vsel %vm577_vm3, %v576_v41, %v564_v37  ;;  %v593_v46 = vsel %vm577_vm3, %v564_v37, %v576_v41 }
  0xc5   : > { %v611_v47 = vmul.f32 %v600_v21, %v592_v43  ;;  %v612_v48 = vmul.f32 %v604_v22, %v580_v42  ;;  %v613_v50 = vmul.f32 %v600_v21, %v593_v46  ;;  %v614_v51 = vmul.f32 %v604_v22, %v581_v44  ;;  %2171 = vrot.lane.b32.xlu0 %v4102_v33, %s3851_s20 }
  0xc6   : > { %2173 = vrot.lane.b32.xlu1 %v4105_v36, %s3851_s20 }
  0xc7   : > { %v632_v52 = vpop.permute.xlu0 %631  ;;  %v634_v53 = vpop.permute.xlu1 %633  ;;  %v618_v55 = vpack.c.bf16 %v614_v51, %v612_v48  ;;  %v617_v56 = vpack.c.bf16 %v613_v50, %v611_v47 }
  0xc8   : > { %v664_v63 = vsel %vm647_vm4, %v634_v53, %v632_v52  ;;  %v648_v4 = vsel %vm647_vm4, %v632_v52, %v634_v53 }
  0xc9   : > { %2183 = vrot.lane.b32.xlu0 %v4116_v45, %s3851_s20  ;;  %990 = vmatprep.subr.bf16.mxu0 %v618_v55  ;;  %v682_v5 = vmul.f32 %v678_v61, %v664_v63  ;;  %v681_v20 = vmul.f32 %v674_v1, %v648_v4 }
  0xca   : > { %2185 = vrot.lane.b32.xlu1 %v4122_v49, %s3851_s20  ;;  %991 = vmatpush1.bf16.msra.mxu0 %v617_v56 }
  0xcb   : > { %v636_v62 = vpop.permute.xlu0 %635  ;;  %v638_v0 = vpop.permute.xlu1 %637  ;;  %992 = vmatprep.subr.bf16.mxu0 %v624_v58 }
  0xcc   : > { %v665_v9 = vsel %vm647_vm4, %v638_v0, %v636_v62  ;;  %v649_v10 = vsel %vm647_vm4, %v636_v62, %v638_v0 }
  0xcd   : > { %v684_v14 = vmul.f32 %v678_v61, %v665_v9  ;;  %2175 = vrot.lane.b32.xlu0 %v4131_v54, %s3851_s20  ;;  %v683_v18 = vmul.f32 %v674_v1, %v649_v10 }
  0xce   : > { %2177 = vrot.lane.b32.xlu1 %v4134_v57, %s3851_s20  ;;  %993 = vmatpush1.bf16.msra.mxu0 %v623_v60 }
  0xcf   : > { %v640_v15 = vpop.permute.xlu0 %639  ;;  %v642_v17 = vpop.permute.xlu1 %641  ;;  %994 = vmatprep.subr.bf16.mxu0 %v626_v2  ;;  %v690_v19 = vpack.c.bf16 %v684_v14, %v682_v5  ;;  %v689_v25 = vpack.c.bf16 %v683_v18, %v681_v20  ;;  %v3638_v14 = vld [vmem:[%s5597_s3 + $0xe] sm:$0x3] }
  0xd0   : > { %v650_v21 = vsel %vm647_vm4, %v640_v15, %v642_v17  ;;  %v666_v22 = vsel %vm647_vm4, %v642_v17, %v640_v15  ;;  %v806_v15 = vrot.slane %v3638_v14, %v4079_v13  ;;  %v810_v17 = vrot.slane %v3638_v14, %v4070_v11 }
  0xd1   : > { %2187 = vrot.lane.b32.xlu0 %v4145_v12, %s3851_s20  ;;  %v685_v26 = vmul.f32 %v674_v1, %v650_v21  ;;  %v686_v27 = vmul.f32 %v678_v61, %v666_v22 }
  0xd2   : > { %2189 = vrot.lane.b32.xlu1 %v4148_v16, %s3851_s20  ;;  %995 = vmatpush1.bf16.msra.mxu0 %v625_v3 }
  0xd3   : > { %v644_v6 = vpop.permute.xlu0 %643  ;;  %v646_v7 = vpop.permute.xlu1 %645  ;;  %996 = vmatprep.subr.bf16.mxu0 %v690_v19 }
  0xd4   : > { %v651_v23 = vsel %vm647_vm4, %v644_v6, %v646_v7  ;;  %v667_v24 = vsel %vm647_vm4, %v646_v7, %v644_v6 }
  0xd5   : > { %v687_v29 = vmul.f32 %v674_v1, %v651_v23  ;;  %v688_v30 = vmul.f32 %v678_v61, %v667_v24  ;;  %2243 = vrot.lane.b32.xlu0 %v4116_v45, %s3852_s21 }
  0xd6   : > { %2245 = vrot.lane.b32.xlu1 %v4102_v33, %s3852_s21  ;;  %997 = vmatpush1.bf16.msra.mxu0 %v689_v25 }
  0xd7   : > { %v698_v32 = vpop.permute.xlu0 %697  ;;  %v700_v34 = vpop.permute.xlu1 %699  ;;  %v692_v35 = vpack.c.bf16 %v688_v30, %v686_v27  ;;  %v691_v37 = vpack.c.bf16 %v687_v29, %v685_v26 }
  0xd8   : > { %v714_v40 = vsel %vm713_vm5, %v698_v32, %v700_v34  ;;  %v730_v41 = vsel %vm713_vm5, %v700_v34, %v698_v32 }
  0xd9   : > { %2247 = vrot.lane.b32.xlu0 %v4122_v49, %s3852_s21  ;;  %998 = vmatprep.subr.bf16.mxu0 %v692_v35  ;;  %v747_v47 = vmul.f32 %v740_v38, %v714_v40  ;;  %v748_v48 = vmul.f32 %v744_v39, %v730_v41 }
  0xda   : > { %2249 = vrot.lane.b32.xlu1 %v4105_v36, %s3852_s21  ;;  %999 = vmatpush1.bf16.msra.mxu0 %v691_v37 }
  0xdb   : > { %v702_v42 = vpop.permute.xlu0 %701  ;;  %v704_v43 = vpop.permute.xlu1 %703 }
  0xdc   : > { %v715_v44 = vsel %vm713_vm5, %v702_v42, %v704_v43  ;;  %v731_v46 = vsel %vm713_vm5, %v704_v43, %v702_v42  ;;  %v3639_v43 = vld [vmem:[%s5597_s3 + $0x10] sm:$0x3] }
  0xdd   : > { %v749_v50 = vmul.f32 %v740_v38, %v715_v44  ;;  %v750_v51 = vmul.f32 %v744_v39, %v731_v46  ;;  %2251 = vrot.lane.b32.xlu0 %v4145_v12, %s3852_s21 }
  0xde   : > { %2253 = vrot.lane.b32.xlu1 %v4131_v54, %s3852_s21 }
  0xdf   : > { %v706_v52 = vpop.permute.xlu0 %705  ;;  %v708_v53 = vpop.permute.xlu1 %707  ;;  %v756_v55 = vpack.c.bf16 %v750_v51, %v748_v48  ;;  %v755_v56 = vpack.c.bf16 %v749_v50, %v747_v47  ;;  %v872_v50 = vrot.slane %v3639_v43, %v4079_v13  ;;  %v876_v51 = vrot.slane %v3639_v43, %v4070_v11 }
  0xe0   : > { %v716_v58 = vsel %vm713_vm5, %v706_v52, %v708_v53  ;;  %v732_v59 = vsel %vm713_vm5, %v708_v53, %v706_v52  ;;  %v4326_v53 = vld [vmem:[%s5595_s1] ss:$12 sps:$4 sm:$0xff]  }
  0xe1   : > { %2255 = vrot.lane.b32.xlu0 %v4148_v16, %s3852_s21  ;;  %1000 = vmatprep.subr.bf16.mxu0 %v756_v55  ;;  %v751_v2 = vmul.f32 %v740_v38, %v716_v58  ;;  %v752_v63 = vmul.f32 %v744_v39, %v732_v59 }
  0xe2   : > { %2257 = vrot.lane.b32.xlu1 %v4134_v57, %s3852_s21  ;;  %1001 = vmatpush1.bf16.msra.mxu0 %v755_v56  ;;  %v4334_v56 = vld [vmem:[%s5595_s1 + $0x1c] ss:$12 sps:$4 sm:$0xff]  }
  0xe3   : > { %v710_v60 = vpop.permute.xlu0 %709  ;;  %v712_v61 = vpop.permute.xlu1 %711 }
  0xe4   : > { %v717_v62 = vsel %vm713_vm5, %v710_v60, %v712_v61  ;;  %v733_v0 = vsel %vm713_vm5, %v712_v61, %v710_v60 }
  0xe5   : > { %v753_v9 = vmul.f32 %v740_v38, %v717_v62  ;;  %v754_v10 = vmul.f32 %v744_v39, %v733_v0  ;;  %2307 = vrot.lane.b32.xlu0 %v4116_v45, %s3853_s22 }
  0xe6   : > { %2309 = vrot.lane.b32.xlu1 %v4102_v33, %s3853_s22 }
  0xe7   : > { %v764_v1 = vpop.permute.xlu0 %763  ;;  %v766_v3 = vpop.permute.xlu1 %765  ;;  %v758_v4 = vpack.c.bf16 %v754_v10, %v752_v63  ;;  %v757_v5 = vpack.c.bf16 %v753_v9, %v751_v2 }
  0xe8   : > { %v780_v18 = vsel %vm779_vm6, %v764_v1, %v766_v3  ;;  %v796_v19 = vsel %vm779_vm6, %v766_v3, %v764_v1 }
  0xe9   : > { %2311 = vrot.lane.b32.xlu0 %v4122_v49, %s3853_s22  ;;  %1002 = vmatprep.subr.bf16.mxu0 %v758_v4  ;;  %v813_v7 = vmul.f32 %v806_v15, %v780_v18  ;;  %v814_v23 = vmul.f32 %v810_v17, %v796_v19  ;;  %v4350_v4 = vld [vmem:[%s5595_s1 + $0x18] ss:$12 sps:$4 sm:$0xff]  }
  0xea   : > { %2313 = vrot.lane.b32.xlu1 %v4105_v36, %s3853_s22  ;;  %1003 = vmatpush1.bf16.msra.mxu0 %v757_v5 }
  0xeb   : > { %v768_v20 = vpop.permute.xlu0 %767  ;;  %v770_v21 = vpop.permute.xlu1 %769 }
  0xec   : > { %v781_v22 = vsel %vm779_vm6, %v768_v20, %v770_v21  ;;  %v797_v6 = vsel %vm779_vm6, %v770_v21, %v768_v20 }
  0xed   : > { %v815_v24 = vmul.f32 %v806_v15, %v781_v22  ;;  %v816_v25 = vmul.f32 %v810_v17, %v797_v6  ;;  %2315 = vrot.lane.b32.xlu0 %v4145_v12, %s3853_s22 }
  0xee   : > { %2317 = vrot.lane.b32.xlu1 %v4131_v54, %s3853_s22 }
  0xef   : > { %v772_v26 = vpop.permute.xlu0 %771  ;;  %v774_v27 = vpop.permute.xlu1 %773  ;;  %v822_v29 = vpack.c.bf16 %v816_v25, %v814_v23  ;;  %v821_v30 = vpack.c.bf16 %v815_v24, %v813_v7  ;;  %v2015_v7 = vld [vmem:[%s5597_s3] sm:$0x3] }
  0xf0   : > { %v782_v31 = vsel %vm779_vm6, %v772_v26, %v774_v27  ;;  %v798_v32 = vsel %vm779_vm6, %v774_v27, %v772_v26  ;;  %v2020_v27 = vrot.slane %v2015_v7, %v4079_v13 }
  0xf1   : > { %2319 = vrot.lane.b32.xlu0 %v4148_v16, %s3853_s22  ;;  %1004 = vmatprep.subr.bf16.mxu0 %v822_v29  ;;  %v817_v39 = vmul.f32 %v806_v15, %v782_v31  ;;  %v818_v40 = vmul.f32 %v810_v17, %v798_v32  ;;  %v2024_v29 = vrot.slane %v2015_v7, %v4070_v11 }
  0xf2   : > { %2321 = vrot.lane.b32.xlu1 %v4134_v57, %s3853_s22  ;;  %1005 = vmatpush1.bf16.msra.mxu0 %v821_v30  ;;  %v3778_v30 = vld [vmem:[%s5595_s1 + $0x8] ss:$12 sps:$4 sm:$0xff]  }
  0xf3   : > { %v776_v34 = vpop.permute.xlu0 %775  ;;  %v778_v35 = vpop.permute.xlu1 %777 }
  0xf4   : > { %v783_v37 = vsel %vm779_vm6, %v776_v34, %v778_v35  ;;  %v799_v38 = vsel %vm779_vm6, %v778_v35, %v776_v34 }
  0xf5   : > { %v819_v41 = vmul.f32 %v806_v15, %v783_v37  ;;  %v820_v42 = vmul.f32 %v810_v17, %v799_v38  ;;  %2371 = vrot.lane.b32.xlu0 %v4116_v45, %s3854_s23 }
  0xf6   : > { %2373 = vrot.lane.b32.xlu1 %v4102_v33, %s3854_s23 }
  0xf7   : > { %v830_v44 = vpop.permute.xlu0 %829  ;;  %v832_v46 = vpop.permute.xlu1 %831  ;;  %v824_v47 = vpack.c.bf16 %v820_v42, %v818_v40  ;;  %v823_v48 = vpack.c.bf16 %v819_v41, %v817_v39 }
  0xf8   : > { %v846_v52 = vsel %vm845_vm7, %v830_v44, %v832_v46  ;;  %v862_v55 = vsel %vm845_vm7, %v832_v46, %v830_v44 }
  0xf9   : > { %2375 = vrot.lane.b32.xlu0 %v4122_v49, %s3854_s23  ;;  %1006 = vmatprep.subr.bf16.mxu0 %v824_v47  ;;  %v879_v60 = vmul.f32 %v872_v50, %v846_v52  ;;  %v880_v0 = vmul.f32 %v876_v51, %v862_v55 }
  0xfa   : > { %2377 = vrot.lane.b32.xlu1 %v4105_v36, %s3854_s23  ;;  %1007 = vmatpush1.bf16.msra.mxu0 %v823_v48  ;;  %v3779_v48 = vld [vmem:[%s5595_s1 + $0x20] ss:$12 sps:$4 sm:$0xff]  }
  0xfb   : > { %v834_v58 = vpop.permute.xlu0 %833  ;;  %v836_v59 = vpop.permute.xlu1 %835 }
  0xfc   : > { %v847_v61 = vsel %vm845_vm7, %v834_v58, %v836_v59  ;;  %v863_v62 = vsel %vm845_vm7, %v836_v59, %v834_v58 }
  0xfd   : > { %v881_v2 = vmul.f32 %v872_v50, %v847_v61  ;;  %v882_v63 = vmul.f32 %v876_v51, %v863_v62  ;;  %2379 = vrot.lane.b32.xlu0 %v4145_v12, %s3854_s23  ;;  %1009 = vmatmul.mubr.bf16.vlgmr.msra.gmra.mrb[0].mxu0 %v4326_v53 }
  0xfe   : > { %2381 = vrot.lane.b32.xlu1 %v4131_v54, %s3854_s23  ;;  %1018 = vmatprep.mubr.bf16.mxu0 %v4334_v56 }
  0xff   : > { %v887_v9 = vpack.c.bf16 %v881_v2, %v879_v60  ;;  %v838_v10 = vpop.permute.xlu0 %837  ;;  %v840_v14 = vpop.permute.xlu1 %839  ;;  %v888_v1 = vpack.c.bf16 %v882_v63, %v880_v0  ;;  %v3675_v2 = vld [vmem:[%s5597_s3 + $0x2] sm:$0x3] }
 0x100   : > { %v848_v3 = vsel %vm845_vm7, %v838_v10, %v840_v14  ;;  %v864_v5 = vsel %vm845_vm7, %v840_v14, %v838_v10 }
 0x101   : > { %2383 = vrot.lane.b32.xlu0 %v4148_v16, %s3854_s23  ;;  %1029 = vmatprep.subr.bf16.mxu0 %v888_v1  ;;  %v883_v18 = vmul.f32 %v872_v50, %v848_v3  ;;  %v884_v21 = vmul.f32 %v876_v51, %v864_v5  ;;  %v2084_v1 = vrot.slane %v3675_v2, %v4079_v13 }
 0x102   : > { %2385 = vrot.lane.b32.xlu1 %v4134_v57, %s3854_s23  ;;  %1030 = vmatpush1.bf16.msra.mxu0 %v887_v9  ;;  %v2088_v3 = vrot.slane %v3675_v2, %v4070_v11 }
 0x103   : > { %v842_v15 = vpop.permute.xlu0 %841  ;;  %v844_v17 = vpop.permute.xlu1 %843 }
 0x104   : > { %v849_v19 = vsel %vm845_vm7, %v842_v15, %v844_v17  ;;  %v865_v20 = vsel %vm845_vm7, %v844_v17, %v842_v15 }
 0x105   : > { %v885_v22 = vmul.f32 %v872_v50, %v849_v19  ;;  %v886_v6 = vmul.f32 %v876_v51, %v865_v20  ;;  %2435 = vrot.lane.b32.xlu0 %v4116_v45, %s3855_s26  ;;  %1019 = vmatmul.mubr.bf16.gmra.mrb[4].mxu0 %v4350_v4 }
 0x106   : > { %2437 = vrot.lane.b32.xlu1 %v4102_v33, %s3855_s26  ;;  %1061 = vmatprep.mubr.bf16.mxu0 %v5604_v28 }
 0x107   : > { %v889_v23 = vpack.c.bf16 %v885_v22, %v883_v18  ;;  %v1976_v24 = vpop.permute.xlu0 %1975  ;;  %v890_v25 = vpack.c.bf16 %v886_v6, %v884_v21 }
 0x108   : > { %v1978_v26 = vpop.permute.xlu1 %1977 }
 0x109   : > { %2439 = vrot.lane.b32.xlu0 %v4122_v49, %s3855_s26  ;;  %1031 = vmatprep.subr.bf16.mxu0 %v890_v25 }
 0x10a   : > { %2441 = vrot.lane.b32.xlu1 %v4105_v36, %s3855_s26  ;;  %1032 = vmatpush1.bf16.msra.mxu0 %v889_v23 }
 0x10b   : > { %v1992_v31 = vpop.permute.xlu0 %1991 }
 0x10c   : > { %v1999_v32 = vsel %vm380_vm0, %v1992_v31, %v1976_v24  ;;  %v2011_v34 = vsel %vm380_vm0, %v1976_v24, %v1992_v31  ;;  %v1994_v35 = vpop.permute.xlu1 %1993 }
 0x10d   : > { %v2027_v37 = vmul.f32 %v2020_v27, %v2011_v34  ;;  %v2028_v38 = vmul.f32 %v2024_v29, %v1999_v32  ;;  %v2000_v39 = vsel %vm380_vm0, %v1994_v35, %v1978_v26  ;;  %v2012_v40 = vsel %vm380_vm0, %v1978_v26, %v1994_v35  ;;  %2443 = vrot.lane.b32.xlu0 %v4145_v12, %s3855_s26 }
 0x10e   : > { %v2029_v41 = vmul.f32 %v2020_v27, %v2012_v40  ;;  %v2030_v42 = vmul.f32 %v2024_v29, %v2000_v39  ;;  %2445 = vrot.lane.b32.xlu1 %v4131_v54, %s3855_s26  ;;  %3646 = vmatmul.mubr.msk.bf16.vlgmr.msra.gmra.mrb[0].mxu0 %vm969_vm8, %v3778_v30  ;;  %v3676_v39 = vld [vmem:[%s5597_s3 + $0x4] sm:$0x3] }
 0x10f   : > { %v1980_v43 = vpop.permute.xlu0 %1979  ;;  %1071 = vmatprep.mubr.bf16.mxu0 %v5604_v28 }
 0x110   : > { %v2035_v44 = vpack.c.bf16 %v2029_v41, %v2027_v37  ;;  %v1982_v46 = vpop.permute.xlu1 %1981  ;;  %v2036_v47 = vpack.c.bf16 %v2030_v42, %v2028_v38 }
 0x111   : > { %2447 = vrot.lane.b32.xlu0 %v4148_v16, %s3855_s26 }
 0x112   : > { %2449 = vrot.lane.b32.xlu1 %v4134_v57, %s3855_s26  ;;  %2579 = vmatprep.subr.bf16.mxu0 %v2036_v47 }
 0x113   : > { %2580 = vmatpush1.bf16.msra.mxu0 %v2035_v44  ;;  %v1996_v50 = vpop.permute.xlu0 %1995  ;;  %v2148_v44 = vrot.slane %v3676_v39, %v4079_v13 }
 0x114   : > { %v2001_v51 = vsel %vm380_vm0, %v1996_v50, %v1980_v43  ;;  %v2013_v52 = vsel %vm380_vm0, %v1980_v43, %v1996_v50  ;;  %v1998_v55 = vpop.permute.xlu1 %1997 }
 0x115   : > { %v2031_v58 = vmul.f32 %v2020_v27, %v2013_v52  ;;  %v2032_v59 = vmul.f32 %v2024_v29, %v2001_v51  ;;  %v2002_v60 = vsel %vm380_vm0, %v1998_v55, %v1982_v46  ;;  %v2014_v61 = vsel %vm380_vm0, %v1982_v46, %v1998_v55 }
 0x116   : > { %v2033_v62 = vmul.f32 %v2020_v27, %v2014_v61  ;;  %v2034_v0 = vmul.f32 %v2024_v29, %v2002_v60  ;;  %3647 = vmatmul.mubr.msk.bf16.gmra.mrb[4].mxu0 %vm969_vm8, %v3779_v48  ;;  %v2152_v46 = vrot.slane %v3676_v39, %v4070_v11 }
 0x117   : > { %v2044_v63 = vpop.permute.xlu0 %2043  ;;  %2611 = vmatprep.mubr.bf16.mxu0 %v4059_v8 }
 0x118   : > { %v2037_v9 = vpack.c.bf16 %v2033_v62, %v2031_v58  ;;  %v2046_v10 = vpop.permute.xlu1 %2045  ;;  %v2038_v14 = vpack.c.bf16 %v2034_v0, %v2032_v59 }
 0x11a   : > { %2581 = vmatprep.subr.bf16.mxu0 %v2038_v14 }
 0x11b   : > { %2582 = vmatpush1.bf16.msra.mxu0 %v2037_v9  ;;  %v2056_v5 = vpop.permute.xlu0 %2055 }
 0x11c   : > { %v2063_v15 = vsel %vm445_vm1, %v2056_v5, %v2044_v63  ;;  %v2075_v17 = vsel %vm445_vm1, %v2044_v63, %v2056_v5  ;;  %v2058_v18 = vpop.permute.xlu1 %2057 }
 0x11d   : > { %v2091_v19 = vmul.f32 %v2084_v1, %v2075_v17  ;;  %v2092_v20 = vmul.f32 %v2088_v3, %v2063_v15  ;;  %v2064_v21 = vsel %vm445_vm1, %v2058_v18, %v2046_v10  ;;  %v2076_v8 = vsel %vm445_vm1, %v2046_v10, %v2058_v18 }
 0x11e   : > { %v2093_v22 = vmul.f32 %v2084_v1, %v2076_v8  ;;  %v2094_v6 = vmul.f32 %v2088_v3, %v2064_v21 }
 0x11f   : > { %v2048_v7 = vpop.permute.xlu0 %2047 }
 0x120   : > { %v2099_v23 = vpack.c.bf16 %v2093_v22, %v2091_v19  ;;  %v2050_v24 = vpop.permute.xlu1 %2049  ;;  %v2100_v25 = vpack.c.bf16 %v2094_v6, %v2092_v20  ;;  %v3677_v20 = vld [vmem:[%s5597_s3 + $0x6] sm:$0x3] }
 0x122   : > { %2583 = vmatprep.subr.bf16.mxu0 %v2100_v25 }
 0x123   : > { %2584 = vmatpush1.bf16.msra.mxu0 %v2099_v23  ;;  %v2060_v26 = vpop.permute.xlu0 %2059  ;;  %v2216_v23 = vrot.slane %v3677_v20, %v4070_v11 }
 0x124   : > { %v2065_v27 = vsel %vm445_vm1, %v2060_v26, %v2048_v7  ;;  %v2077_v29 = vsel %vm445_vm1, %v2048_v7, %v2060_v26  ;;  %v2062_v30 = vpop.permute.xlu1 %2061  ;;  %v2212_v7 = vrot.slane %v3677_v20, %v4079_v13 }
 0x125   : > { %v2095_v31 = vmul.f32 %v2084_v1, %v2077_v29  ;;  %v2096_v32 = vmul.f32 %v2088_v3, %v2065_v27  ;;  %v2066_v34 = vsel %vm445_vm1, %v2062_v30, %v2050_v24  ;;  %v2078_v35 = vsel %vm445_vm1, %v2050_v24, %v2062_v30 }
 0x126   : > { %v2097_v37 = vmul.f32 %v2084_v1, %v2078_v35  ;;  %v2098_v38 = vmul.f32 %v2088_v3, %v2066_v34 }
 0x127   : > { %v2108_v40 = vpop.permute.xlu0 %2107 }
 0x128   : > { %v2101_v41 = vpack.c.bf16 %v2097_v37, %v2095_v31  ;;  %v2110_v42 = vpop.permute.xlu1 %2109  ;;  %v2102_v43 = vpack.c.bf16 %v2098_v38, %v2096_v32 }
 0x12a   : > { %2585 = vmatprep.subr.bf16.mxu0 %v2102_v43 }
 0x12b   : > { %2586 = vmatpush1.bf16.msra.mxu0 %v2101_v41  ;;  %v2120_v47 = vpop.permute.xlu0 %2119 }
 0x12c   : > { %v2127_v48 = vsel %vm511_vm2, %v2120_v47, %v2108_v40  ;;  %v2139_v50 = vsel %vm511_vm2, %v2108_v40, %v2120_v47  ;;  %v2122_v51 = vpop.permute.xlu1 %2121 }
 0x12d   : > { %v2155_v52 = vmul.f32 %v2148_v44, %v2139_v50  ;;  %v2156_v55 = vmul.f32 %v2152_v46, %v2127_v48  ;;  %v2128_v58 = vsel %vm511_vm2, %v2122_v51, %v2110_v42  ;;  %v2140_v59 = vsel %vm511_vm2, %v2110_v42, %v2122_v51 }
 0x12e   : > { %v2157_v60 = vmul.f32 %v2148_v44, %v2140_v59  ;;  %v2158_v61 = vmul.f32 %v2152_v46, %v2128_v58 }
 0x12f   : > { %v2112_v62 = vpop.permute.xlu0 %2111 }
 0x130   : > { %v2163_v0 = vpack.c.bf16 %v2157_v60, %v2155_v52  ;;  %v2114_v2 = vpop.permute.xlu1 %2113  ;;  %v2164_v63 = vpack.c.bf16 %v2158_v61, %v2156_v55  ;;  %v2236_v61 = vpack.c.bf16 %v4105_v36, %v4102_v33 }
 0x132   : > { %2587 = vmatprep.subr.bf16.mxu0 %v2164_v63 }
 0x133   : > { %2588 = vmatpush1.bf16.msra.mxu0 %v2163_v0  ;;  %v2124_v9 = vpop.permute.xlu0 %2123 }
 0x134   : > { %v2129_v10 = vsel %vm511_vm2, %v2124_v9, %v2112_v62  ;;  %v2141_v14 = vsel %vm511_vm2, %v2112_v62, %v2124_v9  ;;  %v2126_v1 = vpop.permute.xlu1 %2125  ;;  %v3678_v62 = vld [vmem:[%s5597_s3 + $0xa] sm:$0x3] }
 0x135   : > { %v2159_v3 = vmul.f32 %v2148_v44, %v2141_v14  ;;  %v2160_v5 = vmul.f32 %v2152_v46, %v2129_v10  ;;  %v2130_v15 = vsel %vm511_vm2, %v2126_v1, %v2114_v2  ;;  %v2142_v17 = vsel %vm511_vm2, %v2114_v2, %v2126_v1 }
 0x136   : > { %v2161_v18 = vmul.f32 %v2148_v44, %v2142_v17  ;;  %v2162_v19 = vmul.f32 %v2152_v46, %v2130_v15  ;;  %v2235_v2 = vpack.c.bf16 %v4122_v49, %v4116_v45  ;;  %v2288_v63 = vrot.slane %v3678_v62, %v4070_v11 }
 0x137   : > { %v2172_v21 = vpop.permute.xlu0 %2171  ;;  %v2238_v10 = vpack.c.bf16 %v4134_v57, %v4131_v54  ;;  %v2237_v45 = vpack.c.bf16 %v4148_v16, %v4145_v12 }
 0x138   : > { %v2165_v8 = vpack.c.bf16 %v2161_v18, %v2159_v3  ;;  %v2174_v22 = vpop.permute.xlu1 %2173  ;;  %v2166_v6 = vpack.c.bf16 %v2162_v19, %v2160_v5  ;;  %v2284_v3 = vrot.slane %v3678_v62, %v4079_v13 }
 0x13a   : > { %2589 = vmatprep.subr.bf16.mxu0 %v2166_v6 }
 0x13b   : > { %2590 = vmatpush1.bf16.msra.mxu0 %v2165_v8  ;;  %v2184_v24 = vpop.permute.xlu0 %2183 }
 0x13c   : > { %v2191_v25 = vsel %vm577_vm3, %v2184_v24, %v2172_v21  ;;  %v2203_v26 = vsel %vm577_vm3, %v2172_v21, %v2184_v24  ;;  %v2186_v27 = vpop.permute.xlu1 %2185 }
 0x13d   : > { %v2219_v29 = vmul.f32 %v2212_v7, %v2203_v26  ;;  %v2220_v30 = vmul.f32 %v2216_v23, %v2191_v25  ;;  %v2192_v31 = vsel %vm577_vm3, %v2186_v27, %v2174_v22  ;;  %v2204_v32 = vsel %vm577_vm3, %v2174_v22, %v2186_v27  ;;  %v3679_v26 = vld [vmem:[%s5597_s3 + $0xc] sm:$0x3] }
 0x13e   : > { %v2221_v34 = vmul.f32 %v2212_v7, %v2204_v32  ;;  %v2222_v35 = vmul.f32 %v2216_v23, %v2192_v31  ;;  %v2348_v31 = vrot.slane %v3679_v26, %v4079_v13  ;;  %v2352_v32 = vrot.slane %v3679_v26, %v4070_v11 }
 0x13f   : > { %v2176_v37 = vpop.permute.xlu0 %2175 }
 0x140   : > { %v2227_v38 = vpack.c.bf16 %v2221_v34, %v2219_v29  ;;  %v2178_v39 = vpop.permute.xlu1 %2177  ;;  %v2228_v40 = vpack.c.bf16 %v2222_v35, %v2220_v30 }
 0x142   : > { %2591 = vmatprep.subr.bf16.mxu0 %v2228_v40 }
 0x143   : > { %2592 = vmatpush1.bf16.msra.mxu0 %v2227_v38  ;;  %v2188_v41 = vpop.permute.xlu0 %2187 }
 0x144   : > { %v2193_v42 = vsel %vm577_vm3, %v2188_v41, %v2176_v37  ;;  %v2205_v43 = vsel %vm577_vm3, %v2176_v37, %v2188_v41  ;;  %v2190_v44 = vpop.permute.xlu1 %2189 }
 0x145   : > { %v2223_v46 = vmul.f32 %v2212_v7, %v2205_v43  ;;  %v2224_v47 = vmul.f32 %v2216_v23, %v2193_v42  ;;  %v2194_v48 = vsel %vm577_vm3, %v2190_v44, %v2178_v39  ;;  %v2206_v50 = vsel %vm577_vm3, %v2178_v39, %v2190_v44 }
 0x146   : > { %v2225_v51 = vmul.f32 %v2212_v7, %v2206_v50  ;;  %v2226_v52 = vmul.f32 %v2216_v23, %v2194_v48 }
 0x147   : > { %v2244_v55 = vpop.permute.xlu0 %2243 }
 0x148   : > { %v2229_v58 = vpack.c.bf16 %v2225_v51, %v2223_v46  ;;  %v2246_v59 = vpop.permute.xlu1 %2245  ;;  %v2230_v60 = vpack.c.bf16 %v2226_v52, %v2224_v47 }
 0x149   : > { %v2275_v14 = vsel %vm647_vm4, %v2246_v59, %v2244_v55  ;;  %v2259_v49 = vsel %vm647_vm4, %v2244_v55, %v2246_v59 }
 0x14a   : > { %2593 = vmatprep.subr.bf16.mxu0 %v2230_v60  ;;  %v2292_v15 = vmul.f32 %v2288_v63, %v2275_v14  ;;  %v2291_v18 = vmul.f32 %v2284_v3, %v2259_v49 }
 0x14b   : > { %2594 = vmatpush1.bf16.msra.mxu0 %v2229_v58  ;;  %v2248_v0 = vpop.permute.xlu0 %2247 }
 0x14c   : > { %v2250_v9 = vpop.permute.xlu1 %2249  ;;  %2595 = vmatprep.subr.bf16.mxu0 %v2236_v61 }
 0x14d   : > { %v2276_v33 = vsel %vm647_vm4, %v2250_v9, %v2248_v0  ;;  %v2260_v36 = vsel %vm647_vm4, %v2248_v0, %v2250_v9  ;;  %v3680_v9 = vld [vmem:[%s5597_s3 + $0xe] sm:$0x3] }
 0x14e   : > { %v2294_v1 = vmul.f32 %v2288_v63, %v2276_v33  ;;  %v2293_v54 = vmul.f32 %v2284_v3, %v2260_v36  ;;  %v2412_v36 = vrot.slane %v3680_v9, %v4079_v13 }
 0x14f   : > { %2596 = vmatpush1.bf16.msra.mxu0 %v2235_v2  ;;  %v2252_v5 = vpop.permute.xlu0 %2251 }
 0x150   : > { %v2254_v17 = vpop.permute.xlu1 %2253  ;;  %2597 = vmatprep.subr.bf16.mxu0 %v2238_v10  ;;  %v2300_v57 = vpack.c.bf16 %v2294_v1, %v2292_v15  ;;  %v2299_v22 = vpack.c.bf16 %v2293_v54, %v2291_v18  ;;  %v2416_v1 = vrot.slane %v3680_v9, %v4070_v11 }
 0x151   : > { %v2261_v19 = vsel %vm647_vm4, %v2252_v5, %v2254_v17  ;;  %v2277_v20 = vsel %vm647_vm4, %v2254_v17, %v2252_v5 }
 0x152   : > { %v2295_v16 = vmul.f32 %v2284_v3, %v2261_v19  ;;  %v2296_v7 = vmul.f32 %v2288_v63, %v2277_v20 }
 0x153   : > { %2598 = vmatpush1.bf16.msra.mxu0 %v2237_v45  ;;  %v2256_v21 = vpop.permute.xlu0 %2255 }
 0x154   : > { %v2258_v8 = vpop.permute.xlu1 %2257  ;;  %2599 = vmatprep.subr.bf16.mxu0 %v2300_v57 }
 0x155   : > { %v2262_v6 = vsel %vm647_vm4, %v2256_v21, %v2258_v8  ;;  %v2278_v12 = vsel %vm647_vm4, %v2258_v8, %v2256_v21 }
 0x156   : > { %v2297_v23 = vmul.f32 %v2284_v3, %v2262_v6  ;;  %v2298_v24 = vmul.f32 %v2288_v63, %v2278_v12 }
 0x157   : > { %2600 = vmatpush1.bf16.msra.mxu0 %v2299_v22  ;;  %v2308_v25 = vpop.permute.xlu0 %2307 }
 0x158   : > { %v2301_v27 = vpack.c.bf16 %v2297_v23, %v2295_v16  ;;  %v2310_v29 = vpop.permute.xlu1 %2309  ;;  %v2302_v30 = vpack.c.bf16 %v2298_v24, %v2296_v7 }
 0x159   : > { %v2323_v34 = vsel %vm713_vm5, %v2308_v25, %v2310_v29  ;;  %v2339_v35 = vsel %vm713_vm5, %v2310_v29, %v2308_v25 }
 0x15a   : > { %2601 = vmatprep.subr.bf16.mxu0 %v2302_v30  ;;  %v2355_v41 = vmul.f32 %v2348_v31, %v2323_v34  ;;  %v2356_v42 = vmul.f32 %v2352_v32, %v2339_v35 }
 0x15b   : > { %2602 = vmatpush1.bf16.msra.mxu0 %v2301_v27  ;;  %v2312_v37 = vpop.permute.xlu0 %2311 }
 0x15c   : > { %v2314_v38 = vpop.permute.xlu1 %2313 }
 0x15d   : > { %v2324_v39 = vsel %vm713_vm5, %v2312_v37, %v2314_v38  ;;  %v2340_v40 = vsel %vm713_vm5, %v2314_v38, %v2312_v37 }
 0x15e   : > { %v2357_v43 = vmul.f32 %v2348_v31, %v2324_v39  ;;  %v2358_v44 = vmul.f32 %v2352_v32, %v2340_v40 }
 0x15f   : > { %v2316_v46 = vpop.permute.xlu0 %2315 }
 0x160   : > { %v2363_v47 = vpack.c.bf16 %v2357_v43, %v2355_v41  ;;  %v2318_v48 = vpop.permute.xlu1 %2317  ;;  %v2364_v50 = vpack.c.bf16 %v2358_v44, %v2356_v42 }
 0x161   : > { %v2325_v51 = vsel %vm713_vm5, %v2316_v46, %v2318_v48  ;;  %v2341_v52 = vsel %vm713_vm5, %v2318_v48, %v2316_v46 }
 0x162   : > { %2603 = vmatprep.subr.bf16.mxu0 %v2364_v50  ;;  %v2359_v61 = vmul.f32 %v2348_v31, %v2325_v51  ;;  %v2360_v62 = vmul.f32 %v2352_v32, %v2341_v52 }
 0x163   : > { %2604 = vmatpush1.bf16.msra.mxu0 %v2363_v47  ;;  %v2320_v55 = vpop.permute.xlu0 %2319 }
 0x164   : > { %v2322_v58 = vpop.permute.xlu1 %2321 }
 0x165   : > { %v2326_v59 = vsel %vm713_vm5, %v2320_v55, %v2322_v58  ;;  %v2342_v60 = vsel %vm713_vm5, %v2322_v58, %v2320_v55 }
 0x166   : > { %v2361_v0 = vmul.f32 %v2348_v31, %v2326_v59  ;;  %v2362_v2 = vmul.f32 %v2352_v32, %v2342_v60  ;;  %v3681_v31 = vld [vmem:[%s5597_s3 + $0x10] sm:$0x3] }
 0x167   : > { %v2372_v63 = vpop.permute.xlu0 %2371  ;;  %v2476_v37 = vrot.slane %v3681_v31, %v4079_v13  ;;  %v2480_v38 = vrot.slane %v3681_v31, %v4070_v11 }
 0x168   : > { %v2365_v10 = vpack.c.bf16 %v2361_v0, %v2359_v61  ;;  %v2374_v14 = vpop.permute.xlu1 %2373  ;;  %v2366_v33 = vpack.c.bf16 %v2362_v2, %v2360_v62 }
 0x169   : > { %v2387_v3 = vsel %vm779_vm6, %v2372_v63, %v2374_v14  ;;  %v2403_v5 = vsel %vm779_vm6, %v2374_v14, %v2372_v63 }
 0x16a   : > { %2605 = vmatprep.subr.bf16.mxu0 %v2366_v33  ;;  %v2419_v54 = vmul.f32 %v2412_v36, %v2387_v3  ;;  %v2420_v57 = vmul.f32 %v2416_v1, %v2403_v5  ;;  %v3780_v33 = vld [vmem:[%s5595_s1 + $0x8] ss:$12 sps:$4 sm:$0xff]  }
 0x16b   : > { %2606 = vmatpush1.bf16.msra.mxu0 %v2365_v10  ;;  %v2376_v45 = vpop.permute.xlu0 %2375 }
 0x16c   : > { %v2378_v49 = vpop.permute.xlu1 %2377 }
 0x16d   : > { %v2388_v15 = vsel %vm779_vm6, %v2376_v45, %v2378_v49  ;;  %v2404_v17 = vsel %vm779_vm6, %v2378_v49, %v2376_v45 }
 0x16e   : > { %v2421_v18 = vmul.f32 %v2412_v36, %v2388_v15  ;;  %v2422_v19 = vmul.f32 %v2416_v1, %v2404_v17 }
 0x16f   : > { %v2380_v20 = vpop.permute.xlu0 %2379 }
 0x170   : > { %v2427_v21 = vpack.c.bf16 %v2421_v18, %v2419_v54  ;;  %v2382_v8 = vpop.permute.xlu1 %2381  ;;  %v2428_v22 = vpack.c.bf16 %v2422_v19, %v2420_v57 }
 0x171   : > { %v2389_v6 = vsel %vm779_vm6, %v2380_v20, %v2382_v8  ;;  %v2405_v12 = vsel %vm779_vm6, %v2382_v8, %v2380_v20 }
 0x172   : > { %2607 = vmatprep.subr.bf16.mxu0 %v2428_v22  ;;  %v2423_v25 = vmul.f32 %v2412_v36, %v2389_v6  ;;  %v2424_v26 = vmul.f32 %v2416_v1, %v2405_v12 }
 0x173   : > { %2608 = vmatpush1.bf16.msra.mxu0 %v2427_v21  ;;  %v2384_v16 = vpop.permute.xlu0 %2383  ;;  %v3648_v21 = vld [vmem:[%s5597_s3 + $0x2] sm:$0x3] }
 0x174   : > { %v2386_v7 = vpop.permute.xlu1 %2385 }
 0x175   : > { %v2390_v23 = vsel %vm779_vm6, %v2384_v16, %v2386_v7  ;;  %v2406_v24 = vsel %vm779_vm6, %v2386_v7, %v2384_v16 }
 0x176   : > { %v2425_v27 = vmul.f32 %v2412_v36, %v2390_v23  ;;  %v2426_v29 = vmul.f32 %v2416_v1, %v2406_v24  ;;  %v3781_v36 = vld [vmem:[%s5595_s1 + $0x20] ss:$12 sps:$4 sm:$0xff]  }
 0x177   : > { %v2436_v30 = vpop.permute.xlu0 %2435 }
 0x178   : > { %v2429_v32 = vpack.c.bf16 %v2425_v27, %v2423_v25  ;;  %v2438_v34 = vpop.permute.xlu1 %2437  ;;  %v2430_v35 = vpack.c.bf16 %v2426_v29, %v2424_v26 }
 0x179   : > { %v2451_v39 = vsel %vm845_vm7, %v2436_v30, %v2438_v34  ;;  %v2467_v40 = vsel %vm845_vm7, %v2438_v34, %v2436_v30 }
 0x17a   : > { %2609 = vmatprep.subr.bf16.mxu0 %v2430_v35  ;;  %v2483_v46 = vmul.f32 %v2476_v37, %v2451_v39  ;;  %v2484_v47 = vmul.f32 %v2480_v38, %v2467_v40 }
 0x17b   : > { %2610 = vmatpush1.bf16.msra.mxu0 %v2429_v32  ;;  %v2440_v41 = vpop.permute.xlu0 %2439 }
 0x17c   : > { %v2442_v42 = vpop.permute.xlu1 %2441 }
 0x17d   : > { %v2452_v43 = vsel %vm845_vm7, %v2440_v41, %v2442_v42  ;;  %v2468_v44 = vsel %vm845_vm7, %v2442_v42, %v2440_v41 }
 0x17e   : > { %v2485_v48 = vmul.f32 %v2476_v37, %v2452_v43  ;;  %v2486_v50 = vmul.f32 %v2480_v38, %v2468_v44  ;;  %2612 = vmatmul.mubr.bf16.vlgmr.msra.gmra.mrb[8].mxu0 %v4326_v53 }
 0x17f   : > { %v2444_v51 = vpop.permute.xlu0 %2443  ;;  %2621 = vmatprep.mubr.bf16.mxu0 %v4334_v56 }
 0x180   : > { %v2491_v52 = vpack.c.bf16 %v2485_v48, %v2483_v46  ;;  %v2446_v55 = vpop.permute.xlu1 %2445  ;;  %v2492_v58 = vpack.c.bf16 %v2486_v50, %v2484_v47 }
 0x181   : > { %v2453_v59 = vsel %vm845_vm7, %v2444_v51, %v2446_v55  ;;  %v2469_v60 = vsel %vm845_vm7, %v2446_v55, %v2444_v51 }
 0x182   : > { %2632 = vmatprep.subr.bf16.mxu0 %v2492_v58  ;;  %v2487_v63 = vmul.f32 %v2476_v37, %v2453_v59  ;;  %v2488_v53 = vmul.f32 %v2480_v38, %v2469_v60 }
 0x183   : > { %2633 = vmatpush1.bf16.msra.mxu0 %v2491_v52  ;;  %v2448_v61 = vpop.permute.xlu0 %2447 }
 0x184   : > { %v2450_v62 = vpop.permute.xlu1 %2449 }
 0x185   : > { %v2454_v0 = vsel %vm845_vm7, %v2448_v61, %v2450_v62  ;;  %v2470_v2 = vsel %vm845_vm7, %v2450_v62, %v2448_v61 }
 0x186   : > { %v2489_v9 = vmul.f32 %v2476_v37, %v2454_v0  ;;  %v2490_v10 = vmul.f32 %v2480_v38, %v2470_v2  ;;  %2622 = vmatmul.mubr.bf16.gmra.mrb[12].mxu0 %v4350_v4  ;;  %v4510_v4 = vstv %s343_s14 }
 0x187   : > { %2664 = vmatprep.mubr.bf16.mxu0 %v5604_v28 }
 0x188   : > { %v2493_v56 = vpack.c.bf16 %v2489_v9, %v2487_v63  ;;  %v2494_v14 = vpack.c.bf16 %v2490_v10, %v2488_v53  ;;  %v1151_v9 = vld [vmem:[%s5597_s3] sm:$0x3] }
 0x18a   : > { %2634 = vmatprep.subr.bf16.mxu0 %v2494_v14 }
 0x18b   : > { %2635 = vmatpush1.bf16.msra.mxu0 %v2493_v56 }
 0x18e   : > { %3688 = vmatmul.mubr.msk.bf16.vlgmr.msra.gmra.mrb[8].mxu0 %vm969_vm8, %v3780_v33  ;;  %v4732_v33 = vrot.slane %v1151_v9, %v4070_v11 }
 0x18f   : > { %2674 = vmatprep.mubr.bf16.mxu0 %v5604_v28 }
 0x196   : > { %3689 = vmatmul.mubr.msk.bf16.gmra.mrb[12].mxu0 %vm969_vm8, %v3781_v36  ;;  %v4735_v36 = vrot.slane %v1151_v9, %v4079_v13 }
 0x1e1   : > { %v1063_v1 = vpop.f32.mrb[0].mxu0 }
 0x1e2   : > { %vm1082_vm9 = vcmp.gt.f32.partialorder %v1063_v1, 0.0  ;;  %v1091_v3 = vmul.f32 %v4510_v4, %v1063_v1  ;;  %v1065_v5 = vpop.f32.mrb[1].mxu0 }
 0x1e3   : > { %vm1083_vm10 = vcmp.gt.f32.partialorder %v1065_v5, 0.0  ;;  %v1092_v45 = vmul.f32 %v4510_v4, %v1065_v5  ;;  %v1067_v49 = vpop.f32.mrb[2].mxu0 }
 0x1e4   : > { %v4514_v15 = vsel %vm1082_vm9, %v1063_v1, %v1091_v3  ;;  %vm1084_vm11 = vcmp.gt.f32.partialorder %v1067_v49, 0.0  ;;  %v1093_v17 = vmul.f32 %v4510_v4, %v1067_v49  ;;  %v1069_v54 = vpop.f32.mrb[3].mxu0 }
 0x1e5   : > { %v4517_v57 = vsel %vm1083_vm10, %v1065_v5, %v1092_v45  ;;  %vm1085_vm12 = vcmp.gt.f32.partialorder %v1069_v54, 0.0  ;;  %v1094_v18 = vmul.f32 %v4510_v4, %v1069_v54  ;;  %1127 = vrot.lane.b32.xlu0 %v4514_v15, %s3848_s17 }
 0x1e6   : > { %v4522_v19 = vsel %vm1084_vm11, %v1067_v49, %v1093_v17  ;;  %1381 = vrot.lane.b32.xlu1 %v4517_v57, %s3852_s21  ;;  %v4746_v17 = vld [vmem:[%s5596_s2 + $0x4] ss:$12 sps:$4 sm:$0xff]  }
 0x1e7   : > { %v4526_v20 = vsel %vm1085_vm12, %v1069_v54, %v1094_v18  ;;  %5630 = vst [vmem:[#allocation10_spill] sm:$0xff] %v4746_v17  ;;  %1747 = vmatprep.mubr.bf16.mxu1 %v4746_v17  ;;  %v1224_v17 = vrot.slane %v3648_v21, %v4070_v11 }
 0x1e9   : > { %1191 = vrot.lane.b32.xlu0 %v4514_v15, %s3849_s18  ;;  %v1073_v22 = vpop.f32.mrb[4].mxu0 }
 0x1ea   : > { %1445 = vrot.lane.b32.xlu1 %v4517_v57, %s3853_s22  ;;  %v1075_v6 = vpop.f32.mrb[5].mxu0  ;;  %v1095_v7 = vmul.f32 %v4510_v4, %v1073_v22  ;;  %vm1086_vm13 = vcmp.gt.f32.partialorder %v1073_v22, 0.0 }
 0x1eb   : > { %v1077_v12 = vpop.f32.mrb[6].mxu0  ;;  %v1096_v23 = vmul.f32 %v4510_v4, %v1075_v6  ;;  %vm1087_vm14 = vcmp.gt.f32.partialorder %v1075_v6, 0.0 }
 0x1ec   : > { %v1079_v16 = vpop.f32.mrb[7].mxu0  ;;  %v4594_v24 = vsel %vm1086_vm13, %v1073_v22, %v1095_v7  ;;  %v1097_v26 = vmul.f32 %v4510_v4, %v1077_v12  ;;  %vm1088_vm15 = vcmp.gt.f32.partialorder %v1077_v12, 0.0 }
 0x1ed   : > { %1255 = vrot.lane.b32.xlu0 %v4514_v15, %s3850_s19  ;;  %v4596_v25 = vsel %vm1087_vm14, %v1075_v6, %v1096_v23  ;;  %v1098_v29 = vmul.f32 %v4510_v4, %v1079_v16  ;;  %vm1089_vm9 = vcmp.gt.f32.partialorder %v1079_v16, 0.0 }
 0x1ee   : > { %1509 = vrot.lane.b32.xlu1 %v4517_v57, %s3854_s23  ;;  %v4615_v27 = vsel %vm1088_vm15, %v1077_v12, %v1097_v26 }
 0x1ef   : > { %v4634_v30 = vsel %vm1089_vm9, %v1079_v16, %v1098_v29 }
 0x1f1   : > { %1319 = vrot.lane.b32.xlu0 %v4514_v15, %s3851_s20 }
 0x1f2   : > { %1573 = vrot.lane.b32.xlu1 %v4517_v57, %s3855_s26 }
 0x1f5   : > { %1379 = vrot.lane.b32.xlu0 %v4514_v15, %s3852_s21 }
 0x1f6   : > { %1129 = vrot.lane.b32.xlu1 %v4522_v19, %s3848_s17 }
 0x1f9   : > { %1443 = vrot.lane.b32.xlu0 %v4514_v15, %s3853_s22 }
 0x1fa   : > { %1193 = vrot.lane.b32.xlu1 %v4522_v19, %s3849_s18 }
 0x1fd   : > { %1507 = vrot.lane.b32.xlu0 %v4514_v15, %s3854_s23 }
 0x1fe   : > { %1257 = vrot.lane.b32.xlu1 %v4522_v19, %s3850_s19 }
 0x201   : > { %1571 = vrot.lane.b32.xlu0 %v4514_v15, %s3855_s26 }
 0x202   : > { %1321 = vrot.lane.b32.xlu1 %v4522_v19, %s3851_s20 }
 0x205   : > { %1111 = vrot.lane.b32.xlu0 %v4517_v57, %s3848_s17 }
 0x206   : > { %1113 = vrot.lane.b32.xlu1 %v4526_v20, %s3848_s17 }
 0x209   : > { %1179 = vrot.lane.b32.xlu0 %v4517_v57, %s3849_s18 }
 0x20a   : > { %1181 = vrot.lane.b32.xlu1 %v4526_v20, %s3849_s18 }
 0x20d   : > { %1243 = vrot.lane.b32.xlu0 %v4517_v57, %s3850_s19 }
 0x20e   : > { %1245 = vrot.lane.b32.xlu1 %v4526_v20, %s3850_s19 }
 0x211   : > { %1307 = vrot.lane.b32.xlu0 %v4517_v57, %s3851_s20 }
 0x212   : > { %1309 = vrot.lane.b32.xlu1 %v4526_v20, %s3851_s20 }
 0x215   : > { %1383 = vrot.lane.b32.xlu0 %v4522_v19, %s3852_s21 }
 0x216   : > { %1385 = vrot.lane.b32.xlu1 %v4526_v20, %s3852_s21 }
 0x219   : > { %1447 = vrot.lane.b32.xlu0 %v4522_v19, %s3853_s22 }
 0x21a   : > { %1449 = vrot.lane.b32.xlu1 %v4526_v20, %s3853_s22 }
 0x21d   : > { %1511 = vrot.lane.b32.xlu0 %v4522_v19, %s3854_s23 }
 0x21e   : > { %1513 = vrot.lane.b32.xlu1 %v4526_v20, %s3854_s23 }
 0x221   : > { %1575 = vrot.lane.b32.xlu0 %v4522_v19, %s3855_s26 }
 0x222   : > { %1577 = vrot.lane.b32.xlu1 %v4526_v20, %s3855_s26 }
 0x225   : > { %1131 = vrot.lane.b32.xlu0 %v4594_v24, %s3848_s17 }
 0x226   : > { %1389 = vrot.lane.b32.xlu1 %v4596_v25, %s3852_s21 }
 0x229   : > { %1195 = vrot.lane.b32.xlu0 %v4594_v24, %s3849_s18 }
 0x22a   : > { %1453 = vrot.lane.b32.xlu1 %v4596_v25, %s3853_s22 }
 0x22d   : > { %1259 = vrot.lane.b32.xlu0 %v4594_v24, %s3850_s19 }
 0x22e   : > { %1517 = vrot.lane.b32.xlu1 %v4596_v25, %s3854_s23 }
 0x231   : > { %1323 = vrot.lane.b32.xlu0 %v4594_v24, %s3851_s20 }
 0x232   : > { %1581 = vrot.lane.b32.xlu1 %v4596_v25, %s3855_s26 }
 0x235   : > { %1387 = vrot.lane.b32.xlu0 %v4594_v24, %s3852_s21 }
 0x236   : > { %1133 = vrot.lane.b32.xlu1 %v4615_v27, %s3848_s17 }
 0x239   : > { %1451 = vrot.lane.b32.xlu0 %v4594_v24, %s3853_s22 }
 0x23a   : > { %1197 = vrot.lane.b32.xlu1 %v4615_v27, %s3849_s18 }
 0x23d   : > { %1515 = vrot.lane.b32.xlu0 %v4594_v24, %s3854_s23 }
 0x23e   : > { %1261 = vrot.lane.b32.xlu1 %v4615_v27, %s3850_s19 }
 0x241   : > { %1579 = vrot.lane.b32.xlu0 %v4594_v24, %s3855_s26 }
 0x242   : > { %1325 = vrot.lane.b32.xlu1 %v4615_v27, %s3851_s20 }
 0x245   : > { %1115 = vrot.lane.b32.xlu0 %v4596_v25, %s3848_s17 }
 0x246   : > { %1117 = vrot.lane.b32.xlu1 %v4634_v30, %s3848_s17 }
 0x249   : > { %1183 = vrot.lane.b32.xlu0 %v4596_v25, %s3849_s18 }
 0x24a   : > { %1185 = vrot.lane.b32.xlu1 %v4634_v30, %s3849_s18 }
 0x24d   : > { %1247 = vrot.lane.b32.xlu0 %v4596_v25, %s3850_s19 }
 0x24e   : > { %1249 = vrot.lane.b32.xlu1 %v4634_v30, %s3850_s19 }
 0x251   : > { %1311 = vrot.lane.b32.xlu0 %v4596_v25, %s3851_s20 }
 0x252   : > { %1313 = vrot.lane.b32.xlu1 %v4634_v30, %s3851_s20 }
 0x255   : > { %1391 = vrot.lane.b32.xlu0 %v4615_v27, %s3852_s21 }
 0x256   : > { %1393 = vrot.lane.b32.xlu1 %v4634_v30, %s3852_s21 }
 0x257   : > { %v1128_v31 = vpop.permute.xlu0 %1127 }
 0x258   : > { %v4656_v32 = vpop.permute.xlu1 %1381 }
 0x259   : > { %1455 = vrot.lane.b32.xlu0 %v4615_v27, %s3853_s22 }
 0x25a   : > { %1457 = vrot.lane.b32.xlu1 %v4634_v30, %s3853_s22 }
 0x25b   : > { %v4662_v34 = vpop.permute.xlu0 %1191 }
 0x25c   : > { %v4664_v35 = vpop.permute.xlu1 %1445 }
 0x25d   : > { %5624 = vst [vmem:[#allocation4_spill] sm:$0xff] %v4664_v35  ;;  %1519 = vrot.lane.b32.xlu0 %v4615_v27, %s3854_s23 }
 0x25e   : > { %1521 = vrot.lane.b32.xlu1 %v4634_v30, %s3854_s23 }
 0x25f   : > { %v4670_v37 = vpop.permute.xlu0 %1255 }
 0x260   : > { %v4672_v38 = vpop.permute.xlu1 %1509 }
 0x261   : > { %5625 = vst [vmem:[#allocation5_spill] sm:$0xff] %v4672_v38  ;;  %1583 = vrot.lane.b32.xlu0 %v4615_v27, %s3855_s26  ;;  %v2666_v39 = vpop.f32.mrb[8].mxu0 }
 0x262   : > { %vm2685_vm10 = vcmp.gt.f32.partialorder %v2666_v39, 0.0  ;;  %v2693_v40 = vmul.f32 %v2666_v39, %v4510_v4  ;;  %v2668_v41 = vpop.f32.mrb[9].mxu0  ;;  %1585 = vrot.lane.b32.xlu1 %v4634_v30, %s3855_s26 }
 0x263   : > { %vm2686_vm11 = vcmp.gt.f32.partialorder %v2668_v41, 0.0  ;;  %v2694_v42 = vmul.f32 %v2668_v41, %v4510_v4  ;;  %v4680_v43 = vpop.permute.xlu0 %1319  ;;  %v2670_v44 = vpop.f32.mrb[10].mxu0 }
 0x264   : > { %v4682_v46 = vsel %vm2685_vm10, %v2666_v39, %v2693_v40  ;;  %v4684_v47 = vpop.permute.xlu1 %1573  ;;  %v2672_v48 = vpop.f32.mrb[11].mxu0  ;;  %v2695_v51 = vmul.f32 %v2670_v44, %v4510_v4  ;;  %vm2687_vm12 = vcmp.gt.f32.partialorder %v2670_v44, 0.0 }
 0x265   : > { %5626 = vst [vmem:[#allocation6_spill] sm:$0xff] %v4684_v47  ;;  %v4686_v50 = vsel %vm2686_vm11, %v2668_v41, %v2694_v42  ;;  %2729 = vrot.lane.b32.xlu0 %v4682_v46, %s3848_s17  ;;  %v2696_v56 = vmul.f32 %v2672_v48, %v4510_v4  ;;  %vm2688_vm13 = vcmp.gt.f32.partialorder %v2672_v48, 0.0 }
 0x266   : > { %2983 = vrot.lane.b32.xlu1 %v4686_v50, %s3852_s21  ;;  %v4695_v58 = vsel %vm2687_vm12, %v2670_v44, %v2695_v51 }
 0x267   : > { %v4693_v52 = vpop.permute.xlu0 %1379  ;;  %v4739_v3 = vsel %vm2688_vm13, %v2672_v48, %v2696_v56 }
 0x268   : > { %v1130_v55 = vpop.permute.xlu1 %1129 }
 0x269   : > { %2793 = vrot.lane.b32.xlu0 %v4682_v46, %s3849_s18  ;;  %v2676_v59 = vpop.f32.mrb[12].mxu0 }
 0x26a   : > { %v4699_v60 = vpop.f32.mrb[13].mxu0  ;;  %2731 = vrot.lane.b32.xlu1 %v4695_v58, %s3848_s17  ;;  %v2697_v41 = vmul.f32 %v2676_v59, %v4510_v4  ;;  %vm2689_vm14 = vcmp.gt.f32.partialorder %v2676_v59, 0.0 }
 0x26b   : > { %v4703_v61 = vpop.permute.xlu0 %1443  ;;  %v2680_v62 = vpop.f32.mrb[14].mxu0  ;;  %vm2690_vm9 = vcmp.gt.f32.partialorder %v4699_v60, 0.0 }
 0x26c   : > { %5627 = vst [vmem:[#allocation7_spill] sm:$0xff] %v4703_v61  ;;  %v4705_v0 = vpop.permute.xlu1 %1193  ;;  %v4707_v2 = vpop.f32.mrb[15].mxu0  ;;  %v2699_v44 = vmul.f32 %v2680_v62, %v4510_v4  ;;  %vm2691_vm15 = vcmp.gt.f32.partialorder %v2680_v62, 0.0  ;;  %v4787_v51 = vsel %vm2689_vm14, %v2676_v59, %v2697_v41 }
 0x26d   : > { %2857 = vrot.lane.b32.xlu0 %v4682_v46, %s3850_s19  ;;  %vm2692_vm10 = vcmp.gt.f32.partialorder %v4707_v2, 0.0 }
 0x26e   : > { %2795 = vrot.lane.b32.xlu1 %v4695_v58, %s3849_s18  ;;  %v4791_v9 = vsel %vm2691_vm15, %v2680_v62, %v2699_v44 }
 0x26f   : > { %v4713_v63 = vpop.permute.xlu0 %1507 }
 0x270   : > { %5628 = vst [vmem:[#allocation8_spill] sm:$0xff] %v4713_v63  ;;  %v4715_v53 = vpop.permute.xlu1 %1257 }
 0x271   : > { %2921 = vrot.lane.b32.xlu0 %v4682_v46, %s3851_s20 }
 0x272   : > { %2859 = vrot.lane.b32.xlu1 %v4695_v58, %s3850_s19 }
 0x273   : > { %v4724_v10 = vpop.permute.xlu0 %1571 }
 0x274   : > { %5629 = vst [vmem:[#allocation9_spill] sm:$0xff] %v4724_v10  ;;  %v4727_v14 = vpop.permute.xlu1 %1321 }
 0x275   : > { %2981 = vrot.lane.b32.xlu0 %v4682_v46, %s3852_s21 }
 0x276   : > { %2923 = vrot.lane.b32.xlu1 %v4695_v58, %s3851_s20 }
 0x277   : > { %v1112_v1 = vpop.permute.xlu0 %1111 }
 0x278   : > { %v1147_v5 = vsel %vm380_vm0, %v1112_v1, %v1128_v31  ;;  %v1114_v45 = vpop.permute.xlu1 %1113  ;;  %v1135_v49 = vsel %vm380_vm0, %v1128_v31, %v1112_v1 }
 0x279   : > { %v1148_v54 = vsel %vm380_vm0, %v1114_v45, %v1130_v55  ;;  %2713 = vrot.lane.b32.xlu0 %v4686_v50, %s3848_s17  ;;  %v1136_v18 = vsel %vm380_vm0, %v1130_v55, %v1114_v45  ;;  %v1164_v22 = vmul.f32 %v4732_v33, %v1135_v49  ;;  %v1163_v6 = vmul.f32 %v4735_v36, %v1147_v5 }
 0x27a   : > { %2715 = vrot.lane.b32.xlu1 %v4739_v3, %s3848_s17  ;;  %v1166_v12 = vmul.f32 %v4732_v33, %v1136_v18  ;;  %v1165_v16 = vmul.f32 %v4735_v36, %v1148_v54  ;;  %v2698_v45 = vmul.f32 %v4699_v60, %v4510_v4  ;;  %v2700_v54 = vmul.f32 %v4707_v2, %v4510_v4 }
 0x27b   : > { %v4759_v7 = vpop.permute.xlu0 %1179 }
 0x27c   : > { %v4761_v23 = vpop.permute.xlu1 %1181  ;;  %v1172_v26 = vpack.c.bf16 %v1166_v12, %v1164_v22  ;;  %v1171_v29 = vpack.c.bf16 %v1165_v16, %v1163_v6  ;;  %v4828_v22 = vsel %vm2690_vm9, %v4699_v60, %v2698_v45  ;;  %v4833_v12 = vsel %vm2692_vm10, %v4707_v2, %v2700_v54 }
 0x27d   : > { %2781 = vrot.lane.b32.xlu0 %v4686_v50, %s3849_s18  ;;  %v1199_v47 = vsel %vm445_vm1, %v4662_v34, %v4759_v7  ;;  %v1212_v38 = vsel %vm445_vm1, %v4761_v23, %v4705_v0 }
 0x27e   : > { %1715 = vmatprep.subr.bf16.mxu1 %v1172_v26  ;;  %2783 = vrot.lane.b32.xlu1 %v4739_v3, %s3849_s18 }
 0x27f   : > { %v4767_v31 = vpop.permute.xlu0 %1243  ;;  %1716 = vmatpush1.bf16.msra.mxu1 %v1171_v29 }
 0x280   : > { %v4769_v39 = vpop.permute.xlu1 %1245 }
 0x281   : > { %2845 = vrot.lane.b32.xlu0 %v4686_v50, %s3850_s19 }
 0x282   : > { %2847 = vrot.lane.b32.xlu1 %v4739_v3, %s3850_s19 }
 0x283   : > { %v4775_v40 = vpop.permute.xlu0 %1307 }
 0x284   : > { %v4778_v42 = vpop.permute.xlu1 %1309 }
 0x285   : > { %2909 = vrot.lane.b32.xlu0 %v4686_v50, %s3851_s20 }
 0x286   : > { %2911 = vrot.lane.b32.xlu1 %v4739_v3, %s3851_s20 }
 0x287   : > { %v4785_v48 = vpop.permute.xlu0 %1383 }
 0x288   : > { %v4789_v55 = vpop.permute.xlu1 %1385 }
 0x289   : > { %2733 = vrot.lane.b32.xlu0 %v4787_v51, %s3848_s17 }
 0x28a   : > { %2735 = vrot.lane.b32.xlu1 %v4791_v9, %s3848_s17 }
 0x28b   : > { %v4797_v56 = vpop.permute.xlu0 %1447 }
 0x28c   : > { %v4799_v1 = vpop.permute.xlu1 %1449 }
 0x28d   : > { %5631 = vst [vmem:[#allocation11_spill] sm:$0xff] %v4799_v1  ;;  %2797 = vrot.lane.b32.xlu0 %v4787_v51, %s3849_s18 }
 0x28e   : > { %2799 = vrot.lane.b32.xlu1 %v4791_v9, %s3849_s18 }
 0x28f   : > { %v4805_v59 = vpop.permute.xlu0 %1511 }
 0x290   : > { %5632 = vst [vmem:[#allocation12_spill] sm:$0xff] %v4805_v59  ;;  %v4807_v62 = vpop.permute.xlu1 %1513 }
 0x291   : > { %5633 = vst [vmem:[#allocation13_spill] sm:$0xff] %v4807_v62  ;;  %2861 = vrot.lane.b32.xlu0 %v4787_v51, %s3850_s19  ;;  %v3649_v62 = vld [vmem:[%s5597_s3 + $0x4] sm:$0x3] }
 0x292   : > { %2863 = vrot.lane.b32.xlu1 %v4791_v9, %s3850_s19 }
 0x293   : > { %v4813_v5 = vpop.permute.xlu0 %1575 }
 0x294   : > { %5634 = vst [vmem:[#allocation14_spill] sm:$0xff] %v4813_v5  ;;  %v4817_v49 = vpop.permute.xlu1 %1577  ;;  %v1220_v5 = vrot.slane %v3648_v21, %v4079_v13 }
 0x295   : > { %5635 = vst [vmem:[#allocation15_spill] sm:$0xff] %v4817_v49  ;;  %2925 = vrot.lane.b32.xlu0 %v4787_v51, %s3851_s20  ;;  %v1200_v49 = vsel %vm445_vm1, %v4705_v0, %v4761_v23 }
 0x296   : > { %2927 = vrot.lane.b32.xlu1 %v4791_v9, %s3851_s20  ;;  %v1230_v63 = vmul.f32 %v1224_v17, %v1200_v49  ;;  %v1229_v49 = vmul.f32 %v1220_v5, %v1212_v38 }
 0x297   : > { %v1132_v18 = vpop.permute.xlu0 %1131 }
 0x298   : > { %v4830_v6 = vpop.permute.xlu1 %1389 }
 0x299   : > { %2717 = vrot.lane.b32.xlu0 %v4828_v22, %s3848_s17 }
 0x29a   : > { %2719 = vrot.lane.b32.xlu1 %v4833_v12, %s3848_s17 }
 0x29b   : > { %v1196_v4 = vpop.permute.xlu0 %1195 }
 0x29c   : > { %v4839_v16 = vpop.permute.xlu1 %1453 }
 0x29d   : > { %5636 = vst [vmem:[#allocation16_spill] sm:$0xff] %v4839_v16  ;;  %2985 = vrot.lane.b32.xlu0 %v4695_v58, %s3852_s21 }
 0x29e   : > { %2987 = vrot.lane.b32.xlu1 %v4739_v3, %s3852_s21 }
 0x29f   : > { %v4845_v60 = vpop.permute.xlu0 %1259 }
 0x2a0   : > { %v4847_v26 = vpop.permute.xlu1 %1517 }
 0x2a1   : > { %5637 = vst [vmem:[#allocation17_spill] sm:$0xff] %v4847_v26  ;;  %2785 = vrot.lane.b32.xlu0 %v4828_v22, %s3849_s18  ;;  %v1228_v26 = vmul.f32 %v1224_v17, %v1199_v47 }
 0x2a2   : > { %2787 = vrot.lane.b32.xlu1 %v4833_v12, %s3849_s18 }
 0x2a3   : > { %v4853_v2 = vpop.permute.xlu0 %1323 }
 0x2a4   : > { %v4855_v29 = vpop.permute.xlu1 %1581 }
 0x2a5   : > { %5638 = vst [vmem:[#allocation18_spill] sm:$0xff] %v4855_v29  ;;  %2849 = vrot.lane.b32.xlu0 %v4828_v22, %s3850_s19 }
 0x2a6   : > { %2991 = vrot.lane.b32.xlu1 %v4828_v22, %s3852_s21 }
 0x2a7   : > { %v4861_v41 = vpop.permute.xlu0 %1387 }
 0x2a8   : > { %v1134_v44 = vpop.permute.xlu1 %1133 }
 0x2a9   : > { %2913 = vrot.lane.b32.xlu0 %v4828_v22, %s3851_s20 }
 0x2aa   : > { %2851 = vrot.lane.b32.xlu1 %v4833_v12, %s3850_s19  ;;  %s5543_s19 = scalar_lea.vmem %s5603_s9, %s3719_s8 }
 0x2ab   : > { %v4867_v45 = vpop.permute.xlu0 %1451 }
 0x2ac   : > { %5639 = vst [vmem:[#allocation19_spill] sm:$0xff] %v4867_v45  ;;  %v1198_v54 = vpop.permute.xlu1 %1197 }
 0x2ad   : > { %2989 = vrot.lane.b32.xlu0 %v4787_v51, %s3852_s21 }
 0x2ae   : > { %3047 = vrot.lane.b32.xlu1 %v4686_v50, %s3853_s22 }
 0x2af   : > { %v4873_v28 = vpop.permute.xlu0 %1515 }
 0x2b0   : > { %5640 = vst [vmem:[#allocation20_spill] sm:$0xff] %v4873_v28  ;;  %v4878_v8 = vpop.permute.xlu1 %1261 }
 0x2b1   : > { %2993 = vrot.lane.b32.xlu0 %v4791_v9, %s3852_s21 }
 0x2b2   : > { %2915 = vrot.lane.b32.xlu1 %v4833_v12, %s3851_s20 }
 0x2b3   : > { %v4885_v29 = vpop.permute.xlu0 %1579 }
 0x2b4   : > { %5641 = vst [vmem:[#allocation21_spill] sm:$0xff] %v4885_v29  ;;  %v4890_v10 = vpop.permute.xlu1 %1325  ;;  %v1211_v29 = vsel %vm445_vm1, %v4759_v7, %v4662_v34 }
 0x2b5   : > { %3045 = vrot.lane.b32.xlu0 %v4682_v46, %s3853_s22 }
 0x2b6   : > { %3051 = vrot.lane.b32.xlu1 %v4739_v3, %s3853_s22 }
 0x2b7   : > { %v1116_v28 = vpop.permute.xlu0 %1115 }
 0x2b8   : > { %v1137_v59 = vsel %vm380_vm0, %v1132_v18, %v1116_v28  ;;  %v1149_v16 = vsel %vm380_vm0, %v1116_v28, %v1132_v18  ;;  %v1118_v21 = vpop.permute.xlu1 %1117  ;;  %v1227_v28 = vmul.f32 %v1220_v5, %v1211_v29  ;;  %v1288_v18 = vrot.slane %v3649_v62, %v4070_v11 }
 0x2b9   : > { %v1167_v45 = vmul.f32 %v4735_v36, %v1149_v16  ;;  %v1168_v34 = vmul.f32 %v4732_v33, %v1137_v59  ;;  %v1138_v47 = vsel %vm380_vm0, %v1134_v44, %v1118_v21  ;;  %v1150_v7 = vsel %vm380_vm0, %v1118_v21, %v1134_v44  ;;  %3049 = vrot.lane.b32.xlu0 %v4695_v58, %s3853_s22 }
 0x2ba   : > { %v1169_v0 = vmul.f32 %v4735_v36, %v1150_v7  ;;  %v1170_v23 = vmul.f32 %v4732_v33, %v1138_v47  ;;  %3055 = vrot.lane.b32.xlu1 %v4828_v22, %s3853_s22  ;;  %v1263_v59 = vsel %vm511_vm2, %v4670_v37, %v4767_v31  ;;  %v1264_v33 = vsel %vm511_vm2, %v4715_v53, %v4769_v39 }
 0x2bb   : > { %v1184_v16 = vpop.permute.xlu0 %1183  ;;  %v1236_v29 = vpack.c.bf16 %v1230_v63, %v1228_v26  ;;  %v1235_v63 = vpack.c.bf16 %v1229_v49, %v1227_v28  ;;  %v1294_v26 = vmul.f32 %v1288_v18, %v1264_v33 }
 0x2bc   : > { %v1201_v44 = vsel %vm445_vm1, %v1196_v4, %v1184_v16  ;;  %v1186_v21 = vpop.permute.xlu1 %1185  ;;  %v1174_v35 = vpack.c.bf16 %v1170_v23, %v1168_v34  ;;  %v1173_v61 = vpack.c.bf16 %v1169_v0, %v1167_v45  ;;  %v1213_v36 = vsel %vm445_vm1, %v1184_v16, %v1196_v4 }
 0x2bd   : > { %v1202_v38 = vsel %vm445_vm1, %v1198_v54, %v1186_v21  ;;  %3053 = vrot.lane.b32.xlu0 %v4787_v51, %s3853_s22  ;;  %v1232_v47 = vmul.f32 %v1224_v17, %v1201_v44  ;;  %v1214_v7 = vsel %vm445_vm1, %v1186_v21, %v1198_v54  ;;  %v1284_v34 = vrot.slane %v3649_v62, %v4079_v13 }
 0x2be   : > { %v1234_v1 = vmul.f32 %v1224_v17, %v1202_v38  ;;  %3111 = vrot.lane.b32.xlu1 %v4686_v50, %s3854_s23  ;;  %1717 = vmatprep.subr.bf16.mxu1 %v1174_v35  ;;  %v1275_v4 = vsel %vm511_vm2, %v4767_v31, %v4670_v37  ;;  %v1292_v0 = vmul.f32 %v1288_v18, %v1263_v59  ;;  %v3650_v35 = vld [vmem:[%s5597_s3 + $0x6] sm:$0x3] }
 0x2bf   : > { %v1248_v45 = vpop.permute.xlu0 %1247  ;;  %1718 = vmatpush1.bf16.msra.mxu1 %v1173_v61  ;;  %v1276_v17 = vsel %vm511_vm2, %v4769_v39, %v4715_v53  ;;  %v1231_v61 = vmul.f32 %v1220_v5, %v1213_v36  ;;  %v1233_v54 = vmul.f32 %v1220_v5, %v1214_v7  ;;  %v1291_v62 = vmul.f32 %v1284_v34, %v1275_v4 }
 0x2c0   : > { %1719 = vmatprep.subr.bf16.mxu1 %v1236_v29  ;;  %v1250_v23 = vpop.permute.xlu1 %1249  ;;  %v1238_v37 = vpack.c.bf16 %v1234_v1, %v1232_v47  ;;  %v1265_v31 = vsel %vm511_vm2, %v4845_v60, %v1248_v45  ;;  %v1293_v28 = vmul.f32 %v1284_v34, %v1276_v17  ;;  %v1352_v49 = vrot.slane %v3650_v35, %v4070_v11 }
 0x2c1   : > { %3057 = vrot.lane.b32.xlu0 %v4791_v9, %s3853_s22  ;;  %v1266_v53 = vsel %vm511_vm2, %v4878_v8, %v1250_v23  ;;  %v1327_v16 = vsel %vm577_vm3, %v4680_v43, %v4775_v40  ;;  %v1328_v1 = vsel %vm577_vm3, %v4727_v14, %v4778_v42  ;;  %v1237_v59 = vpack.c.bf16 %v1233_v54, %v1231_v61 }
 0x2c2   : > { %2995 = vrot.lane.b32.xlu1 %v4833_v12, %s3852_s21  ;;  %v1300_v44 = vpack.c.bf16 %v1294_v26, %v1292_v0  ;;  %v1277_v21 = vsel %vm511_vm2, %v1248_v45, %v4845_v60  ;;  %v1296_v33 = vmul.f32 %v1288_v18, %v1265_v31  ;;  %v1278_v36 = vsel %vm511_vm2, %v1250_v23, %v4878_v8 }
 0x2c3   : > { %v1312_v39 = vpop.permute.xlu0 %1311  ;;  %1720 = vmatpush1.bf16.msra.mxu1 %v1235_v63  ;;  %v1298_v38 = vmul.f32 %v1288_v18, %v1266_v53  ;;  %v1348_v47 = vrot.slane %v3650_v35, %v4079_v13  ;;  %v1299_v4 = vpack.c.bf16 %v1293_v28, %v1291_v62  ;;  %v1356_v0 = vmul.f32 %v1352_v49, %v1327_v16 }
 0x2c4   : > { %1721 = vmatprep.subr.bf16.mxu1 %v1238_v37  ;;  %v1314_v5 = vpop.permute.xlu1 %1313  ;;  %v1358_v63 = vmul.f32 %v1352_v49, %v1328_v1  ;;  %v1295_v60 = vmul.f32 %v1284_v34, %v1277_v21  ;;  %v1297_v45 = vmul.f32 %v1284_v34, %v1278_v36  ;;  %v1339_v8 = vsel %vm577_vm3, %v4775_v40, %v4680_v43 }
 0x2c5   : > { %3109 = vrot.lane.b32.xlu0 %v4682_v46, %s3854_s23  ;;  %v1340_v18 = vsel %vm577_vm3, %v4778_v42, %v4727_v14  ;;  %v1302_v23 = vpack.c.bf16 %v1298_v38, %v1296_v33  ;;  %v1329_v17 = vsel %vm577_vm3, %v4853_v2, %v1312_v39  ;;  %v1330_v34 = vsel %vm577_vm3, %v4890_v10, %v1314_v5 }
 0x2c6   : > { %3115 = vrot.lane.b32.xlu1 %v4739_v3, %s3854_s23  ;;  %v1355_v43 = vmul.f32 %v1348_v47, %v1339_v8  ;;  %v1357_v40 = vmul.f32 %v1348_v47, %v1340_v18  ;;  %v1301_v14 = vpack.c.bf16 %v1297_v45, %v1295_v60  ;;  %v1364_v42 = vpack.c.bf16 %v1358_v63, %v1356_v0 }
 0x2c7   : > { %v4969_v29 = vpop.permute.xlu0 %1391  ;;  %1722 = vmatpush1.bf16.msra.mxu1 %v1237_v59  ;;  %v1341_v61 = vsel %vm577_vm3, %v1312_v39, %v4853_v2  ;;  %v1360_v54 = vmul.f32 %v1352_v49, %v1329_v17  ;;  %v1342_v37 = vsel %vm577_vm3, %v1314_v5, %v4890_v10  ;;  %v1362_v31 = vmul.f32 %v1352_v49, %v1330_v34  ;;  %v3651_v5 = vld [vmem:[%s5597_s3 + $0xa] sm:$0x3] }
 0x2c8   : > { %1723 = vmatprep.subr.bf16.mxu1 %v1300_v44  ;;  %v4972_v7 = vpop.permute.xlu1 %1393  ;;  %v1359_v28 = vmul.f32 %v1348_v47, %v1341_v61  ;;  %v1361_v16 = vmul.f32 %v1348_v47, %v1342_v37  ;;  %v1363_v2 = vpack.c.bf16 %v1357_v40, %v1355_v43  ;;  %v1412_v59 = vsel %vm647_vm4, %v4789_v55, %v4785_v48  ;;  %v5646_v40 = vld [vmem:[#allocation4_spill] sm:$0xff] }
 0x2c9   : > { %3113 = vrot.lane.b32.xlu0 %v4695_v58, %s3854_s23  ;;  %v1366_v10 = vpack.c.bf16 %v1362_v31, %v1360_v54  ;;  %v1424_v21 = vrot.slane %v3651_v5, %v4070_v11  ;;  %v5642_v33 = vpack.c.bf16 %v4526_v20, %v4517_v57  ;;  %v1411_v38 = vsel %vm647_vm4, %v4656_v32, %v4693_v52 }
 0x2ca   : > { %3059 = vrot.lane.b32.xlu1 %v4833_v12, %s3853_s22  ;;  %v1365_v1 = vpack.c.bf16 %v1361_v16, %v1359_v28  ;;  %v1396_v47 = vsel %vm647_vm4, %v4785_v48, %v4789_v55  ;;  %v1374_v57 = vpack.c.bf16 %v4634_v30, %v4596_v25  ;;  %v1420_v20 = vrot.slane %v3651_v5, %v4079_v13  ;;  %v3652_v25 = vld [vmem:[%s5597_s3 + $0xc] sm:$0x3] }
 0x2cb   : > { %v4988_v26 = vpop.permute.xlu0 %1455  ;;  %1724 = vmatpush1.bf16.msra.mxu1 %v1299_v4  ;;  %v1430_v4 = vmul.f32 %v1424_v21, %v1412_v59  ;;  %v1414_v0 = vsel %vm647_vm4, %v4972_v7, %v4969_v29  ;;  %v5643_v60 = vpack.c.bf16 %v4522_v19, %v4514_v15  ;;  %v1395_v48 = vsel %vm647_vm4, %v4693_v52, %v4656_v32  ;;  %v5647_v59 = vld [vmem:[#allocation19_spill] sm:$0xff] }
 0x2cc   : > { %1725 = vmatprep.subr.bf16.mxu1 %v1302_v23  ;;  %v4990_v35 = vpop.permute.xlu1 %1457  ;;  %v1428_v55 = vmul.f32 %v1424_v21, %v1411_v38  ;;  %v1429_v30 = vmul.f32 %v1420_v20, %v1396_v47  ;;  %v1413_v8 = vsel %vm647_vm4, %v4830_v6, %v4861_v41  ;;  %v1373_v15 = vpack.c.bf16 %v4615_v27, %v4594_v24  ;;  %v5644_v23 = vld [vmem:[#allocation11_spill] sm:$0xff] }
 0x2cd   : > { %3117 = vrot.lane.b32.xlu0 %v4787_v51, %s3854_s23  ;;  %v1398_v19 = vsel %vm647_vm4, %v4969_v29, %v4972_v7  ;;  %v1434_v32 = vmul.f32 %v1424_v21, %v1414_v0  ;;  %v1427_v18 = vmul.f32 %v1420_v20, %v1395_v48  ;;  %v1476_v17 = vsel %vm713_vm5, %v5644_v23, %v4797_v56  ;;  %v5645_v7 = vld [vmem:[#allocation7_spill] sm:$0xff]  ;;  %v5650_v48 = vld [vmem:[#allocation13_spill] sm:$0xff] }
 0x2ce   : > { %3119 = vrot.lane.b32.xlu1 %v4828_v22, %s3854_s23  ;;  %v1436_v52 = vpack.c.bf16 %v1430_v4, %v1428_v55  ;;  %v1488_v43 = vrot.slane %v3652_v25, %v4070_v11  ;;  %v1397_v24 = vsel %vm647_vm4, %v4861_v41, %v4830_v6  ;;  %v1432_v27 = vmul.f32 %v1424_v21, %v1413_v8  ;;  %v5648_v21 = vld [vmem:[#allocation16_spill] sm:$0xff] }
 0x2cf   : > { %v5000_v53 = vpop.permute.xlu0 %1519  ;;  %1726 = vmatpush1.bf16.msra.mxu1 %v1301_v14  ;;  %v1475_v14 = vsel %vm713_vm5, %v5646_v40, %v5645_v7  ;;  %v1435_v61 = vpack.c.bf16 %v1429_v30, %v1427_v18  ;;  %v1460_v54 = vsel %vm713_vm5, %v4797_v56, %v5644_v23  ;;  %v1484_v41 = vrot.slane %v3652_v25, %v4079_v13 }
 0x2d0   : > { %1727 = vmatprep.subr.bf16.mxu1 %v1364_v42  ;;  %v5002_v62 = vpop.permute.xlu1 %1521  ;;  %v1433_v42 = vmul.f32 %v1420_v20, %v1398_v19  ;;  %v1494_v37 = vmul.f32 %v1488_v43, %v1476_v17  ;;  %v1438_v6 = vpack.c.bf16 %v1434_v32, %v1432_v27  ;;  %v1431_v31 = vmul.f32 %v1420_v20, %v1397_v24  ;;  %v5651_v19 = vld [vmem:[#allocation8_spill] sm:$0xff]  ;;  %v5652_v32 = vld [vmem:[#allocation5_spill] sm:$0xff] }
 0x2d1   : > { %3121 = vrot.lane.b32.xlu0 %v4791_v9, %s3854_s23  ;;  %v1478_v28 = vsel %vm713_vm5, %v4990_v35, %v4988_v26  ;;  %v1492_v56 = vmul.f32 %v1488_v43, %v1475_v14  ;;  %v1462_v47 = vsel %vm713_vm5, %v4988_v26, %v4990_v35  ;;  %v1461_v30 = vsel %vm713_vm5, %v5647_v59, %v5648_v21 }
 0x2d2   : > { %3123 = vrot.lane.b32.xlu1 %v4833_v12, %s3854_s23  ;;  %v1437_v38 = vpack.c.bf16 %v1433_v42, %v1431_v31  ;;  %v1498_v4 = vmul.f32 %v1488_v43, %v1478_v28  ;;  %v1497_v18 = vmul.f32 %v1484_v41, %v1462_v47  ;;  %v1523_v14 = vsel %vm779_vm6, %v5651_v19, %v5652_v32 }
 0x2d3   : > { %v5008_v39 = vpop.permute.xlu0 %1583  ;;  %1728 = vmatpush1.bf16.msra.mxu1 %v1363_v2  ;;  %v1459_v2 = vsel %vm713_vm5, %v5645_v7, %v5646_v40  ;;  %v1495_v7 = vmul.f32 %v1484_v41, %v1461_v30 }
 0x2d4   : > { %1729 = vmatprep.subr.bf16.mxu1 %v1366_v10  ;;  %v5010_v49 = vpop.permute.xlu1 %1585  ;;  %v3653_v10 = vld [vmem:[%s5597_s3 + $0xe] sm:$0x3]  ;;  %v1491_v20 = vmul.f32 %v1484_v41, %v1459_v2  ;;  %v1526_v2 = vsel %vm779_vm6, %v5000_v53, %v5002_v62 }
 0x2d5   : > { %3173 = vrot.lane.b32.xlu0 %v4682_v46, %s3855_s26  ;;  %v1552_v0 = vrot.slane %v3653_v10, %v4070_v11  ;;  %v1548_v27 = vrot.slane %v3653_v10, %v4079_v13  ;;  %v1501_v28 = vpack.c.bf16 %v1497_v18, %v1495_v7  ;;  %v5660_v7 = vld [vmem:[#allocation18_spill] sm:$0xff] }
 0x2d6   : > { %3175 = vrot.lane.b32.xlu1 %v4686_v50, %s3855_s26 }
 0x2d7   : > { %v5022_v44 = vpop.permute.xlu0 %2729  ;;  %1730 = vmatpush1.bf16.msra.mxu1 %v1365_v1  ;;  %v1493_v1 = vmul.f32 %v1484_v41, %v1460_v54  ;;  %v3654_v54 = vld [vmem:[%s5597_s3 + $0x10] sm:$0x3]  ;;  %v5654_v41 = vld [vmem:[#allocation17_spill] sm:$0xff] }
 0x2d8   : > { %1731 = vmatprep.subr.bf16.mxu1 %v5642_v33  ;;  %v5028_v36 = vpop.permute.xlu1 %2983  ;;  %v1477_v33 = vsel %vm713_vm5, %v5648_v21, %v5647_v59  ;;  %v5655_v59 = vld [vmem:[#allocation14_spill] sm:$0xff]  ;;  %v5656_v21 = vld [vmem:[#allocation15_spill] sm:$0xff]  ;;  %v1616_v47 = vrot.slane %v3654_v54, %v4070_v11 }
 0x2d9   : > { %3177 = vrot.lane.b32.xlu0 %v4695_v58, %s3855_s26  ;;  %v1496_v8 = vmul.f32 %v1488_v43, %v1477_v33  ;;  %v1499_v23 = vpack.c.bf16 %v1493_v1, %v1491_v20  ;;  %v1555_v1 = vmul.f32 %v1548_v27, %v1523_v14  ;;  %v1604_v33 = vsel %vm845_vm7, %v5656_v21, %v5655_v59 }
 0x2da   : > { %3179 = vrot.lane.b32.xlu1 %v4739_v3, %s3855_s26  ;;  %v1622_v30 = vmul.f32 %v1616_v47, %v1604_v33 }
 0x2db   : > { %v5046_v63 = vpop.permute.xlu0 %2793  ;;  %1732 = vmatpush1.bf16.msra.mxu1 %v5643_v60  ;;  %v5649_v60 = vld [vmem:[#allocation12_spill] sm:$0xff]  ;;  %v1502_v24 = vpack.c.bf16 %v1498_v4, %v1496_v8 }
 0x2dc   : > { %v5054_v45 = vpop.permute.xlu1 %2731  ;;  %1733 = vmatprep.subr.bf16.mxu1 %v1374_v57  ;;  %v1500_v57 = vpack.c.bf16 %v1494_v37, %v1492_v56  ;;  %v1540_v55 = vsel %vm779_vm6, %v5650_v48, %v5649_v60  ;;  %v1524_v17 = vsel %vm779_vm6, %v5649_v60, %v5650_v48  ;;  %v1561_v48 = vmul.f32 %v1548_v27, %v1526_v2 }
 0x2dd   : > { %3181 = vrot.lane.b32.xlu0 %v4787_v51, %s3855_s26  ;;  %v1558_v43 = vmul.f32 %v1552_v0, %v1540_v55  ;;  %v1557_v37 = vmul.f32 %v1548_v27, %v1524_v17 }
 0x2de   : > { %3183 = vrot.lane.b32.xlu1 %v4828_v22, %s3855_s26 }
 0x2df   : > { %v5074_v34 = vpop.permute.xlu0 %2857  ;;  %1734 = vmatpush1.bf16.msra.mxu1 %v1373_v15  ;;  %v1563_v55 = vpack.c.bf16 %v1557_v37, %v1555_v1 }
 0x2e0   : > { %v5080_v29 = vpop.permute.xlu1 %2795  ;;  %1735 = vmatprep.subr.bf16.mxu1 %v1436_v52  ;;  %v1539_v52 = vsel %vm779_vm6, %v5652_v32, %v5651_v19  ;;  %v1612_v19 = vrot.slane %v3654_v54, %v4079_v13 }
 0x2e1   : > { %3185 = vrot.lane.b32.xlu0 %v4791_v9, %s3855_s26  ;;  %v1556_v42 = vmul.f32 %v1552_v0, %v1539_v52  ;;  %v2753_v52 = vld [vmem:[%s5597_s3] sm:$0x3] }
 0x2e2   : > { %3187 = vrot.lane.b32.xlu1 %v4833_v12, %s3855_s26  ;;  %v5193_v37 = vrot.slane %v2753_v52, %v4070_v11 }
 0x2e3   : > { %v5096_v16 = vpop.permute.xlu0 %2921  ;;  %1736 = vmatpush1.bf16.msra.mxu1 %v1435_v61  ;;  %v1564_v10 = vpack.c.bf16 %v1558_v43, %v1556_v42  ;;  %v1590_v42 = vsel %vm845_vm7, %v5008_v39, %v5010_v49 }
 0x2e4   : > { %v5104_v5 = vpop.permute.xlu1 %2859  ;;  %1737 = vmatprep.subr.bf16.mxu1 %v1438_v6  ;;  %v5653_v6 = vld [vmem:[#allocation20_spill] sm:$0xff] }
 0x2e5   : > { %v1541_v31 = vsel %vm779_vm6, %v5654_v41, %v5653_v6  ;;  %v1525_v4 = vsel %vm779_vm6, %v5653_v6, %v5654_v41  ;;  %v5198_v41 = vld [vmem:[%s5596_s2] ss:$12 sps:$4 sm:$0xff]  }
 0x2e6   : > { %v1559_v32 = vmul.f32 %v1548_v27, %v1525_v4  ;;  %v5659_v27 = vld [vmem:[#allocation21_spill] sm:$0xff] }
 0x2e7   : > { %v2982_v25 = vpop.permute.xlu0 %2981  ;;  %1738 = vmatpush1.bf16.msra.mxu1 %v1437_v38 }
 0x2e8   : > { %v5121_v15 = vsel %vm647_vm4, %v2982_v25, %v5028_v36  ;;  %v5125_v26 = vsel %vm647_vm4, %v5028_v36, %v2982_v25  ;;  %v5127_v35 = vpop.permute.xlu1 %2923  ;;  %1739 = vmatprep.subr.bf16.mxu1 %v1500_v57  ;;  %v1542_v36 = vsel %vm779_vm6, %v5002_v62, %v5000_v53  ;;  %v1560_v57 = vmul.f32 %v1552_v0, %v1541_v31  ;;  %v5657_v53 = vld [vmem:[#allocation9_spill] sm:$0xff]  ;;  %v5658_v62 = vld [vmem:[#allocation6_spill] sm:$0xff] }
 0x2e9   : > { %v1562_v56 = vmul.f32 %v1552_v0, %v1542_v36  ;;  %v1603_v60 = vsel %vm845_vm7, %v5658_v62, %v5657_v53  ;;  %v1588_v25 = vsel %vm845_vm7, %v5655_v59, %v5656_v21  ;;  %v1606_v0 = vsel %vm845_vm7, %v5010_v49, %v5008_v39  ;;  %v5211_v49 = vld [vmem:[%s5596_s2 + $0x1c] ss:$12 sps:$4 sm:$0xff]  }
 0x2ea   : > { %v1620_v17 = vmul.f32 %v1616_v47, %v1603_v60  ;;  %v1605_v36 = vsel %vm845_vm7, %v5660_v7, %v5659_v27  ;;  %v1565_v14 = vpack.c.bf16 %v1561_v48, %v1559_v32  ;;  %v1626_v54 = vmul.f32 %v1616_v47, %v1606_v0 }
 0x2eb   : > { %v5139_v40 = vpop.permute.xlu0 %2713  ;;  %1740 = vmatpush1.bf16.msra.mxu1 %v1499_v23  ;;  %v1566_v8 = vpack.c.bf16 %v1562_v56, %v1560_v57  ;;  %v1587_v23 = vsel %vm845_vm7, %v5657_v53, %v5658_v62  ;;  %v1589_v56 = vsel %vm845_vm7, %v5659_v27, %v5660_v7  ;;  %v1625_v21 = vmul.f32 %v1612_v19, %v1590_v42 }
 0x2ec   : > { %v5144_v61 = vpop.permute.xlu1 %2715  ;;  %1741 = vmatprep.subr.bf16.mxu1 %v1502_v24  ;;  %v1621_v24 = vmul.f32 %v1612_v19, %v1588_v25  ;;  %v1628_v6 = vpack.c.bf16 %v1622_v30, %v1620_v17  ;;  %v1619_v31 = vmul.f32 %v1612_v19, %v1587_v23  ;;  %v1623_v53 = vmul.f32 %v1612_v19, %v1589_v56 }
 0x2ed   : > { %v2738_v2 = vsel %vm380_vm0, %v5054_v45, %v5144_v61  ;;  %v2749_v19 = vsel %vm380_vm0, %v5139_v40, %v5022_v44  ;;  %v2750_v32 = vsel %vm380_vm0, %v5144_v61, %v5054_v45  ;;  %v5661_v23 = vmov 0  }
 0x2ee   : > { %v1627_v59 = vpack.c.bf16 %v1621_v24, %v1619_v31  ;;  %v2768_v4 = vmul.f32 %v5193_v37, %v2738_v2 }
 0x2ef   : > { %v5158_v38 = vpop.permute.xlu0 %2781  ;;  %1742 = vmatpush1.bf16.msra.mxu1 %v1501_v28  ;;  %v2737_v28 = vsel %vm380_vm0, %v5022_v44, %v5139_v40  ;;  %v3690_v44 = vld [vmem:[%s5597_s3 + $0x2] sm:$0x3] }
 0x2f0   : > { %v5164_v20 = vpop.permute.xlu1 %2783  ;;  %1743 = vmatprep.subr.bf16.mxu1 %v1564_v10  ;;  %v1624_v10 = vmul.f32 %v1616_v47, %v1605_v36  ;;  %v2766_v33 = vmul.f32 %v5193_v37, %v2737_v28  ;;  %v1629_v47 = vpack.c.bf16 %v1625_v21, %v1623_v53  ;;  %v2826_v7 = vrot.slane %v3690_v44, %v4070_v11 }
 0x2f1   : > { %v2822_v36 = vrot.slane %v3690_v44, %v4079_v13  ;;  %v2802_v42 = vsel %vm445_vm1, %v5080_v29, %v5164_v20  ;;  %v2814_v31 = vsel %vm445_vm1, %v5164_v20, %v5080_v29  ;;  %v3789_v29 = vld [vmem:[%s5596_s2 + $0x20] ss:$12 sps:$4 sm:$0xff]  }
 0x2f2   : > { %v1630_v57 = vpack.c.bf16 %v1626_v54, %v1624_v10  ;;  %v2774_v48 = vpack.c.bf16 %v2768_v4, %v2766_v33 }
 0x2f3   : > { %v5179_v18 = vpop.permute.xlu0 %2845  ;;  %1744 = vmatpush1.bf16.msra.mxu1 %v1563_v55  ;;  %v5225_v55 = vld [vmem:[%s5596_s2 + $0x18] ss:$12 sps:$4 sm:$0xff]   ;;  %v2831_v20 = vmul.f32 %v2822_v36, %v2814_v31 }
 0x2f4   : > { %v5184_v43 = vpop.permute.xlu1 %2847  ;;  %1745 = vmatprep.subr.bf16.mxu1 %v1566_v8  ;;  %v2758_v8 = vrot.slane %v2753_v52, %v4079_v13  ;;  %v3788_v52 = vld [vmem:[%s5596_s2 + $0x8] ss:$12 sps:$4 sm:$0xff]  }
 0x2f6   : > { %v2765_v24 = vmul.f32 %v2758_v8, %v2749_v19  ;;  %v2767_v27 = vmul.f32 %v2758_v8, %v2750_v32 }
 0x2f7   : > { %v5206_v39 = vpop.permute.xlu0 %2909  ;;  %1746 = vmatpush1.bf16.msra.mxu1 %v1565_v14  ;;  %v2801_v14 = vsel %vm445_vm1, %v5046_v63, %v5158_v38 }
 0x2f8   : > { %v5216_v1 = vpop.permute.xlu1 %2911  ;;  %1768 = vmatprep.subr.bf16.mxu1 %v1628_v6  ;;  %v2773_v61 = vpack.c.bf16 %v2767_v27, %v2765_v24  ;;  %v2813_v6 = vsel %vm445_vm1, %v5158_v38, %v5046_v63  ;;  %v2830_v4 = vmul.f32 %v2826_v7, %v2801_v14  ;;  %v2865_v27 = vsel %vm511_vm2, %v5074_v34, %v5179_v18 }
 0x2f9   : > { %v2829_v38 = vmul.f32 %v2822_v36, %v2813_v6  ;;  %v2877_v14 = vsel %vm511_vm2, %v5179_v18, %v5074_v34 }
 0x2fa   : > { %1748 = vmatmul.mubr.bf16.vlgmr.msra.gmra.mrb[0].mxu1 %v5198_v41 }
 0x2fb   : > { %v2734_v62 = vpop.permute.xlu0 %2733  ;;  %1769 = vmatpush1.bf16.msra.mxu1 %v1627_v59  ;;  %1757 = vmatprep.mubr.bf16.mxu1 %v5211_v49  ;;  %v2837_v24 = vpack.c.bf16 %v2831_v20, %v2829_v38 }
 0x2fc   : > { %v2736_v60 = vpop.permute.xlu1 %2735  ;;  %1770 = vmatprep.subr.bf16.mxu1 %v1630_v57  ;;  %v2832_v57 = vmul.f32 %v2826_v7, %v2802_v42  ;;  %v2878_v42 = vsel %vm511_vm2, %v5184_v43, %v5104_v5 }
 0x2fe   : > { %v2838_v32 = vpack.c.bf16 %v2832_v57, %v2830_v4 }
 0x2ff   : > { %v5227_v25 = vpop.permute.xlu0 %2797  ;;  %1771 = vmatpush1.bf16.msra.mxu1 %v1629_v47 }
 0x300   : > { %v5229_v30 = vpop.permute.xlu1 %2799  ;;  %3317 = vmatprep.subr.bf16.mxu1 %v2774_v48 }
 0x302   : > { %1758 = vmatmul.mubr.bf16.gmra.mrb[4].mxu1 %v5225_v55 }
 0x303   : > { %v5239_v0 = vpop.permute.xlu0 %2861  ;;  %1800 = vmatprep.mubr.bf16.mxu1 %v5661_v23 }
 0x304   : > { %v5242_v17 = vpop.permute.xlu1 %2863 }
 0x307   : > { %v5250_v40 = vpop.permute.xlu0 %2925 }
 0x308   : > { %v5252_v45 = vpop.permute.xlu1 %2927 }
 0x30a   : > { %3661 = vmatmul.mubr.msk.bf16.vlgmr.msra.gmra.mrb[0].mxu1 %vm969_vm8, %v3788_v52  ;;  %v2866_v52 = vsel %vm511_vm2, %v5104_v5, %v5184_v43 }
 0x30b   : > { %3318 = vmatpush1.bf16.msra.mxu1 %v2773_v61  ;;  %v2718_v54 = vpop.permute.xlu0 %2717  ;;  %1810 = vmatprep.mubr.bf16.mxu1 %v5661_v23  ;;  %v5662_v61 = vld [vmem:[#allocation10_spill] sm:$0xff] }
 0x30c   : > { %v2739_v28 = vsel %vm380_vm0, %v2734_v62, %v2718_v54  ;;  %v2751_v2 = vsel %vm380_vm0, %v2718_v54, %v2734_v62  ;;  %v2720_v56 = vpop.permute.xlu1 %2719  ;;  %v3691_v62 = vld [vmem:[%s5597_s3 + $0x4] sm:$0x3]  ;;  %v3692_v54 = vld [vmem:[%s5597_s3 + $0x6] sm:$0x3] }
 0x30d   : > { %v2769_v10 = vmul.f32 %v2758_v8, %v2751_v2  ;;  %v2770_v59 = vmul.f32 %v5193_v37, %v2739_v28  ;;  %v2740_v21 = vsel %vm380_vm0, %v2736_v60, %v2720_v56  ;;  %v2752_v33 = vsel %vm380_vm0, %v2720_v56, %v2736_v60 }
 0x30e   : > { %v2771_v53 = vmul.f32 %v2758_v8, %v2752_v33  ;;  %v2772_v63 = vmul.f32 %v5193_v37, %v2740_v21  ;;  %v2886_v8 = vrot.slane %v3691_v62, %v4079_v13  ;;  %v2890_v37 = vrot.slane %v3691_v62, %v4070_v11 }
 0x30f   : > { %v5282_v47 = vpop.permute.xlu0 %2985  ;;  %v2954_v21 = vrot.slane %v3692_v54, %v4070_v11  ;;  %vm1845_vm0 = vcmask 15360  }
 0x310   : > { %v2775_v48 = vpack.c.bf16 %v2771_v53, %v2769_v10  ;;  %v5284_v19 = vpop.permute.xlu1 %2987  ;;  %v2776_v60 = vpack.c.bf16 %v2772_v63, %v2770_v59  ;;  %v2894_v18 = vmul.f32 %v2890_v37, %v2865_v27  ;;  %v2896_v43 = vmul.f32 %v2890_v37, %v2866_v52 }
 0x311   : > { %v2893_v4 = vmul.f32 %v2886_v8, %v2877_v14  ;;  %v2942_v27 = vsel %vm577_vm3, %v5216_v1, %v5127_v35 }
 0x312   : > { %3662 = vmatmul.mubr.msk.bf16.gmra.mrb[4].mxu1 %vm969_vm8, %v3789_v29  ;;  %3319 = vmatprep.subr.bf16.mxu1 %v2776_v60  ;;  %v2929_v29 = vsel %vm577_vm3, %v5096_v16, %v5206_v39  ;;  %v2941_v60 = vsel %vm577_vm3, %v5206_v39, %v5096_v16 }
 0x313   : > { %v2786_v44 = vpop.permute.xlu0 %2785  ;;  %3320 = vmatpush1.bf16.msra.mxu1 %v2775_v48  ;;  %3349 = vmatprep.mubr.bf16.mxu1 %v5662_v61  ;;  %v2950_v48 = vrot.slane %v3692_v54, %v4079_v13 }
 0x314   : > { %v2803_v6 = vsel %vm445_vm1, %v5227_v25, %v2786_v44  ;;  %v2815_v31 = vsel %vm445_vm1, %v2786_v44, %v5227_v25  ;;  %v2788_v28 = vpop.permute.xlu1 %2787  ;;  %3321 = vmatprep.subr.bf16.mxu1 %v2838_v32  ;;  %v2895_v25 = vmul.f32 %v2886_v8, %v2878_v42  ;;  %v2958_v32 = vmul.f32 %v2954_v21, %v2929_v29 }
 0x315   : > { %v2833_v2 = vmul.f32 %v2822_v36, %v2815_v31  ;;  %v2834_v56 = vmul.f32 %v2826_v7, %v2803_v6  ;;  %v2804_v34 = vsel %vm445_vm1, %v5229_v30, %v2788_v28  ;;  %v2816_v5 = vsel %vm445_vm1, %v2788_v28, %v5229_v30 }
 0x316   : > { %v2835_v10 = vmul.f32 %v2822_v36, %v2816_v5  ;;  %v2836_v59 = vmul.f32 %v2826_v7, %v2804_v34  ;;  %v2930_v30 = vsel %vm577_vm3, %v5127_v35, %v5216_v1  ;;  %v2902_v7 = vpack.c.bf16 %v2896_v43, %v2894_v18 }
 0x317   : > { %v2850_v33 = vpop.permute.xlu0 %2849  ;;  %3322 = vmatpush1.bf16.msra.mxu1 %v2837_v24  ;;  %v2901_v62 = vpack.c.bf16 %v2895_v25, %v2893_v4  ;;  %v2960_v52 = vmul.f32 %v2954_v21, %v2930_v30  ;;  %v2957_v28 = vmul.f32 %v2950_v48, %v2941_v60 }
 0x318   : > { %v2839_v57 = vpack.c.bf16 %v2835_v10, %v2833_v2  ;;  %v5314_v53 = vpop.permute.xlu1 %2991  ;;  %v2840_v63 = vpack.c.bf16 %v2836_v59, %v2834_v56  ;;  %v2867_v36 = vsel %vm511_vm2, %v5239_v0, %v2850_v33  ;;  %v2879_v38 = vsel %vm511_vm2, %v2850_v33, %v5239_v0 }
 0x319   : > { %v2897_v61 = vmul.f32 %v2886_v8, %v2879_v38  ;;  %v2898_v14 = vmul.f32 %v2890_v37, %v2867_v36  ;;  %v2959_v2 = vmul.f32 %v2950_v48, %v2942_v27  ;;  %v2966_v35 = vpack.c.bf16 %v2960_v52, %v2958_v32 }
 0x31a   : > { %3323 = vmatprep.subr.bf16.mxu1 %v2840_v63  ;;  %v2974_v63 = vpack.c.bf16 %v4739_v3, %v4686_v50  ;;  %v2973_v36 = vpack.c.bf16 %v4695_v58, %v4682_v46  ;;  %v2976_v3 = vpack.c.bf16 %v4833_v12, %v4828_v22  ;;  %v3694_v46 = vld [vmem:[%s5597_s3 + $0xc] sm:$0x3]  ;;  %v2975_v58 = vpack.c.bf16 %v4791_v9, %v4787_v51 }
 0x31b   : > { %v2914_v20 = vpop.permute.xlu0 %2913  ;;  %3324 = vmatpush1.bf16.msra.mxu1 %v2839_v57  ;;  %v3693_v57 = vld [vmem:[%s5597_s3 + $0xa] sm:$0x3]  ;;  %v3086_v52 = vrot.slane %v3694_v46, %v4079_v13 }
 0x31c   : > { %v2852_v24 = vpop.permute.xlu1 %2851  ;;  %3325 = vmatprep.subr.bf16.mxu1 %v2902_v7  ;;  %v2931_v1 = vsel %vm577_vm3, %v5250_v40, %v2914_v20  ;;  %v2998_v7 = vsel %vm647_vm4, %v5282_v47, %v5284_v19  ;;  %v3022_v38 = vrot.slane %v3693_v57, %v4079_v13 }
 0x31d   : > { %v2868_v0 = vsel %vm511_vm2, %v5242_v17, %v2852_v24  ;;  %v2880_v44 = vsel %vm511_vm2, %v2852_v24, %v5242_v17  ;;  %v2943_v17 = vsel %vm577_vm3, %v2914_v20, %v5250_v40  ;;  %v2962_v43 = vmul.f32 %v2954_v21, %v2931_v1 }
 0x31e   : > { %v2899_v42 = vmul.f32 %v2886_v8, %v2880_v44  ;;  %v2900_v54 = vmul.f32 %v2890_v37, %v2868_v0  ;;  %v2965_v37 = vpack.c.bf16 %v2959_v2, %v2957_v28  ;;  %v2961_v18 = vmul.f32 %v2950_v48, %v2943_v17 }
 0x31f   : > { %v2990_v6 = vpop.permute.xlu0 %2989  ;;  %3326 = vmatpush1.bf16.msra.mxu1 %v2901_v62  ;;  %v3090_v0 = vrot.slane %v3694_v46, %v4070_v11 }
 0x320   : > { %v2903_v16 = vpack.c.bf16 %v2899_v42, %v2897_v61  ;;  %v5337_v39 = vpop.permute.xlu1 %3047  ;;  %v2904_v31 = vpack.c.bf16 %v2900_v54, %v2898_v14  ;;  %v2999_v32 = vsel %vm647_vm4, %v2990_v6, %v5314_v53  ;;  %v3015_v12 = vsel %vm647_vm4, %v5314_v53, %v2990_v6 }
 0x321   : > { %v3033_v27 = vmul.f32 %v3022_v38, %v2999_v32 }
 0x322   : > { %3327 = vmatprep.subr.bf16.mxu1 %v2904_v31 }
 0x323   : > { %v2994_v56 = vpop.permute.xlu0 %2993  ;;  %3328 = vmatpush1.bf16.msra.mxu1 %v2903_v16 }
 0x324   : > { %v2916_v8 = vpop.permute.xlu1 %2915  ;;  %3329 = vmatprep.subr.bf16.mxu1 %v2966_v35 }
 0x325   : > { %v2932_v34 = vsel %vm577_vm3, %v5252_v45, %v2916_v8  ;;  %v2944_v5 = vsel %vm577_vm3, %v2916_v8, %v5252_v45  ;;  %v3014_v45 = vsel %vm647_vm4, %v5284_v19, %v5282_v47  ;;  %v3029_v47 = vmul.f32 %v3022_v38, %v5121_v15 }
 0x326   : > { %v2963_v10 = vmul.f32 %v2950_v48, %v2944_v5  ;;  %v2964_v59 = vmul.f32 %v2954_v21, %v2932_v34  ;;  %v3026_v21 = vrot.slane %v3693_v57, %v4070_v11  ;;  %v3031_v48 = vmul.f32 %v3022_v38, %v2998_v7 }
 0x327   : > { %v3046_v33 = vpop.permute.xlu0 %3045  ;;  %3330 = vmatpush1.bf16.msra.mxu1 %v2965_v37 }
 0x328   : > { %v2967_v4 = vpack.c.bf16 %v2963_v10, %v2961_v18  ;;  %v3052_v25 = vpop.permute.xlu1 %3051  ;;  %v2968_v40 = vpack.c.bf16 %v2964_v59, %v2962_v43  ;;  %v3032_v50 = vmul.f32 %v3026_v21, %v3014_v45  ;;  %v3030_v62 = vmul.f32 %v3026_v21, %v5125_v26 }
 0x329   : > { %v3037_v24 = vpack.c.bf16 %v3031_v48, %v3029_v47  ;;  %v3077_v51 = vsel %vm713_vm5, %v5337_v39, %v3046_v33  ;;  %v3034_v61 = vmul.f32 %v3026_v21, %v3015_v12  ;;  %v3061_v6 = vsel %vm713_vm5, %v3046_v33, %v5337_v39 }
 0x32a   : > { %3331 = vmatprep.subr.bf16.mxu1 %v2968_v40  ;;  %v3038_v22 = vpack.c.bf16 %v3032_v50, %v3030_v62  ;;  %v3094_v31 = vmul.f32 %v3090_v0, %v3077_v51  ;;  %v3093_v8 = vmul.f32 %v3086_v52, %v3061_v6 }
 0x32b   : > { %v3050_v29 = vpop.permute.xlu0 %3049  ;;  %3332 = vmatpush1.bf16.msra.mxu1 %v2967_v4 }
 0x32c   : > { %v3056_v30 = vpop.permute.xlu1 %3055  ;;  %3333 = vmatprep.subr.bf16.mxu1 %v2974_v63  ;;  %v3078_v26 = vsel %vm713_vm5, %v3052_v25, %v3050_v29  ;;  %v3062_v9 = vsel %vm713_vm5, %v3050_v29, %v3052_v25 }
 0x32d   : > { %v3096_v14 = vmul.f32 %v3090_v0, %v3078_v26  ;;  %v3095_v28 = vmul.f32 %v3086_v52, %v3062_v9 }
 0x32f   : > { %v3054_v20 = vpop.permute.xlu0 %3053  ;;  %3334 = vmatpush1.bf16.msra.mxu1 %v2973_v36  ;;  %v3102_v34 = vpack.c.bf16 %v3096_v14, %v3094_v31  ;;  %v3101_v39 = vpack.c.bf16 %v3095_v28, %v3093_v8 }
 0x330   : > { %v3112_v60 = vpop.permute.xlu1 %3111  ;;  %3335 = vmatprep.subr.bf16.mxu1 %v2976_v3  ;;  %v3063_v17 = vsel %vm713_vm5, %v3054_v20, %v3056_v30  ;;  %v3079_v37 = vsel %vm713_vm5, %v3056_v30, %v3054_v20 }
 0x331   : > { %v3097_v18 = vmul.f32 %v3086_v52, %v3063_v17  ;;  %v3098_v33 = vmul.f32 %v3090_v0, %v3079_v37 }
 0x333   : > { %v3058_v19 = vpop.permute.xlu0 %3057  ;;  %3336 = vmatpush1.bf16.msra.mxu1 %v2975_v58 }
 0x334   : > { %v2996_v44 = vpop.permute.xlu1 %2995  ;;  %3337 = vmatprep.subr.bf16.mxu1 %v3038_v22 }
 0x335   : > { %v3000_v15 = vsel %vm647_vm4, %v2994_v56, %v2996_v44  ;;  %v3016_v53 = vsel %vm647_vm4, %v2996_v44, %v2994_v56  ;;  %v3695_v56 = vld [vmem:[%s5597_s3 + $0xe] sm:$0x3] }
 0x336   : > { %v3035_v42 = vmul.f32 %v3022_v38, %v3000_v15  ;;  %v3036_v54 = vmul.f32 %v3026_v21, %v3016_v53  ;;  %v3154_v43 = vrot.slane %v3695_v56, %v4070_v11  ;;  %v3150_v21 = vrot.slane %v3695_v56, %v4079_v13 }
 0x337   : > { %v3110_v16 = vpop.permute.xlu0 %3109  ;;  %3338 = vmatpush1.bf16.msra.mxu1 %v3037_v24 }
 0x338   : > { %v3039_v2 = vpack.c.bf16 %v3035_v42, %v3033_v27  ;;  %v3116_v35 = vpop.permute.xlu1 %3115  ;;  %v3040_v1 = vpack.c.bf16 %v3036_v54, %v3034_v61  ;;  %v3141_v4 = vsel %vm779_vm6, %v3112_v60, %v3110_v16  ;;  %v3125_v7 = vsel %vm779_vm6, %v3110_v16, %v3112_v60 }
 0x339   : > { %v3158_v36 = vmul.f32 %v3154_v43, %v3141_v4  ;;  %v3157_v48 = vmul.f32 %v3150_v21, %v3125_v7  ;;  %v3790_v4 = vld [vmem:[%s5596_s2 + $0x8] ss:$12 sps:$4 sm:$0xff]  }
 0x33a   : > { %3339 = vmatprep.subr.bf16.mxu1 %v3040_v1 }
 0x33b   : > { %v3114_v5 = vpop.permute.xlu0 %3113  ;;  %3340 = vmatpush1.bf16.msra.mxu1 %v3039_v2 }
 0x33c   : > { %v3142_v10 = vsel %vm779_vm6, %v3116_v35, %v3114_v5  ;;  %v3060_v59 = vpop.permute.xlu1 %3059  ;;  %3341 = vmatprep.subr.bf16.mxu1 %v3102_v34  ;;  %v3126_v57 = vsel %vm779_vm6, %v3114_v5, %v3116_v35 }
 0x33d   : > { %v3064_v25 = vsel %vm713_vm5, %v3058_v19, %v3060_v59  ;;  %v3080_v40 = vsel %vm713_vm5, %v3060_v59, %v3058_v19  ;;  %v3160_v63 = vmul.f32 %v3154_v43, %v3142_v10  ;;  %v3159_v20 = vmul.f32 %v3150_v21, %v3126_v57 }
 0x33e   : > { %v3099_v45 = vmul.f32 %v3086_v52, %v3064_v25  ;;  %v3100_v29 = vmul.f32 %v3090_v0, %v3080_v40  ;;  %v3696_v0 = vld [vmem:[%s5597_s3 + $0x10] sm:$0x3]  ;;  %v3791_v25 = vld [vmem:[%s5596_s2 + $0x20] ss:$12 sps:$4 sm:$0xff]  }
 0x33f   : > { %v3118_v30 = vpop.permute.xlu0 %3117  ;;  %3342 = vmatpush1.bf16.msra.mxu1 %v3101_v39  ;;  %v3166_v62 = vpack.c.bf16 %v3160_v63, %v3158_v36  ;;  %v3165_v22 = vpack.c.bf16 %v3159_v20, %v3157_v48  ;;  %v3214_v15 = vrot.slane %v3696_v0, %v4079_v13  ;;  %v3218_v53 = vrot.slane %v3696_v0, %v4070_v11  ;;  %v1837_v0 = vld [vmem:[%s5598_s4] sm:$0xff] }
 0x340   : > { %v3103_v38 = vpack.c.bf16 %v3099_v45, %v3097_v18  ;;  %v3120_v50 = vpop.permute.xlu1 %3119  ;;  %v3104_v3 = vpack.c.bf16 %v3100_v29, %v3098_v33 }
 0x341   : > { %v3127_v32 = vsel %vm779_vm6, %v3118_v30, %v3120_v50  ;;  %v3143_v46 = vsel %vm779_vm6, %v3120_v50, %v3118_v30 }
 0x342   : > { %3343 = vmatprep.subr.bf16.mxu1 %v3104_v3  ;;  %v3161_v26 = vmul.f32 %v3150_v21, %v3127_v32  ;;  %v3162_v19 = vmul.f32 %v3154_v43, %v3143_v46 }
 0x343   : > { %v3122_v58 = vpop.permute.xlu0 %3121  ;;  %3344 = vmatpush1.bf16.msra.mxu1 %v3103_v38 }
 0x344   : > { %v3124_v47 = vpop.permute.xlu1 %3123  ;;  %3345 = vmatprep.subr.bf16.mxu1 %v3166_v62 }
 0x345   : > { %v3128_v12 = vsel %vm779_vm6, %v3122_v58, %v3124_v47  ;;  %v3144_v60 = vsel %vm779_vm6, %v3124_v47, %v3122_v58 }
 0x346   : > { %v3163_v24 = vmul.f32 %v3150_v21, %v3128_v12  ;;  %v3164_v27 = vmul.f32 %v3154_v43, %v3144_v60 }
 0x347   : > { %v3174_v52 = vpop.permute.xlu0 %3173  ;;  %3346 = vmatpush1.bf16.msra.mxu1 %v3165_v22 }
 0x348   : > { %v3167_v44 = vpack.c.bf16 %v3163_v24, %v3161_v26  ;;  %v3176_v51 = vpop.permute.xlu1 %3175  ;;  %v3168_v9 = vpack.c.bf16 %v3164_v27, %v3162_v19  ;;  %v1838_v27 = vld [vmem:[%s5598_s4 + $0x8] sm:$0xff] }
 0x349   : > { %v3189_v61 = vsel %vm845_vm7, %v3174_v52, %v3176_v51  ;;  %v3205_v14 = vsel %vm845_vm7, %v3176_v51, %v3174_v52  ;;  %v1839_v51 = vld [vmem:[%s5598_s4 + $0x10] sm:$0xff] }
 0x34a   : > { %3347 = vmatprep.subr.bf16.mxu1 %v3168_v9  ;;  %v3221_v31 = vmul.f32 %v3214_v15, %v3189_v61  ;;  %v3222_v28 = vmul.f32 %v3218_v53, %v3205_v14 }
 0x34b   : > { %v3178_v42 = vpop.permute.xlu0 %3177  ;;  %3348 = vmatpush1.bf16.msra.mxu1 %v3167_v44 }
 0x34c   : > { %v3180_v54 = vpop.permute.xlu1 %3179 }
 0x34d   : > { %v3190_v6 = vsel %vm845_vm7, %v3178_v42, %v3180_v54  ;;  %v3206_v16 = vsel %vm845_vm7, %v3180_v54, %v3178_v42  ;;  %v1840_v42 = vld [vmem:[%s5598_s4 + $0x18] sm:$0xff] }
 0x34e   : > { %v3223_v2 = vmul.f32 %v3214_v15, %v3190_v6  ;;  %v3224_v35 = vmul.f32 %v3218_v53, %v3206_v16  ;;  %3350 = vmatmul.mubr.bf16.vlgmr.msra.gmra.mrb[8].mxu1 %v5198_v41 }
 0x34f   : > { %v3182_v1 = vpop.permute.xlu0 %3181  ;;  %3359 = vmatprep.mubr.bf16.mxu1 %v5211_v49 }
 0x350   : > { %v3229_v11 = vpack.c.bf16 %v3223_v2, %v3221_v31  ;;  %v3184_v17 = vpop.permute.xlu1 %3183  ;;  %v3230_v56 = vpack.c.bf16 %v3224_v35, %v3222_v28 }
 0x351   : > { %v3191_v8 = vsel %vm845_vm7, %v3182_v1, %v3184_v17  ;;  %v3207_v37 = vsel %vm845_vm7, %v3184_v17, %v3182_v1 }
 0x352   : > { %3370 = vmatprep.subr.bf16.mxu1 %v3230_v56  ;;  %v3225_v43 = vmul.f32 %v3214_v15, %v3191_v8  ;;  %v3226_v41 = vmul.f32 %v3218_v53, %v3207_v37 }
 0x353   : > { %v3186_v34 = vpop.permute.xlu0 %3185  ;;  %3371 = vmatpush1.bf16.msra.mxu1 %v3229_v11 }
 0x354   : > { %v3188_v5 = vpop.permute.xlu1 %3187 }
 0x355   : > { %v3192_v39 = vsel %vm845_vm7, %v3186_v34, %v3188_v5  ;;  %v3208_v18 = vsel %vm845_vm7, %v3188_v5, %v3186_v34  ;;  %v1859_v5 = vld [vmem:[%s5599_s5] sm:$0x1] }
 0x356   : > { %v3227_v10 = vmul.f32 %v3214_v15, %v3192_v39  ;;  %v3228_v59 = vmul.f32 %v3218_v53, %v3208_v18  ;;  %3360 = vmatmul.mubr.bf16.gmra.mrb[12].mxu1 %v5225_v55 }
 0x357   : > { %3402 = vmatprep.mubr.bf16.mxu1 %v5661_v23 }
 0x358   : > { %v3231_v49 = vpack.c.bf16 %v3227_v10, %v3225_v43  ;;  %v3232_v33 = vpack.c.bf16 %v3228_v59, %v3226_v41  ;;  %v1863_v41 = vld [vmem:[%s5600_s6 + $0x8] sm:$0xff]  ;;  %v1862_v10 = vld [vmem:[%s5600_s6] sm:$0xff] }
 0x35a   : > { %3372 = vmatprep.subr.bf16.mxu1 %v3232_v33  ;;  %v1864_v33 = vld [vmem:[%s5600_s6 + $0x10] sm:$0xff] }
 0x35b   : > { %3373 = vmatpush1.bf16.msra.mxu1 %v3231_v49  ;;  %v1865_v49 = vld [vmem:[%s5600_s6 + $0x18] sm:$0xff] }
 0x35e   : > { %3703 = vmatmul.mubr.msk.bf16.vlgmr.msra.gmra.mrb[8].mxu1 %vm969_vm8, %v3790_v4 }
 0x35f   : > { %3412 = vmatprep.mubr.bf16.mxu1 %v5661_v23 }
 0x366   : > { %3704 = vmatmul.mubr.msk.bf16.gmra.mrb[12].mxu1 %vm969_vm8, %v3791_v25 }
 0x3dd   : > { %v5428_v55 = vpop.f32.mrb[0].mxu1 }
 0x3de   : > { %v5430_v40 = vpop.f32.mrb[1].mxu1 }
 0x3df   : > { %v1821_v57 = vadd.f32 %v5430_v40, %v5428_v55  ;;  %v5434_v63 = vpop.f32.mrb[2].mxu1 }
 0x3e0   : > { %v5436_v45 = vpop.f32.mrb[3].mxu1 }
 0x3e1   : > { %v1824_v23 = vadd.f32 %v5436_v45, %v5434_v63  ;;  %1822 = vadd.xlane.f32.xlu0 %v1821_v57 }
 0x3e3   : > { %1825 = vadd.xlane.f32.xlu1 %v1824_v23 }
 0x3e5   : > { %v5440_v29 = vpop.f32.mrb[4].mxu1 }
 0x3e6   : > { %v5442_v21 = vpop.f32.mrb[5].mxu1 }
 0x3e7   : > { %v1827_v30 = vadd.f32 %v5442_v21, %v5440_v29  ;;  %v5446_v7 = vpop.f32.mrb[6].mxu1 }
 0x3e8   : > { %v5448_v36 = vpop.f32.mrb[7].mxu1 }
 0x3e9   : > { %v1830_v38 = vadd.f32 %v5448_v36, %v5446_v7  ;;  %1828 = vadd.xlane.f32.xlu1 %v1827_v30 }
 0x3ed   : > { %1831 = vadd.xlane.f32.xlu1 %v1830_v38 }
 0x431   : > { %v5452_v50 = vpop.f32.mrb[8].mxu1 }
 0x432   : > { %v5454_v3 = vpop.f32.mrb[9].mxu1 }
 0x433   : > { %v3423_v20 = vadd.f32 %v5454_v3, %v5452_v50  ;;  %v5458_v62 = vpop.f32.mrb[10].mxu1 }
 0x434   : > { %v5460_v48 = vpop.f32.mrb[11].mxu1 }
 0x435   : > { %v3426_v32 = vadd.f32 %v5460_v48, %v5458_v62  ;;  %3424 = vadd.xlane.f32.xlu0 %v3423_v20 }
 0x439   : > { %3427 = vadd.xlane.f32.xlu0 %v3426_v32  ;;  %v5464_v46 = vpop.f32.mrb[12].mxu1 }
 0x43a   : > { %v5466_v58 = vpop.f32.mrb[13].mxu1 }
 0x43b   : > { %v3429_v47 = vadd.f32 %v5466_v58, %v5464_v46  ;;  %v5470_v22 = vpop.f32.mrb[14].mxu1 }
 0x43c   : > { %v5472_v12 = vpop.f32.mrb[15].mxu1 }
 0x43d   : > { %v3432_v60 = vadd.f32 %v5472_v12, %v5470_v22  ;;  %3430 = vadd.xlane.f32.xlu0 %v3429_v47 }
 0x441   : > { %3433 = vadd.xlane.f32.xlu0 %v3432_v60 }
 0x46e   : > { %v1823_v26 = vpop.xlane.xlu0 %1822 }
 0x46f   : > { %v1833_v52 = vmul.f32 0.00390625, %v1823_v26 }
 0x470   : > { %v1826_v19 = vpop.xlane.xlu1 %1825 }
 0x471   : > { %v1834_v24 = vmul.f32 0.00390625, %v1826_v19  ;;  %v1841_v15 = vmul.f32 %v1837_v0, %v1833_v52 }
 0x473   : > { %v1842_v44 = vmul.f32 %v1838_v27, %v1834_v24  ;;  %v1846_v6 = vsel %vm1845_vm0, %v1841_v15, 0.0 }
 0x475   : > { %v1847_v61 = vsel %vm1845_vm0, %v1842_v44, 0.0 }
 0x476   : > { %v1829_v9 = vpop.xlane.xlu1 %1828  ;;  %v1848_v28 = vadd.f32 %v1847_v61, %v1846_v6 }
 0x477   : > { %v1835_v53 = vmul.f32 0.00390625, %v1829_v9 }
 0x479   : > { %v1843_v14 = vmul.f32 %v1839_v51, %v1835_v53 }
 0x47a   : > { %v1832_v54 = vpop.xlane.xlu1 %1831 }
 0x47b   : > { %v1849_v16 = vsel %vm1845_vm0, %v1843_v14, 0.0  ;;  %v1836_v31 = vmul.f32 0.00390625, %v1832_v54 }
 0x47c   : > { %v1850_v35 = vadd.f32 %v1849_v16, %v1848_v28 }
 0x47d   : > { %v1844_v2 = vmul.f32 %v1840_v42, %v1836_v31 }
 0x47f   : > { %v1851_v1 = vsel %vm1845_vm0, %v1844_v2, 0.0 }
 0x480   : > { %v1852_v11 = vadd.f32 %v1851_v1, %v1850_v35 }
 0x482   : > { %v1853_v17 = vrot.slane %v1852_v11, 4 }
 0x484   : > { %v1854_v56 = vadd.f32 %v1853_v17, %v1852_v11 }
 0x486   : > { %v1855_v8 = vrot.slane %v1854_v56, 2 }
 0x488   : > { %v1856_v37 = vadd.f32 %v1855_v8, %v1854_v56 }
 0x48a   : > { %v1857_v34 = vrot.slane %v1856_v37, 1 }
 0x48c   : > { %v1858_v39 = vadd.f32 %v1857_v34, %v1856_v37 }
 0x48e   : > { %v1860_v18 = vadd.f32 %v1859_v5, %v1858_v39 }
 0x490   : > { %v1861_v43 = vmax.f32 %v1860_v18, 0.0 }
 0x492   : > { %v1869_v59 = vrot.slane %v1861_v43, %v4079_v13 }
 0x494   : > { %v1871_v4 = vmul.f32 %v1869_v59, %v1863_v41  ;;  %v1870_v25 = vmul.f32 %v1869_v59, %v1862_v10  ;;  %v1873_v30 = vmul.f32 %v1869_v59, %v1865_v49  ;;  %v1872_v38 = vmul.f32 %v1869_v59, %v1864_v33 }
 0x496   : > { %v1877_v57 = vsel %vm1845_vm0, %v1871_v4, 0.0  ;;  %v1874_v23 = vsel %vm1845_vm0, %v1870_v25, 0.0  ;;  %v1883_v20 = vsel %vm1845_vm0, %v1873_v30, 0.0  ;;  %v1880_v32 = vsel %vm1845_vm0, %v1872_v38, 0.0  ;;  %v1888_v30 = vld [vmem:[%s5601_s7 + $0x10] sm:$0xff] }
 0x497   : > { %1878 = vadd.xlane.f32.xlu0 %v1877_v57  ;;  %1875 = vadd.xlane.f32.xlu1 %v1874_v23  ;;  %v1889_v23 = vld [vmem:[%s5601_s7 + $0x18] sm:$0xff] }
 0x49b   : > { %1884 = vadd.xlane.f32.xlu0 %v1883_v20  ;;  %1881 = vadd.xlane.f32.xlu1 %v1880_v32 }
 0x4c2   : > { %v3425_v47 = vpop.xlane.xlu0 %3424 }
 0x4c3   : > { %v3435_v26 = vmul.f32 0.00390625, %v3425_v47 }
 0x4c5   : > { %v3443_v44 = vmul.f32 %v3435_v26, %v1837_v0 }
 0x4c6   : > { %v3428_v60 = vpop.xlane.xlu0 %3427 }
 0x4c7   : > { %v3436_v19 = vmul.f32 0.00390625, %v3428_v60  ;;  %v3447_v14 = vsel %vm1845_vm0, %v3443_v44, 0.0 }
 0x4c9   : > { %v3444_v24 = vmul.f32 %v3436_v19, %v1838_v27 }
 0x4ca   : > { %v3431_v52 = vpop.xlane.xlu0 %3430 }
 0x4cb   : > { %v3437_v9 = vmul.f32 0.00390625, %v3431_v52  ;;  %v3448_v15 = vsel %vm1845_vm0, %v3444_v24, 0.0 }
 0x4cc   : > { %v3449_v16 = vadd.f32 %v3448_v15, %v3447_v14 }
 0x4cd   : > { %v3445_v53 = vmul.f32 %v3437_v9, %v1839_v51  ;;  %v3460_v51 = vld [vmem:[%s5599_s5] sm:$0x1] }
 0x4ce   : > { %v3434_v61 = vpop.xlane.xlu0 %3433 }
 0x4cf   : > { %v3450_v54 = vsel %vm1845_vm0, %v3445_v53, 0.0  ;;  %v3438_v6 = vmul.f32 0.00390625, %v3434_v61 }
 0x4d0   : > { %v3451_v28 = vadd.f32 %v3450_v54, %v3449_v16 }
 0x4d1   : > { %v3446_v31 = vmul.f32 %v3438_v6, %v1840_v42 }
 0x4d3   : > { %v3452_v2 = vsel %vm1845_vm0, %v3446_v31, 0.0 }
 0x4d4   : > { %v3453_v35 = vadd.f32 %v3452_v2, %v3451_v28 }
 0x4d6   : > { %v3454_v1 = vrot.slane %v3453_v35, 4 }
 0x4d8   : > { %v3455_v27 = vadd.f32 %v3454_v1, %v3453_v35 }
 0x4da   : > { %v3456_v11 = vrot.slane %v3455_v27, 2 }
 0x4dc   : > { %v3457_v0 = vadd.f32 %v3456_v11, %v3455_v27 }
 0x4de   : > { %v3458_v17 = vrot.slane %v3457_v0, 1 }
 0x4e0   : > { %v3459_v56 = vadd.f32 %v3458_v17, %v3457_v0 }
 0x4e2   : > { %v3461_v8 = vadd.f32 %v3460_v51, %v3459_v56 }
 0x4e4   : > { %v3462_v37 = vmax.f32 %v3461_v8, 0.0 }
 0x4e6   : > { %v3470_v34 = vrot.slane %v3462_v37, %v4079_v13  ;;  %v1887_v13 = vld [vmem:[%s5601_s7 + $0x8] sm:$0xff] }
 0x4e8   : > { %v3472_v5 = vmul.f32 %v3470_v34, %v1863_v41  ;;  %v3471_v42 = vmul.f32 %v3470_v34, %v1862_v10  ;;  %v3474_v43 = vmul.f32 %v3470_v34, %v1865_v49  ;;  %v3473_v59 = vmul.f32 %v3470_v34, %v1864_v33  ;;  %v1886_v41 = vld [vmem:[%s5601_s7] sm:$0xff] }
 0x4ea   : > { %v3478_v39 = vsel %vm1845_vm0, %v3472_v5, 0.0  ;;  %v3475_v18 = vsel %vm1845_vm0, %v3471_v42, 0.0  ;;  %v3484_v4 = vsel %vm1845_vm0, %v3474_v43, 0.0  ;;  %v3481_v25 = vsel %vm1845_vm0, %v3473_v59, 0.0 }
 0x4eb   : > { %3479 = vadd.xlane.f32.xlu0 %v3478_v39  ;;  %3476 = vadd.xlane.f32.xlu1 %v3475_v18 }
 0x4ef   : > { %3485 = vadd.xlane.f32.xlu0 %v3484_v4  ;;  %3482 = vadd.xlane.f32.xlu1 %v3481_v25 }
 0x524   : > { %v1879_v10 = vpop.xlane.xlu0 %1878  ;;  %v1876_v57 = vpop.xlane.xlu1 %1875 }
 0x525   : > { %v1891_v49 = vadd.f32 %v1887_v13, %v1879_v10  ;;  %v1890_v33 = vadd.f32 %v1886_v41, %v1876_v57 }
 0x527   : > { %v3664_v38 = vmul.f32 -1.442695, %v1891_v49  ;;  %v3663_v20 = vmul.f32 -1.442695, %v1890_v33 }
 0x528   : > { %v1885_v32 = vpop.xlane.xlu0 %1884  ;;  %v1882_v47 = vpop.xlane.xlu1 %1881 }
 0x529   : > { %3792 = vpow2.f32 %v3664_v38  ;;  %v1893_v60 = vadd.f32 %v1889_v23, %v1885_v32  ;;  %v1892_v26 = vadd.f32 %v1888_v30, %v1882_v47  ;;  %v3824_v32 = vld [vmem:[%s3926_s16 + $0x10] sm:$0xff] }
 0x52a   : > { %3794 = vpow2.f32 %v3663_v20 }
 0x52b   : > { %v3666_v19 = vmul.f32 -1.442695, %v1893_v60  ;;  %v3665_v24 = vmul.f32 -1.442695, %v1892_v26  ;;  %v3826_v60 = vld [vmem:[%s3926_s16] sm:$0xff] }
 0x52d   : > { %3796 = vpow2.f32 %v3666_v19  ;;  %v3827_v19 = vld [vmem:[%s3926_s16 + $0x8] sm:$0xff] }
 0x52e   : > { %3798 = vpow2.f32 %v3665_v24 }
 0x533   : > { %v3793_v52 = vpop.eup %3792 }
 0x534   : > { %v3795_v44 = vpop.eup %3794  ;;  %v1907_v9 = vadd.f32 1.0, %v3793_v52 }
 0x535   : > { %v1906_v15 = vadd.f32 1.0, %v3795_v44  ;;  %v3828_v44 = vld [vmem:[%s3926_s16 + $0x20] sm:$0xff] }
 0x536   : > { %3800 = vrcp.f32 %v1907_v9 }
 0x537   : > { %v3797_v53 = vpop.eup %3796  ;;  %3802 = vrcp.f32 %v1906_v15  ;;  %v3829_v15 = vld [vmem:[%s3926_s16 + $0x28] sm:$0xff] }
 0x538   : > { %v3799_v61 = vpop.eup %3798  ;;  %v1909_v54 = vadd.f32 1.0, %v3797_v53 }
 0x539   : > { %v1908_v14 = vadd.f32 1.0, %v3799_v61 }
 0x53b   : > { %3804 = vrcp.f32 %v1908_v14 }
 0x53c   : > { %3806 = vrcp.f32 %v1909_v54 }
 0x540   : > { %v3801_v6 = vpop.eup %3800 }
 0x541   : > { %v3803_v16 = vpop.eup %3802  ;;  %1925 = vperm.xlu0 %3771, %v3801_v6   ;;  %v3830_v6 = vld [vmem:[%s3926_s16 + $0x30] sm:$0xff] }
 0x542   : > { %1920 = vperm.xlu1 %3770, %v3803_v16   ;;  %v3831_v16 = vld [vmem:[%s3926_s16 + $0x38] sm:$0xff] }
 0x545   : > { %v3805_v31 = vpop.eup %3804 }
 0x546   : > { %1930 = vperm.xlu1 %3770, %v3805_v31   ;;  %v3807_v28 = vpop.eup %3806 }
 0x54a   : > { %1935 = vperm.xlu1 %3770, %v3807_v28  }
 0x578   : > { %v3480_v2 = vpop.xlane.xlu0 %3479  ;;  %v3477_v35 = vpop.xlane.xlu1 %3476 }
 0x579   : > { %v3492_v1 = vadd.f32 %v3480_v2, %v1887_v13  ;;  %v3491_v27 = vadd.f32 %v3477_v35, %v1886_v41 }
 0x57b   : > { %v3706_v11 = vmul.f32 -1.442695, %v3492_v1  ;;  %v3705_v0 = vmul.f32 -1.442695, %v3491_v27  ;;  %v3833_v1 = vld [vmem:[%s3926_s16 + $0x48] sm:$0xff] }
 0x57c   : > { %v3486_v17 = vpop.xlane.xlu0 %3485  ;;  %v3483_v51 = vpop.xlane.xlu1 %3482 }
 0x57d   : > { %3808 = vpow2.f32 %v3706_v11  ;;  %v3493_v56 = vadd.f32 %v3483_v51, %v1888_v30  ;;  %v3494_v8 = vadd.f32 %v3486_v17, %v1889_v23  ;;  %v3835_v51 = vld [vmem:[%s3926_s16 + $0x58] sm:$0xff] }
 0x57e   : > { %3810 = vpow2.f32 %v3705_v0 }
 0x57f   : > { %v3707_v37 = vmul.f32 -1.442695, %v3493_v56  ;;  %v3708_v34 = vmul.f32 -1.442695, %v3494_v8 }
 0x581   : > { %3812 = vpow2.f32 %v3707_v37 }
 0x582   : > { %3814 = vpow2.f32 %v3708_v34 }
 0x587   : > { %v3809_v5 = vpop.eup %3808 }
 0x588   : > { %v3811_v42 = vpop.eup %3810  ;;  %v3508_v18 = vadd.f32 1.0, %v3809_v5  ;;  %v3837_v5 = vld [vmem:[%s3926_s16 + $0x68] sm:$0xff] }
 0x589   : > { %v3507_v39 = vadd.f32 1.0, %v3811_v42 }
 0x58b   : > { %3816 = vrcp.f32 %v3507_v39  ;;  %v3813_v43 = vpop.eup %3812 }
 0x58c   : > { %3818 = vrcp.f32 %v3508_v18  ;;  %v3509_v59 = vadd.f32 1.0, %v3813_v43  ;;  %v3815_v4 = vpop.eup %3814  ;;  %v3838_v43 = vld [vmem:[%s3926_s16 + $0x70] sm:$0xff] }
 0x58d   : > { %v3510_v25 = vadd.f32 1.0, %v3815_v4  ;;  %v3839_v4 = vld [vmem:[%s3926_s16 + $0x78] sm:$0xff] }
 0x58e   : > { %3820 = vrcp.f32 %v3509_v59 }
 0x58f   : > { %3822 = vrcp.f32 %v3510_v25 }
 0x595   : > { %v3817_v13 = vpop.eup %3816 }
 0x596   : > { %3521 = vperm.xlu1 %3770, %v3817_v13   ;;  %v3819_v41 = vpop.eup %3818 }
 0x598   : > { %v3821_v10 = vpop.eup %3820 }
 0x599   : > { %v3823_v57 = vpop.eup %3822 }
 0x59a   : > { %3526 = vperm.xlu1 %3770, %v3819_v41  }
 0x59e   : > { %3531 = vperm.xlu1 %3770, %v3821_v10  }
 0x5a2   : > { %3536 = vperm.xlu1 %3770, %v3823_v57  }
 0x5c0   : > { %v1926_v49 = vpop.permute.xlu0 %1925 }
 0x5c1   : > { %v1940_v33 = vmul.f32 %v1926_v49, %v5434_v63  ;;  %v1941_v23 = vmul.f32 %v1926_v49, %v5436_v45  ;;  %v1921_v30 = vpop.permute.xlu1 %1920  ;;  %v3825_v45 = vld [vmem:[%s3926_s16 + $0x18] sm:$0xff] }
 0x5c2   : > { %v1938_v38 = vmul.f32 %v1921_v30, %v5428_v55  ;;  %v1939_v20 = vmul.f32 %v1921_v30, %v5430_v40 }
 0x5c3   : > { %v1948_v63 = vadd.f32 %v3824_v32, %v1940_v33  ;;  %v1949_v47 = vadd.f32 %v3825_v45, %v1941_v23 }
 0x5c4   : > { %v1946_v26 = vadd.f32 %v3826_v60, %v1938_v38  ;;  %v1947_v24 = vadd.f32 %v3827_v19, %v1939_v20 }
 0x5c5   : > { %1956 = vst [vmem:[%s5543_s19 + $0x10] sm:$0xff] %v1948_v63  ;;  %1957 = vst [vmem:[%s5543_s19 + $0x18] sm:$0xff] %v1949_v47  ;;  %v1931_v52 = vpop.permute.xlu1 %1930 }
 0x5c6   : > { %1954 = vst [vmem:[%s5543_s19] sm:$0xff] %v1946_v26  ;;  %1955 = vst [vmem:[%s5543_s19 + $0x8] sm:$0xff] %v1947_v24  ;;  %v1942_v55 = vmul.f32 %v1931_v52, %v5440_v29  ;;  %v1943_v40 = vmul.f32 %v1931_v52, %v5442_v21 }
 0x5c8   : > { %v1950_v9 = vadd.f32 %v3828_v44, %v1942_v55  ;;  %v1951_v53 = vadd.f32 %v3829_v15, %v1943_v40 }
 0x5c9   : > { %v1936_v61 = vpop.permute.xlu1 %1935 }
 0x5ca   : > { %1958 = vst [vmem:[%s5543_s19 + $0x20] sm:$0xff] %v1950_v9  ;;  %1959 = vst [vmem:[%s5543_s19 + $0x28] sm:$0xff] %v1951_v53  ;;  %v1944_v14 = vmul.f32 %v1936_v61, %v5446_v7  ;;  %v1945_v54 = vmul.f32 %v1936_v61, %v5448_v36  ;;  %v3832_v7 = vld [vmem:[%s3926_s16 + $0x40] sm:$0xff] }
 0x5cc   : > { %v1952_v29 = vadd.f32 %v3830_v6, %v1944_v14  ;;  %v1953_v21 = vadd.f32 %v3831_v16, %v1945_v54 }
 0x5ce   : > { %1960 = vst [vmem:[%s5543_s19 + $0x30] sm:$0xff] %v1952_v29  ;;  %1961 = vst [vmem:[%s5543_s19 + $0x38] sm:$0xff] %v1953_v21 }
 0x615   : > { %v3522_v31 = vpop.permute.xlu1 %3521 }
 0x616   : > { %v3539_v28 = vmul.f32 %v3522_v31, %v5452_v50  ;;  %v3540_v2 = vmul.f32 %v3522_v31, %v5454_v3  ;;  %v3834_v50 = vld [vmem:[%s3926_s16 + $0x50] sm:$0xff] }
 0x618   : > { %v3547_v35 = vadd.f32 %v3832_v7, %v3539_v28  ;;  %v3548_v36 = vadd.f32 %v3833_v1, %v3540_v2 }
 0x619   : > { %v3527_v27 = vpop.permute.xlu1 %3526 }
 0x61a   : > { %3709 = vst [vmem:[%s5543_s19 + $0x40] sm:$0xff] %v3547_v35  ;;  %3710 = vst [vmem:[%s5543_s19 + $0x48] sm:$0xff] %v3548_v36  ;;  %v3541_v11 = vmul.f32 %v3527_v27, %v5458_v62  ;;  %v3542_v0 = vmul.f32 %v3527_v27, %v5460_v48  ;;  %v3836_v62 = vld [vmem:[%s3926_s16 + $0x60] sm:$0xff] }
 0x61c   : > { %v3549_v17 = vadd.f32 %v3834_v50, %v3541_v11  ;;  %v3550_v3 = vadd.f32 %v3835_v51, %v3542_v0 }
 0x61d   : > { %v3532_v56 = vpop.permute.xlu1 %3531 }
 0x61e   : > { %3711 = vst [vmem:[%s5543_s19 + $0x50] sm:$0xff] %v3549_v17  ;;  %3712 = vst [vmem:[%s5543_s19 + $0x58] sm:$0xff] %v3550_v3  ;;  %v3543_v8 = vmul.f32 %v3532_v56, %v5464_v46  ;;  %v3544_v37 = vmul.f32 %v3532_v56, %v5466_v58 }
 0x620   : > { %v3551_v34 = vadd.f32 %v3836_v62, %v3543_v8  ;;  %v3552_v48 = vadd.f32 %v3837_v5, %v3544_v37 }
 0x621   : > { %v3537_v42 = vpop.permute.xlu1 %3536 }
 0x622   : > { %3713 = vst [vmem:[%s5543_s19 + $0x60] sm:$0xff] %v3551_v34  ;;  %3714 = vst [vmem:[%s5543_s19 + $0x68] sm:$0xff] %v3552_v48  ;;  %v3545_v39 = vmul.f32 %v3537_v42, %v5470_v22  ;;  %v3546_v18 = vmul.f32 %v3537_v42, %v5472_v12 }
 0x624   : > { %v3553_v59 = vadd.f32 %v3838_v43, %v3545_v39  ;;  %v3554_v25 = vadd.f32 %v3839_v4, %v3546_v18 }
 0x626   : > { %3715 = vst [vmem:[%s5543_s19 + $0x70] sm:$0xff] %v3553_v59  ;;  %3716 = vst [vmem:[%s5543_s19 + $0x78] sm:$0xff] %v3554_v25 }
 0x627 PF: > { %s20_s11 = sadd.s32 1, %s3846_s11  }
 0x628   : > { %p17_p4 = scmp.ge.s32.totalorder %s20_s11, 6  }
 0x62a   :  { %19 = sbr.rel (!%p17_p4) target bundleno = 2 (0x2), region = 95 }

</bundles_post_ra>
